<compile_context>
chip_gen: v7x
topology: tpu7x:2x2x1
jax: 0.10.0
libtpu: 0.0.40
codegen_flags: <defaults>
</compile_context>

<pallas_src>
import math
import numpy as np
import jax
import jax.numpy as jnp
from jax import lax
from jax.experimental import pallas as pl
from jax.experimental.pallas import tpu as pltpu


# ----------------------------- glue (plain JAX / python) -----------------------------

def _infer_scales(feats, image_shapes):
    """torchvision _setup_scales: per-level spatial scale + level range."""
    max_h = max(int(s[0]) for s in image_shapes)
    max_w = max(int(s[1]) for s in image_shapes)
    original_size = (max_h, max_w)
    scales = []
    for f in feats:
        size = f.shape[-2:]
        possible = []
        for s1, s2 in zip(size, original_size):
            approx = float(s1) / float(s2)
            possible.append(2.0 ** float(round(math.log2(approx))))
        scales.append(possible[0])
    lvl_min = -math.log2(scales[0])
    lvl_max = -math.log2(scales[-1])
    return scales, lvl_min, lvl_max


def _map_levels(all_boxes, lvl_min, lvl_max, canonical_scale, canonical_level):
    """torchvision LevelMapper.__call__ (eps = 1e-6)."""
    area = (all_boxes[:, 2] - all_boxes[:, 0]) * (all_boxes[:, 3] - all_boxes[:, 1])
    s = jnp.sqrt(area)
    target = jnp.floor(canonical_level + jnp.log2(s / canonical_scale) + 1e-6)
    target = jnp.clip(target, lvl_min, lvl_max)
    return (target - lvl_min).astype(jnp.int32)


# --------------------------------- Pallas kernel --------------------------------------

def _make_roi_align_kernel(C, PH, PW, HMAX, WMAX, B, sampling, fold_x):
    """Per grid step: B ROIs sharing one (level, image) feature slab.

    fold_x=True : per-ROI X contraction as ONE matmul on a folded [PH*C, WMAX]
                  view of T (no block-diagonal waste, no per-channel loop).
    fold_x=False: per-(ROI, channel) small matmuls.  Always lowers; only used as a
                  fallback if the fold reshape is unsupported by Mosaic.
    """

    def tri_weights(start, bin_sz, extent, out_coord, feat_coord):
        # Mean over `sampling` sample points of the triangular bilinear weight that
        # feature index `feat_coord` contributes to output bin `out_coord`.
        # Boundary handling matches torchvision bilinear_interpolate:
        # coord < -1 or > extent contributes 0, else coord clamped to [0, extent-1].
        acc = jnp.zeros(out_coord.shape, jnp.float32)
        for i in range(sampling):                              # static, small (e.g. 2)
            coord = start + out_coord * bin_sz + (i + 0.5) * (bin_sz / sampling)
            valid = jnp.logical_and(coord >= -1.0, coord <= extent)
            cc = jnp.clip(coord, 0.0, extent - 1.0)
            acc = acc + jnp.maximum(0.0, 1.0 - jnp.abs(cc - feat_coord)) \
                * valid.astype(jnp.float32)
        return acc * (1.0 / sampling)

    def kernel(lvl_ref, img_ref, boxes_ref, scales_ref, hs_ref, ws_ref,
               feat_ref, out_ref):
        step = pl.program_id(0)
        lvl = lvl_ref[step]
        scale = scales_ref[lvl]
        Hf = hs_ref[lvl]
        Wf = ws_ref[lvl]

        feat = feat_ref[0, 0]                                  # [HMAX, C*WMAX]

        # Per-ROI box scalars (SMEM scalar reads, unrolled over the B ROIs).
        x1, y1, bin_h, bin_w = [], [], [], []
        for b in range(B):
            base = 4 * (step * B + b)
            bx1 = boxes_ref[base + 0] * scale
            by1 = boxes_ref[base + 1] * scale
            bx2 = boxes_ref[base + 2] * scale
            by2 = boxes_ref[base + 3] * scale
            roi_w = jnp.maximum(bx2 - bx1, 1.0)    # aligned=False: ROI size >= 1
            roi_h = jnp.maximum(by2 - by1, 1.0)
            x1.append(bx1)
            y1.append(by1)
            bin_h.append(roi_h / PH)
            bin_w.append(roi_w / PW)

        # Stacked Y weights for the whole ROI batch: WY[B*PH, HMAX].
        # Built in one pass via masked per-row selection of (y1, bin_h) — no
        # concatenate and no integer div/mod (review item on iota-plane cost).
        rows = lax.broadcasted_iota(jnp.int32, (B * PH, HMAX), 0)
        hpos = lax.broadcasted_iota(jnp.int32, (B * PH, HMAX), 1).astype(jnp.float32)
        y1_row = jnp.zeros((B * PH, HMAX), jnp.float32)
        bh_row = jnp.zeros((B * PH, HMAX), jnp.float32)
        p_row = rows.astype(jnp.float32)
        for b in range(B):
            in_b = jnp.logical_and(rows >= b * PH, rows < (b + 1) * PH)
            in_b = in_b.astype(jnp.float32)
            y1_row = y1_row + in_b * y1[b]
            bh_row = bh_row + in_b * bin_h[b]
            p_row = p_row - in_b * float(b * PH)
        wy = tri_weights(y1_row, bh_row, Hf, p_row, hpos)       # [B*PH, HMAX] f32

        # Weight construction stays f32; only the matmul operand is cast, so a
        # bf16 feature slab takes the bf16 MXU path with f32 accumulation.
        wy_mm = wy if feat.dtype == jnp.float32 else wy.astype(feat.dtype)

        # ONE lane-dense MXU matmul for the whole ROI batch (M = B*PH rows).
        t = lax.dot_general(wy_mm, feat, (((1,), (0,)), ((), ())),
                            preferred_element_type=jnp.float32)  # [B*PH, C*WMAX] f32

        # Per-ROI X contraction with the SMALL [WMAX, PW] weight matrix.
        wpos = lax.broadcasted_iota(jnp.int32, (WMAX, PW), 0).astype(jnp.float32)
        qpos = lax.broadcasted_iota(jnp.int32, (WMAX, PW), 1).astype(jnp.float32)
        for b in range(B):
            wx = tri_weights(x1[b], bin_w[b], Wf, qpos, wpos)    # [WMAX, PW] f32
            tb = t[b * PH:(b + 1) * PH, :]                       # [PH, C*WMAX]
            if fold_x:
                # Fold (p, c) onto rows: tb2[p*C + c, w] == tb[p, c*WMAX + w]
                tb2 = tb.reshape(PH * C, WMAX)
                r = lax.dot_general(tb2, wx, (((1,), (0,)), ((), ())),
                                    preferred_element_type=jnp.float32)  # [PH*C, PW]
                out_ref[b] = r.astype(out_ref.dtype)
            else:
                for c in range(C):
                    rc = lax.dot_general(tb[:, c * WMAX:(c + 1) * WMAX], wx,
                                         (((1,), (0,)), ((), ())),
                                         preferred_element_type=jnp.float32)  # [PH, PW]
                    out_ref[b, c * PH:(c + 1) * PH, :] = rc.astype(out_ref.dtype)

    return kernel


# --------------------------------- wrapper ---------------------------------------------

def multiscale_roi_align(feats, boxes, image_shapes, output_size=(28, 28),
                         sampling_ratio=2, canonical_scale=224, canonical_level=4,
                         roi_block=8, feature_dtype=None):
    assert sampling_ratio > 0
    PH, PW = output_size
    L = len(feats)
    N, C = int(feats[0].shape[0]), int(feats[0].shape[1])
    hs = [int(f.shape[2]) for f in feats]
    ws = [int(f.shape[3]) for f in feats]
    HMAX, WMAX = max(hs), max(ws)
    B = int(roi_block)
    out_dtype = feats[0].dtype
    if feature_dtype is None:
        feature_dtype = feats[0].dtype

    scales, lvl_min, lvl_max = _infer_scales(feats, image_shapes)

    all_boxes = jnp.concatenate(boxes, axis=0).astype(jnp.float32)        # [K, 4]
    batch_idx = jnp.concatenate([jnp.full((b.shape[0],), i, jnp.int32)
                                 for i, b in enumerate(boxes)])           # [K]
    K = int(all_boxes.shape[0])

    if L == 1:
        levels = jnp.zeros((K,), jnp.int32)
    else:
        levels = _map_levels(all_boxes, lvl_min, lvl_max,
                             float(canonical_scale), float(canonical_level))

    aux = dict(levels=levels, batch_idx=batch_idx, boxes=all_boxes,
               scales=scales, hs=hs, ws=ws)
    if K == 0:
        return jnp.zeros((0, C, PH, PW), out_dtype), aux

    # ---- repack pyramid lane-dense: [L, N, HMAX, C*WMAX] ------------------------------
    # feat_stack[l, n, h, c*WMAX + w] == feats[l][n, c, h, w]
    packed = []
    for f in feats:
        fp = jnp.pad(f, ((0, 0), (0, 0),
                         (0, HMAX - f.shape[2]), (0, WMAX - f.shape[3])))
        packed.append(fp.transpose(0, 2, 1, 3).reshape(N, HMAX, C * WMAX))
    feat_stack = jnp.stack(packed, axis=0).astype(feature_dtype)

    # ---- sort ROIs by (level, image); pad each group to a multiple of B ---------------
    # Static worst-case padded size so all shapes are trace-time constants.
    G = L * N
    key = levels * N + batch_idx                                  # [K], in [0, G)
    order = jnp.argsort(key)
    inv_order = jnp.argsort(order)
    key_s = key[order]
    boxes_s = all_boxes[order]

    counts = jnp.bincount(key, length=G)                          # [G]
    counts_start = jnp.concatenate(
        [jnp.zeros((1,), counts.dtype), jnp.cumsum(counts)[:-1]])
    padded = ((counts + B - 1) // B) * B
    pad_start = jnp.concatenate(
        [jnp.zeros((1,), padded.dtype), jnp.cumsum(padded)[:-1]])

    S = int(math.ceil((K + G * (B - 1)) / B)) * B                 # static upper bound
    num_steps = S // B

    rank = jnp.arange(K, dtype=counts.dtype) - counts_start[key_s]
    slot = (pad_start[key_s] + rank).astype(jnp.int32)            # [K], unique slots

    # slot -> sorted-ROI index (padding slots reuse sorted ROI 0; their output is dropped)
    src = jnp.zeros((S,), jnp.int32).at[slot].set(jnp.arange(K, dtype=jnp.int32))
    boxes_flat = boxes_s[src].reshape(-1)                         # (4*S,) flat SMEM

    # per-step (level, image): each step lies fully inside one group region
    bounds = jnp.cumsum(padded)
    step_group = jnp.clip(
        jnp.searchsorted(bounds, jnp.arange(0, S, B), side='right'), 0, G - 1)
    step_level = (step_group // N).astype(jnp.int32)
    step_image = (step_group % N).astype(jnp.int32)

    scales_arr = jnp.asarray(scales, jnp.float32)
    hs_arr = jnp.asarray(hs, jnp.float32)
    ws_arr = jnp.asarray(ws, jnp.float32)

    # ---- compiler params / cost estimate ----------------------------------------------
    feat_block_bytes = HMAX * C * WMAX * jnp.dtype(feature_dtype).itemsize
    out_block_bytes = B * C * PH * PW * jnp.dtype(out_dtype).itemsize
    t_bytes = B * PH * C * WMAX * 4
    vmem_limit = int(min(max(2 * feat_block_bytes + 2 * out_block_bytes
                             + t_bytes + (4 << 20), 32 << 20), 96 << 20))

    flops = 2 * S * PH * C * WMAX * (HMAX + PW)
    bytes_accessed = (int(np.prod(feat_stack.shape)) * jnp.dtype(feature_dtype).itemsize
                      + S * C * PH * PW * jnp.dtype(out_dtype).itemsize
                      + 4 * S * 4)
    cost = pl.CostEstimate(flops=int(flops), transcendentals=0,
                           bytes_accessed=int(bytes_accessed))

    def run(fold_x):
        kernel = _make_roi_align_kernel(C, PH, PW, HMAX, WMAX, B,
                                        int(sampling_ratio), fold_x)
        grid_spec = pltpu.PrefetchScalarGridSpec(
            num_scalar_prefetch=2,          # (step_level, step_image) -> SMEM
            grid=(num_steps,),
            in_specs=[
                pl.BlockSpec(memory_space=pltpu.MemorySpace.SMEM),   # boxes   (4S,) f32
                pl.BlockSpec(memory_space=pltpu.MemorySpace.SMEM),   # scales  [L]   f32
                pl.BlockSpec(memory_space=pltpu.MemorySpace.SMEM),   # heights [L]   f32
                pl.BlockSpec(memory_space=pltpu.MemorySpace.SMEM),   # widths  [L]   f32
                pl.BlockSpec((1, 1, HMAX, C * WMAX),
                             lambda s, lv, im: (lv[s], im[s], 0, 0)),
            ],
            out_specs=pl.BlockSpec((B, C * PH, PW), lambda s, lv, im: (s, 0, 0)),
        )
        out_p = pl.pallas_call(
            kernel,
            out_shape=jax.ShapeDtypeStruct((S, C * PH, PW), out_dtype),
            grid_spec=grid_spec,
            compiler_params=pltpu.CompilerParams(
                dimension_semantics=("parallel",),
                vmem_limit_bytes=vmem_limit),
            cost_estimate=cost,
        )(step_level, step_image, boxes_flat, scales_arr, hs_arr, ws_arr, feat_stack)
        if fold_x:   # rows are (p, c)
            out4 = out_p.reshape(S, PH, C, PW).transpose(0, 2, 1, 3)
        else:        # rows are (c, p)
            out4 = out_p.reshape(S, C, PH, PW)
        return out4

    try:
        out4 = jax.block_until_ready(run(True))
    except Exception:
        # Mosaic versions without the lane->sublane fold reshape fall back to
        # per-channel X matmuls (identical numerics, more MXU instructions).
        out4 = jax.block_until_ready(run(False))

    # drop padding slots and restore the original ROI order
    out = out4[slot[inv_order]]
    return out, aux


# ------------------------------ numpy reference (check) -------------------------------

def _np_axis_weights(start, bin_sz, extent, n_out, n_feat, sampling):
    p = np.arange(n_out, dtype=np.float64)[:, None]
    f = np.arange(n_feat, dtype=np.float64)[None, :]
    acc = np.zeros((n_out, n_feat), np.float64)
    for s in range(sampling):
        coord = start + p * bin_sz + (s + 0.5) * (bin_sz / sampling)
        valid = ((coord >= -1.0) & (coord <= extent)).astype(np.float64)
        cc = np.clip(coord, 0.0, extent - 1.0)
        acc += np.maximum(0.0, 1.0 - np.abs(cc - f)) * valid
    return acc / sampling


def reference_multiscale_roi_align(feats, aux, output_size, sampling_ratio):
    PH, PW = output_size
    feats_np = [np.asarray(f, np.float64) for f in feats]
    boxes = np.asarray(aux["boxes"], np.float64)
    levels = np.asarray(aux["levels"])
    batch = np.asarray(aux["batch_idx"])
    scales = aux["scales"]
    K = boxes.shape[0]
    C = feats_np[0].shape[1]
    out = np.zeros((K, C, PH, PW), np.float64)
    for r in range(K):
        lvl = int(levels[r]); b = int(batch[r]); sc = scales[lvl]
        feat = feats_np[lvl][b]
        H, W = feat.shape[-2:]
        x1, y1, x2, y2 = boxes[r] * sc
        roi_w = max(x2 - x1, 1.0)
        roi_h = max(y2 - y1, 1.0)
        WY = _np_axis_weights(y1, roi_h / PH, float(H), PH, H, sampling_ratio)
        WX = _np_axis_weights(x1, roi_w / PW, float(W), PW, W, sampling_ratio)
        out[r] = np.einsum('ph,chw,qw->cpq', WY, feat, WX)
    return out


# ----------------------------------------- main ---------------------------------------

if __name__ == "__main__":
    key = jax.random.PRNGKey(0)
    k1, k2 = jax.random.split(key)
    N, C = 2, 4
    image_shapes = [(64, 64), (64, 64)]
    feats = [jax.random.normal(k1, (N, C, 16, 16), jnp.float32),   # stride-4 level
             jax.random.normal(k2, (N, C, 8, 8),   jnp.float32)]   # stride-8 level

    boxes = [jnp.array([[ 4.0,  6.0, 20.0, 24.0],
                        [ 0.0,  0.0, 90.0, 90.0],
                        [10.0, 12.0, 40.0, 30.0]], jnp.float32),
             jnp.array([[ 0.0,  0.0, 16.0, 16.0],
                        [ 2.0,  2.0, 70.0, 70.0],
                        [30.0, 20.0, 50.0, 44.0]], jnp.float32)]

    output_size = (28, 28)
    sampling_ratio = 2

    # f32 feature path, ROI batch = 4
    out, aux = multiscale_roi_align(feats, boxes, image_shapes,
                                    output_size=output_size,
                                    sampling_ratio=sampling_ratio,
                                    canonical_scale=32, canonical_level=2,
                                    roi_block=4)
    out = jax.block_until_ready(out)
    assert out.shape == (6, C, 28, 28), out.shape
    ref = reference_multiscale_roi_align(feats, aux, output_size, sampling_ratio)
    np.testing.assert_allclose(np.asarray(out, np.float64), ref, rtol=1e-2, atol=1e-2)

    # bf16 feature-slab path (halved slab DMA/VMEM, bf16 MXU), ROI batch = 8
    out_bf, _ = multiscale_roi_align(feats, boxes, image_shapes,
                                     output_size=output_size,
                                     sampling_ratio=sampling_ratio,
                                     canonical_scale=32, canonical_level=2,
                                     roi_block=8, feature_dtype=jnp.bfloat16)
    out_bf = jax.block_until_ready(out_bf)
    np.testing.assert_allclose(np.asarray(out_bf, np.float64), ref,
                               rtol=5e-2, atol=5e-2)

    print("KERNEL_OK")
</pallas_src>

<mosaic_0001>
module attributes {stable_mosaic.version = 11 : i64} {
  func.func @kernel(%arg0: i32, %arg1: memref<5xi32, #tpu.memory_space<smem>>, %arg2: memref<5xi32, #tpu.memory_space<smem>>, %arg3: memref<80xf32, #tpu.memory_space<smem>>, %arg4: memref<2xf32, #tpu.memory_space<smem>>, %arg5: memref<2xf32, #tpu.memory_space<smem>>, %arg6: memref<2xf32, #tpu.memory_space<smem>>, %arg7: memref<1x1x16x64xf32, #tpu.memory_space<vmem>>, %arg8: memref<4x112x28xf32, #tpu.memory_space<vmem>>) attributes {dimension_semantics = [#tpu.dimension_semantics<parallel>], iteration_bounds = array<i64: 5>, scalar_prefetch = 2 : i64, scratch_operands = 0 : i64, tpu.core_type = #tpu.core_type<tc>, window_params = [{transform_indices = @transform_0, window_bounds = array<i64: 80>}, {transform_indices = @transform_1, window_bounds = array<i64: 2>}, {transform_indices = @transform_2, window_bounds = array<i64: 2>}, {transform_indices = @transform_3, window_bounds = array<i64: 2>}, {transform_indices = @transform_4, window_bounds = array<i64: 1, 1, 16, 64>}, {transform_indices = @transform_5, window_bounds = array<i64: 4, 112, 28>}]} {
    %0 = arith.index_cast %arg0 : i32 to index
    %1 = memref.load %arg1[%0] : memref<5xi32, #tpu.memory_space<smem>>
    %2 = arith.index_cast %1 : i32 to index
    %3 = memref.load %arg4[%2] : memref<2xf32, #tpu.memory_space<smem>>
    %4 = arith.index_cast %1 : i32 to index
    %5 = memref.load %arg5[%4] : memref<2xf32, #tpu.memory_space<smem>>
    %6 = arith.index_cast %1 : i32 to index
    %7 = memref.load %arg6[%6] : memref<2xf32, #tpu.memory_space<smem>>
    %c0 = arith.constant 0 : index
    %c0_0 = arith.constant 0 : index
    %c0_1 = arith.constant 0 : index
    %c0_2 = arith.constant 0 : index
    %8 = vector.load %arg7[%c0, %c0_0, %c0_1, %c0_2] : memref<1x1x16x64xf32, #tpu.memory_space<vmem>>, vector<1x1x16x64xf32>
    %9 = vector.shape_cast %8 : vector<1x1x16x64xf32> to vector<16x64xf32>
    %c4_i32 = arith.constant 4 : i32
    %10 = arith.muli %arg0, %c4_i32 : i32
    %c0_i32 = arith.constant 0 : i32
    %11 = arith.addi %10, %c0_i32 : i32
    %c4_i32_3 = arith.constant 4 : i32
    %12 = arith.muli %c4_i32_3, %11 : i32
    %c0_i32_4 = arith.constant 0 : i32
    %13 = arith.addi %12, %c0_i32_4 : i32
    %14 = arith.index_cast %13 : i32 to index
    %15 = memref.load %arg3[%14] : memref<80xf32, #tpu.memory_space<smem>>
    %16 = arith.mulf %15, %3 : f32
    %c1_i32 = arith.constant 1 : i32
    %17 = arith.addi %12, %c1_i32 : i32
    %18 = arith.index_cast %17 : i32 to index
    %19 = memref.load %arg3[%18] : memref<80xf32, #tpu.memory_space<smem>>
    %20 = arith.mulf %19, %3 : f32
    %c2_i32 = arith.constant 2 : i32
    %21 = arith.addi %12, %c2_i32 : i32
    %22 = arith.index_cast %21 : i32 to index
    %23 = memref.load %arg3[%22] : memref<80xf32, #tpu.memory_space<smem>>
    %24 = arith.mulf %23, %3 : f32
    %c3_i32 = arith.constant 3 : i32
    %25 = arith.addi %12, %c3_i32 : i32
    %26 = arith.index_cast %25 : i32 to index
    %27 = memref.load %arg3[%26] : memref<80xf32, #tpu.memory_space<smem>>
    %28 = arith.mulf %27, %3 : f32
    %29 = arith.subf %24, %16 : f32
    %cst = arith.constant 1.000000e+00 : f32
    %30 = arith.maximumf %29, %cst : f32
    %31 = arith.subf %28, %20 : f32
    %cst_5 = arith.constant 1.000000e+00 : f32
    %32 = arith.maximumf %31, %cst_5 : f32
    %cst_6 = arith.constant 2.800000e+01 : f32
    %33 = arith.divf %32, %cst_6 : f32
    %cst_7 = arith.constant 2.800000e+01 : f32
    %34 = arith.divf %30, %cst_7 : f32
    %c4_i32_8 = arith.constant 4 : i32
    %35 = arith.muli %arg0, %c4_i32_8 : i32
    %c1_i32_9 = arith.constant 1 : i32
    %36 = arith.addi %35, %c1_i32_9 : i32
    %c4_i32_10 = arith.constant 4 : i32
    %37 = arith.muli %c4_i32_10, %36 : i32
    %c0_i32_11 = arith.constant 0 : i32
    %38 = arith.addi %37, %c0_i32_11 : i32
    %39 = arith.index_cast %38 : i32 to index
    %40 = memref.load %arg3[%39] : memref<80xf32, #tpu.memory_space<smem>>
    %41 = arith.mulf %40, %3 : f32
    %c1_i32_12 = arith.constant 1 : i32
    %42 = arith.addi %37, %c1_i32_12 : i32
    %43 = arith.index_cast %42 : i32 to index
    %44 = memref.load %arg3[%43] : memref<80xf32, #tpu.memory_space<smem>>
    %45 = arith.mulf %44, %3 : f32
    %c2_i32_13 = arith.constant 2 : i32
    %46 = arith.addi %37, %c2_i32_13 : i32
    %47 = arith.index_cast %46 : i32 to index
    %48 = memref.load %arg3[%47] : memref<80xf32, #tpu.memory_space<smem>>
    %49 = arith.mulf %48, %3 : f32
    %c3_i32_14 = arith.constant 3 : i32
    %50 = arith.addi %37, %c3_i32_14 : i32
    %51 = arith.index_cast %50 : i32 to index
    %52 = memref.load %arg3[%51] : memref<80xf32, #tpu.memory_space<smem>>
    %53 = arith.mulf %52, %3 : f32
    %54 = arith.subf %49, %41 : f32
    %cst_15 = arith.constant 1.000000e+00 : f32
    %55 = arith.maximumf %54, %cst_15 : f32
    %56 = arith.subf %53, %45 : f32
    %cst_16 = arith.constant 1.000000e+00 : f32
    %57 = arith.maximumf %56, %cst_16 : f32
    %cst_17 = arith.constant 2.800000e+01 : f32
    %58 = arith.divf %57, %cst_17 : f32
    %cst_18 = arith.constant 2.800000e+01 : f32
    %59 = arith.divf %55, %cst_18 : f32
    %c4_i32_19 = arith.constant 4 : i32
    %60 = arith.muli %arg0, %c4_i32_19 : i32
    %c2_i32_20 = arith.constant 2 : i32
    %61 = arith.addi %60, %c2_i32_20 : i32
    %c4_i32_21 = arith.constant 4 : i32
    %62 = arith.muli %c4_i32_21, %61 : i32
    %c0_i32_22 = arith.constant 0 : i32
    %63 = arith.addi %62, %c0_i32_22 : i32
    %64 = arith.index_cast %63 : i32 to index
    %65 = memref.load %arg3[%64] : memref<80xf32, #tpu.memory_space<smem>>
    %66 = arith.mulf %65, %3 : f32
    %c1_i32_23 = arith.constant 1 : i32
    %67 = arith.addi %62, %c1_i32_23 : i32
    %68 = arith.index_cast %67 : i32 to index
    %69 = memref.load %arg3[%68] : memref<80xf32, #tpu.memory_space<smem>>
    %70 = arith.mulf %69, %3 : f32
    %c2_i32_24 = arith.constant 2 : i32
    %71 = arith.addi %62, %c2_i32_24 : i32
    %72 = arith.index_cast %71 : i32 to index
    %73 = memref.load %arg3[%72] : memref<80xf32, #tpu.memory_space<smem>>
    %74 = arith.mulf %73, %3 : f32
    %c3_i32_25 = arith.constant 3 : i32
    %75 = arith.addi %62, %c3_i32_25 : i32
    %76 = arith.index_cast %75 : i32 to index
    %77 = memref.load %arg3[%76] : memref<80xf32, #tpu.memory_space<smem>>
    %78 = arith.mulf %77, %3 : f32
    %79 = arith.subf %74, %66 : f32
    %cst_26 = arith.constant 1.000000e+00 : f32
    %80 = arith.maximumf %79, %cst_26 : f32
    %81 = arith.subf %78, %70 : f32
    %cst_27 = arith.constant 1.000000e+00 : f32
    %82 = arith.maximumf %81, %cst_27 : f32
    %cst_28 = arith.constant 2.800000e+01 : f32
    %83 = arith.divf %82, %cst_28 : f32
    %cst_29 = arith.constant 2.800000e+01 : f32
    %84 = arith.divf %80, %cst_29 : f32
    %c4_i32_30 = arith.constant 4 : i32
    %85 = arith.muli %arg0, %c4_i32_30 : i32
    %c3_i32_31 = arith.constant 3 : i32
    %86 = arith.addi %85, %c3_i32_31 : i32
    %c4_i32_32 = arith.constant 4 : i32
    %87 = arith.muli %c4_i32_32, %86 : i32
    %c0_i32_33 = arith.constant 0 : i32
    %88 = arith.addi %87, %c0_i32_33 : i32
    %89 = arith.index_cast %88 : i32 to index
    %90 = memref.load %arg3[%89] : memref<80xf32, #tpu.memory_space<smem>>
    %91 = arith.mulf %90, %3 : f32
    %c1_i32_34 = arith.constant 1 : i32
    %92 = arith.addi %87, %c1_i32_34 : i32
    %93 = arith.index_cast %92 : i32 to index
    %94 = memref.load %arg3[%93] : memref<80xf32, #tpu.memory_space<smem>>
    %95 = arith.mulf %94, %3 : f32
    %c2_i32_35 = arith.constant 2 : i32
    %96 = arith.addi %87, %c2_i32_35 : i32
    %97 = arith.index_cast %96 : i32 to index
    %98 = memref.load %arg3[%97] : memref<80xf32, #tpu.memory_space<smem>>
    %99 = arith.mulf %98, %3 : f32
    %c3_i32_36 = arith.constant 3 : i32
    %100 = arith.addi %87, %c3_i32_36 : i32
    %101 = arith.index_cast %100 : i32 to index
    %102 = memref.load %arg3[%101] : memref<80xf32, #tpu.memory_space<smem>>
    %103 = arith.mulf %102, %3 : f32
    %104 = arith.subf %99, %91 : f32
    %cst_37 = arith.constant 1.000000e+00 : f32
    %105 = arith.maximumf %104, %cst_37 : f32
    %106 = arith.subf %103, %95 : f32
    %cst_38 = arith.constant 1.000000e+00 : f32
    %107 = arith.maximumf %106, %cst_38 : f32
    %cst_39 = arith.constant 2.800000e+01 : f32
    %108 = arith.divf %107, %cst_39 : f32
    %cst_40 = arith.constant 2.800000e+01 : f32
    %109 = arith.divf %105, %cst_40 : f32
    %110 = tpu.iota {dimensions = array<i32: 0>} : vector<112x16xi32>
    %111 = tpu.iota {dimensions = array<i32: 1>} : vector<112x16xi32>
    %112 = arith.sitofp %111 : vector<112x16xi32> to vector<112x16xf32>
    %cst_41 = arith.constant 0.000000e+00 : f32
    %113 = vector.broadcast %cst_41 : f32 to vector<112x16xf32>
    %cst_42 = arith.constant 0.000000e+00 : f32
    %114 = vector.broadcast %cst_42 : f32 to vector<112x16xf32>
    %115 = arith.sitofp %110 : vector<112x16xi32> to vector<112x16xf32>
    %c0_i32_43 = arith.constant 0 : i32
    %116 = vector.broadcast %c0_i32_43 : i32 to vector<112x16xi32>
    %117 = arith.cmpi sge, %110, %116 : vector<112x16xi32>
    %c28_i32 = arith.constant 28 : i32
    %118 = vector.broadcast %c28_i32 : i32 to vector<112x16xi32>
    %119 = arith.cmpi slt, %110, %118 : vector<112x16xi32>
    %120 = arith.andi %117, %119 : vector<112x16xi1>
    %121 = arith.extui %120 : vector<112x16xi1> to vector<112x16xi32>
    %122 = arith.sitofp %121 : vector<112x16xi32> to vector<112x16xf32>
    %123 = vector.broadcast %20 : f32 to vector<112x16xf32>
    %124 = arith.mulf %122, %123 : vector<112x16xf32>
    %125 = arith.addf %113, %124 : vector<112x16xf32>
    %126 = vector.broadcast %33 : f32 to vector<112x16xf32>
    %127 = arith.mulf %122, %126 : vector<112x16xf32>
    %128 = arith.addf %114, %127 : vector<112x16xf32>
    %cst_44 = arith.constant 0.000000e+00 : f32
    %129 = vector.broadcast %cst_44 : f32 to vector<112x16xf32>
    %130 = arith.mulf %122, %129 : vector<112x16xf32>
    %131 = arith.subf %115, %130 : vector<112x16xf32>
    %c28_i32_45 = arith.constant 28 : i32
    %132 = vector.broadcast %c28_i32_45 : i32 to vector<112x16xi32>
    %133 = arith.cmpi sge, %110, %132 : vector<112x16xi32>
    %c56_i32 = arith.constant 56 : i32
    %134 = vector.broadcast %c56_i32 : i32 to vector<112x16xi32>
    %135 = arith.cmpi slt, %110, %134 : vector<112x16xi32>
    %136 = arith.andi %133, %135 : vector<112x16xi1>
    %137 = arith.extui %136 : vector<112x16xi1> to vector<112x16xi32>
    %138 = arith.sitofp %137 : vector<112x16xi32> to vector<112x16xf32>
    %139 = vector.broadcast %45 : f32 to vector<112x16xf32>
    %140 = arith.mulf %138, %139 : vector<112x16xf32>
    %141 = arith.addf %125, %140 : vector<112x16xf32>
    %142 = vector.broadcast %58 : f32 to vector<112x16xf32>
    %143 = arith.mulf %138, %142 : vector<112x16xf32>
    %144 = arith.addf %128, %143 : vector<112x16xf32>
    %cst_46 = arith.constant 2.800000e+01 : f32
    %145 = vector.broadcast %cst_46 : f32 to vector<112x16xf32>
    %146 = arith.mulf %138, %145 : vector<112x16xf32>
    %147 = arith.subf %131, %146 : vector<112x16xf32>
    %c56_i32_47 = arith.constant 56 : i32
    %148 = vector.broadcast %c56_i32_47 : i32 to vector<112x16xi32>
    %149 = arith.cmpi sge, %110, %148 : vector<112x16xi32>
    %c84_i32 = arith.constant 84 : i32
    %150 = vector.broadcast %c84_i32 : i32 to vector<112x16xi32>
    %151 = arith.cmpi slt, %110, %150 : vector<112x16xi32>
    %152 = arith.andi %149, %151 : vector<112x16xi1>
    %153 = arith.extui %152 : vector<112x16xi1> to vector<112x16xi32>
    %154 = arith.sitofp %153 : vector<112x16xi32> to vector<112x16xf32>
    %155 = vector.broadcast %70 : f32 to vector<112x16xf32>
    %156 = arith.mulf %154, %155 : vector<112x16xf32>
    %157 = arith.addf %141, %156 : vector<112x16xf32>
    %158 = vector.broadcast %83 : f32 to vector<112x16xf32>
    %159 = arith.mulf %154, %158 : vector<112x16xf32>
    %160 = arith.addf %144, %159 : vector<112x16xf32>
    %cst_48 = arith.constant 5.600000e+01 : f32
    %161 = vector.broadcast %cst_48 : f32 to vector<112x16xf32>
    %162 = arith.mulf %154, %161 : vector<112x16xf32>
    %163 = arith.subf %147, %162 : vector<112x16xf32>
    %c84_i32_49 = arith.constant 84 : i32
    %164 = vector.broadcast %c84_i32_49 : i32 to vector<112x16xi32>
    %165 = arith.cmpi sge, %110, %164 : vector<112x16xi32>
    %c112_i32 = arith.constant 112 : i32
    %166 = vector.broadcast %c112_i32 : i32 to vector<112x16xi32>
    %167 = arith.cmpi slt, %110, %166 : vector<112x16xi32>
    %168 = arith.andi %165, %167 : vector<112x16xi1>
    %169 = arith.extui %168 : vector<112x16xi1> to vector<112x16xi32>
    %170 = arith.sitofp %169 : vector<112x16xi32> to vector<112x16xf32>
    %171 = vector.broadcast %95 : f32 to vector<112x16xf32>
    %172 = arith.mulf %170, %171 : vector<112x16xf32>
    %173 = arith.addf %157, %172 : vector<112x16xf32>
    %174 = vector.broadcast %108 : f32 to vector<112x16xf32>
    %175 = arith.mulf %170, %174 : vector<112x16xf32>
    %176 = arith.addf %160, %175 : vector<112x16xf32>
    %cst_50 = arith.constant 8.400000e+01 : f32
    %177 = vector.broadcast %cst_50 : f32 to vector<112x16xf32>
    %178 = arith.mulf %170, %177 : vector<112x16xf32>
    %179 = arith.subf %163, %178 : vector<112x16xf32>
    %cst_51 = arith.constant 0.000000e+00 : f32
    %180 = vector.broadcast %cst_51 : f32 to vector<112x16xf32>
    %181 = arith.mulf %179, %176 : vector<112x16xf32>
    %182 = arith.addf %173, %181 : vector<112x16xf32>
    %cst_52 = arith.constant 2.000000e+00 : f32
    %183 = vector.broadcast %cst_52 : f32 to vector<112x16xf32>
    %184 = arith.divf %176, %183 : vector<112x16xf32>
    %cst_53 = arith.constant 5.000000e-01 : f32
    %185 = vector.broadcast %cst_53 : f32 to vector<112x16xf32>
    %186 = arith.mulf %185, %184 : vector<112x16xf32>
    %187 = arith.addf %182, %186 : vector<112x16xf32>
    %cst_54 = arith.constant -1.000000e+00 : f32
    %188 = vector.broadcast %cst_54 : f32 to vector<112x16xf32>
    %189 = arith.cmpf oge, %187, %188 : vector<112x16xf32>
    %190 = vector.broadcast %5 : f32 to vector<112x16xf32>
    %191 = arith.cmpf ole, %187, %190 : vector<112x16xf32>
    %192 = arith.andi %189, %191 : vector<112x16xi1>
    %cst_55 = arith.constant 1.000000e+00 : f32
    %193 = arith.subf %5, %cst_55 : f32
    %cst_56 = arith.constant 0.000000e+00 : f32
    %194 = vector.broadcast %cst_56 : f32 to vector<112x16xf32>
    %195 = arith.maximumf %194, %187 : vector<112x16xf32>
    %196 = vector.broadcast %193 : f32 to vector<112x16xf32>
    %197 = arith.minimumf %196, %195 : vector<112x16xf32>
    %198 = arith.subf %197, %112 : vector<112x16xf32>
    %199 = math.absf %198 : vector<112x16xf32>
    %cst_57 = arith.constant 1.000000e+00 : f32
    %200 = vector.broadcast %cst_57 : f32 to vector<112x16xf32>
    %201 = arith.subf %200, %199 : vector<112x16xf32>
    %cst_58 = arith.constant 0.000000e+00 : f32
    %202 = vector.broadcast %cst_58 : f32 to vector<112x16xf32>
    %203 = arith.maximumf %202, %201 : vector<112x16xf32>
    %204 = arith.extui %192 : vector<112x16xi1> to vector<112x16xi32>
    %205 = arith.sitofp %204 : vector<112x16xi32> to vector<112x16xf32>
    %206 = arith.mulf %203, %205 : vector<112x16xf32>
    %207 = arith.addf %180, %206 : vector<112x16xf32>
    %208 = arith.mulf %179, %176 : vector<112x16xf32>
    %209 = arith.addf %173, %208 : vector<112x16xf32>
    %cst_59 = arith.constant 2.000000e+00 : f32
    %210 = vector.broadcast %cst_59 : f32 to vector<112x16xf32>
    %211 = arith.divf %176, %210 : vector<112x16xf32>
    %cst_60 = arith.constant 1.500000e+00 : f32
    %212 = vector.broadcast %cst_60 : f32 to vector<112x16xf32>
    %213 = arith.mulf %212, %211 : vector<112x16xf32>
    %214 = arith.addf %209, %213 : vector<112x16xf32>
    %cst_61 = arith.constant -1.000000e+00 : f32
    %215 = vector.broadcast %cst_61 : f32 to vector<112x16xf32>
    %216 = arith.cmpf oge, %214, %215 : vector<112x16xf32>
    %217 = vector.broadcast %5 : f32 to vector<112x16xf32>
    %218 = arith.cmpf ole, %214, %217 : vector<112x16xf32>
    %219 = arith.andi %216, %218 : vector<112x16xi1>
    %cst_62 = arith.constant 1.000000e+00 : f32
    %220 = arith.subf %5, %cst_62 : f32
    %cst_63 = arith.constant 0.000000e+00 : f32
    %221 = vector.broadcast %cst_63 : f32 to vector<112x16xf32>
    %222 = arith.maximumf %221, %214 : vector<112x16xf32>
    %223 = vector.broadcast %220 : f32 to vector<112x16xf32>
    %224 = arith.minimumf %223, %222 : vector<112x16xf32>
    %225 = arith.subf %224, %112 : vector<112x16xf32>
    %226 = math.absf %225 : vector<112x16xf32>
    %cst_64 = arith.constant 1.000000e+00 : f32
    %227 = vector.broadcast %cst_64 : f32 to vector<112x16xf32>
    %228 = arith.subf %227, %226 : vector<112x16xf32>
    %cst_65 = arith.constant 0.000000e+00 : f32
    %229 = vector.broadcast %cst_65 : f32 to vector<112x16xf32>
    %230 = arith.maximumf %229, %228 : vector<112x16xf32>
    %231 = arith.extui %219 : vector<112x16xi1> to vector<112x16xi32>
    %232 = arith.sitofp %231 : vector<112x16xi32> to vector<112x16xf32>
    %233 = arith.mulf %230, %232 : vector<112x16xf32>
    %234 = arith.addf %207, %233 : vector<112x16xf32>
    %cst_66 = arith.constant 5.000000e-01 : f32
    %235 = vector.broadcast %cst_66 : f32 to vector<112x16xf32>
    %236 = arith.mulf %234, %235 : vector<112x16xf32>
    %cst_67 = arith.constant dense<0.000000e+00> : vector<112x64xf32>
    %237 = tpu.matmul %236, %9, %cst_67 {dimension_numbers = #tpu.dot_dimension_numbers<[1], [0], [0], [1], [0, 0, 1, 1], [], []>} : vector<112x16xf32>, vector<16x64xf32>, vector<112x64xf32> -> vector<112x64xf32>
    %238 = tpu.iota {dimensions = array<i32: 0>} : vector<16x28xi32>
    %239 = arith.sitofp %238 : vector<16x28xi32> to vector<16x28xf32>
    %240 = tpu.iota {dimensions = array<i32: 1>} : vector<16x28xi32>
    %241 = arith.sitofp %240 : vector<16x28xi32> to vector<16x28xf32>
    %cst_68 = arith.constant 0.000000e+00 : f32
    %242 = vector.broadcast %cst_68 : f32 to vector<16x28xf32>
    %243 = vector.broadcast %34 : f32 to vector<16x28xf32>
    %244 = arith.mulf %241, %243 : vector<16x28xf32>
    %245 = vector.broadcast %16 : f32 to vector<16x28xf32>
    %246 = arith.addf %245, %244 : vector<16x28xf32>
    %cst_69 = arith.constant 2.000000e+00 : f32
    %247 = arith.divf %34, %cst_69 : f32
    %cst_70 = arith.constant 5.000000e-01 : f32
    %248 = arith.mulf %cst_70, %247 : f32
    %249 = vector.broadcast %248 : f32 to vector<16x28xf32>
    %250 = arith.addf %246, %249 : vector<16x28xf32>
    %cst_71 = arith.constant -1.000000e+00 : f32
    %251 = vector.broadcast %cst_71 : f32 to vector<16x28xf32>
    %252 = arith.cmpf oge, %250, %251 : vector<16x28xf32>
    %253 = vector.broadcast %7 : f32 to vector<16x28xf32>
    %254 = arith.cmpf ole, %250, %253 : vector<16x28xf32>
    %255 = arith.andi %252, %254 : vector<16x28xi1>
    %cst_72 = arith.constant 1.000000e+00 : f32
    %256 = arith.subf %7, %cst_72 : f32
    %cst_73 = arith.constant 0.000000e+00 : f32
    %257 = vector.broadcast %cst_73 : f32 to vector<16x28xf32>
    %258 = arith.maximumf %257, %250 : vector<16x28xf32>
    %259 = vector.broadcast %256 : f32 to vector<16x28xf32>
    %260 = arith.minimumf %259, %258 : vector<16x28xf32>
    %261 = arith.subf %260, %239 : vector<16x28xf32>
    %262 = math.absf %261 : vector<16x28xf32>
    %cst_74 = arith.constant 1.000000e+00 : f32
    %263 = vector.broadcast %cst_74 : f32 to vector<16x28xf32>
    %264 = arith.subf %263, %262 : vector<16x28xf32>
    %cst_75 = arith.constant 0.000000e+00 : f32
    %265 = vector.broadcast %cst_75 : f32 to vector<16x28xf32>
    %266 = arith.maximumf %265, %264 : vector<16x28xf32>
    %267 = arith.extui %255 : vector<16x28xi1> to vector<16x28xi32>
    %268 = arith.sitofp %267 : vector<16x28xi32> to vector<16x28xf32>
    %269 = arith.mulf %266, %268 : vector<16x28xf32>
    %270 = arith.addf %242, %269 : vector<16x28xf32>
    %271 = vector.broadcast %34 : f32 to vector<16x28xf32>
    %272 = arith.mulf %241, %271 : vector<16x28xf32>
    %273 = vector.broadcast %16 : f32 to vector<16x28xf32>
    %274 = arith.addf %273, %272 : vector<16x28xf32>
    %cst_76 = arith.constant 2.000000e+00 : f32
    %275 = arith.divf %34, %cst_76 : f32
    %cst_77 = arith.constant 1.500000e+00 : f32
    %276 = arith.mulf %cst_77, %275 : f32
    %277 = vector.broadcast %276 : f32 to vector<16x28xf32>
    %278 = arith.addf %274, %277 : vector<16x28xf32>
    %cst_78 = arith.constant -1.000000e+00 : f32
    %279 = vector.broadcast %cst_78 : f32 to vector<16x28xf32>
    %280 = arith.cmpf oge, %278, %279 : vector<16x28xf32>
    %281 = vector.broadcast %7 : f32 to vector<16x28xf32>
    %282 = arith.cmpf ole, %278, %281 : vector<16x28xf32>
    %283 = arith.andi %280, %282 : vector<16x28xi1>
    %cst_79 = arith.constant 1.000000e+00 : f32
    %284 = arith.subf %7, %cst_79 : f32
    %cst_80 = arith.constant 0.000000e+00 : f32
    %285 = vector.broadcast %cst_80 : f32 to vector<16x28xf32>
    %286 = arith.maximumf %285, %278 : vector<16x28xf32>
    %287 = vector.broadcast %284 : f32 to vector<16x28xf32>
    %288 = arith.minimumf %287, %286 : vector<16x28xf32>
    %289 = arith.subf %288, %239 : vector<16x28xf32>
    %290 = math.absf %289 : vector<16x28xf32>
    %cst_81 = arith.constant 1.000000e+00 : f32
    %291 = vector.broadcast %cst_81 : f32 to vector<16x28xf32>
    %292 = arith.subf %291, %290 : vector<16x28xf32>
    %cst_82 = arith.constant 0.000000e+00 : f32
    %293 = vector.broadcast %cst_82 : f32 to vector<16x28xf32>
    %294 = arith.maximumf %293, %292 : vector<16x28xf32>
    %295 = arith.extui %283 : vector<16x28xi1> to vector<16x28xi32>
    %296 = arith.sitofp %295 : vector<16x28xi32> to vector<16x28xf32>
    %297 = arith.mulf %294, %296 : vector<16x28xf32>
    %298 = arith.addf %270, %297 : vector<16x28xf32>
    %cst_83 = arith.constant 5.000000e-01 : f32
    %299 = vector.broadcast %cst_83 : f32 to vector<16x28xf32>
    %300 = arith.mulf %298, %299 : vector<16x28xf32>
    %301 = vector.extract_strided_slice %237 {offsets = [0, 0], sizes = [28, 64], strides = [1, 1]} : vector<112x64xf32> to vector<28x64xf32>
    %302 = vector.shape_cast %301 : vector<28x64xf32> to vector<112x16xf32>
    %cst_84 = arith.constant dense<0.000000e+00> : vector<112x28xf32>
    %303 = tpu.matmul %302, %300, %cst_84 {dimension_numbers = #tpu.dot_dimension_numbers<[1], [0], [0], [1], [0, 0, 1, 1], [], []>} : vector<112x16xf32>, vector<16x28xf32>, vector<112x28xf32> -> vector<112x28xf32>
    %c0_85 = arith.constant 0 : index
    %c0_86 = arith.constant 0 : index
    %c0_87 = arith.constant 0 : index
    %304 = vector.load %arg8[%c0_85, %c0_86, %c0_87] : memref<4x112x28xf32, #tpu.memory_space<vmem>>, vector<1x112x28xf32>
    %305 = vector.shape_cast %304 : vector<1x112x28xf32> to vector<112x28xf32>
    %306 = vector.shape_cast %303 : vector<112x28xf32> to vector<1x112x28xf32>
    tpu.vector_store %arg8[%c0_85, %c0_86, %c0_87], %306 {strides = array<i32>} : memref<4x112x28xf32, #tpu.memory_space<vmem>>, vector<1x112x28xf32>,
    %cst_88 = arith.constant 0.000000e+00 : f32
    %307 = vector.broadcast %cst_88 : f32 to vector<16x28xf32>
    %308 = vector.broadcast %59 : f32 to vector<16x28xf32>
    %309 = arith.mulf %241, %308 : vector<16x28xf32>
    %310 = vector.broadcast %41 : f32 to vector<16x28xf32>
    %311 = arith.addf %310, %309 : vector<16x28xf32>
    %cst_89 = arith.constant 2.000000e+00 : f32
    %312 = arith.divf %59, %cst_89 : f32
    %cst_90 = arith.constant 5.000000e-01 : f32
    %313 = arith.mulf %cst_90, %312 : f32
    %314 = vector.broadcast %313 : f32 to vector<16x28xf32>
    %315 = arith.addf %311, %314 : vector<16x28xf32>
    %cst_91 = arith.constant -1.000000e+00 : f32
    %316 = vector.broadcast %cst_91 : f32 to vector<16x28xf32>
    %317 = arith.cmpf oge, %315, %316 : vector<16x28xf32>
    %318 = vector.broadcast %7 : f32 to vector<16x28xf32>
    %319 = arith.cmpf ole, %315, %318 : vector<16x28xf32>
    %320 = arith.andi %317, %319 : vector<16x28xi1>
    %cst_92 = arith.constant 1.000000e+00 : f32
    %321 = arith.subf %7, %cst_92 : f32
    %cst_93 = arith.constant 0.000000e+00 : f32
    %322 = vector.broadcast %cst_93 : f32 to vector<16x28xf32>
    %323 = arith.maximumf %322, %315 : vector<16x28xf32>
    %324 = vector.broadcast %321 : f32 to vector<16x28xf32>
    %325 = arith.minimumf %324, %323 : vector<16x28xf32>
    %326 = arith.subf %325, %239 : vector<16x28xf32>
    %327 = math.absf %326 : vector<16x28xf32>
    %cst_94 = arith.constant 1.000000e+00 : f32
    %328 = vector.broadcast %cst_94 : f32 to vector<16x28xf32>
    %329 = arith.subf %328, %327 : vector<16x28xf32>
    %cst_95 = arith.constant 0.000000e+00 : f32
    %330 = vector.broadcast %cst_95 : f32 to vector<16x28xf32>
    %331 = arith.maximumf %330, %329 : vector<16x28xf32>
    %332 = arith.extui %320 : vector<16x28xi1> to vector<16x28xi32>
    %333 = arith.sitofp %332 : vector<16x28xi32> to vector<16x28xf32>
    %334 = arith.mulf %331, %333 : vector<16x28xf32>
    %335 = arith.addf %307, %334 : vector<16x28xf32>
    %336 = vector.broadcast %59 : f32 to vector<16x28xf32>
    %337 = arith.mulf %241, %336 : vector<16x28xf32>
    %338 = vector.broadcast %41 : f32 to vector<16x28xf32>
    %339 = arith.addf %338, %337 : vector<16x28xf32>
    %cst_96 = arith.constant 2.000000e+00 : f32
    %340 = arith.divf %59, %cst_96 : f32
    %cst_97 = arith.constant 1.500000e+00 : f32
    %341 = arith.mulf %cst_97, %340 : f32
    %342 = vector.broadcast %341 : f32 to vector<16x28xf32>
    %343 = arith.addf %339, %342 : vector<16x28xf32>
    %cst_98 = arith.constant -1.000000e+00 : f32
    %344 = vector.broadcast %cst_98 : f32 to vector<16x28xf32>
    %345 = arith.cmpf oge, %343, %344 : vector<16x28xf32>
    %346 = vector.broadcast %7 : f32 to vector<16x28xf32>
    %347 = arith.cmpf ole, %343, %346 : vector<16x28xf32>
    %348 = arith.andi %345, %347 : vector<16x28xi1>
    %cst_99 = arith.constant 1.000000e+00 : f32
    %349 = arith.subf %7, %cst_99 : f32
    %cst_100 = arith.constant 0.000000e+00 : f32
    %350 = vector.broadcast %cst_100 : f32 to vector<16x28xf32>
    %351 = arith.maximumf %350, %343 : vector<16x28xf32>
    %352 = vector.broadcast %349 : f32 to vector<16x28xf32>
    %353 = arith.minimumf %352, %351 : vector<16x28xf32>
    %354 = arith.subf %353, %239 : vector<16x28xf32>
    %355 = math.absf %354 : vector<16x28xf32>
    %cst_101 = arith.constant 1.000000e+00 : f32
    %356 = vector.broadcast %cst_101 : f32 to vector<16x28xf32>
    %357 = arith.subf %356, %355 : vector<16x28xf32>
    %cst_102 = arith.constant 0.000000e+00 : f32
    %358 = vector.broadcast %cst_102 : f32 to vector<16x28xf32>
    %359 = arith.maximumf %358, %357 : vector<16x28xf32>
    %360 = arith.extui %348 : vector<16x28xi1> to vector<16x28xi32>
    %361 = arith.sitofp %360 : vector<16x28xi32> to vector<16x28xf32>
    %362 = arith.mulf %359, %361 : vector<16x28xf32>
    %363 = arith.addf %335, %362 : vector<16x28xf32>
    %cst_103 = arith.constant 5.000000e-01 : f32
    %364 = vector.broadcast %cst_103 : f32 to vector<16x28xf32>
    %365 = arith.mulf %363, %364 : vector<16x28xf32>
    %366 = vector.extract_strided_slice %237 {offsets = [28, 0], sizes = [28, 64], strides = [1, 1]} : vector<112x64xf32> to vector<28x64xf32>
    %367 = vector.shape_cast %366 : vector<28x64xf32> to vector<112x16xf32>
    %cst_104 = arith.constant dense<0.000000e+00> : vector<112x28xf32>
    %368 = tpu.matmul %367, %365, %cst_104 {dimension_numbers = #tpu.dot_dimension_numbers<[1], [0], [0], [1], [0, 0, 1, 1], [], []>} : vector<112x16xf32>, vector<16x28xf32>, vector<112x28xf32> -> vector<112x28xf32>
    %c1 = arith.constant 1 : index
    %c0_105 = arith.constant 0 : index
    %c0_106 = arith.constant 0 : index
    %369 = vector.load %arg8[%c1, %c0_105, %c0_106] : memref<4x112x28xf32, #tpu.memory_space<vmem>>, vector<1x112x28xf32>
    %370 = vector.shape_cast %369 : vector<1x112x28xf32> to vector<112x28xf32>
    %371 = vector.shape_cast %368 : vector<112x28xf32> to vector<1x112x28xf32>
    tpu.vector_store %arg8[%c1, %c0_105, %c0_106], %371 {strides = array<i32>} : memref<4x112x28xf32, #tpu.memory_space<vmem>>, vector<1x112x28xf32>,
    %cst_107 = arith.constant 0.000000e+00 : f32
    %372 = vector.broadcast %cst_107 : f32 to vector<16x28xf32>
    %373 = vector.broadcast %84 : f32 to vector<16x28xf32>
    %374 = arith.mulf %241, %373 : vector<16x28xf32>
    %375 = vector.broadcast %66 : f32 to vector<16x28xf32>
    %376 = arith.addf %375, %374 : vector<16x28xf32>
    %cst_108 = arith.constant 2.000000e+00 : f32
    %377 = arith.divf %84, %cst_108 : f32
    %cst_109 = arith.constant 5.000000e-01 : f32
    %378 = arith.mulf %cst_109, %377 : f32
    %379 = vector.broadcast %378 : f32 to vector<16x28xf32>
    %380 = arith.addf %376, %379 : vector<16x28xf32>
    %cst_110 = arith.constant -1.000000e+00 : f32
    %381 = vector.broadcast %cst_110 : f32 to vector<16x28xf32>
    %382 = arith.cmpf oge, %380, %381 : vector<16x28xf32>
    %383 = vector.broadcast %7 : f32 to vector<16x28xf32>
    %384 = arith.cmpf ole, %380, %383 : vector<16x28xf32>
    %385 = arith.andi %382, %384 : vector<16x28xi1>
    %cst_111 = arith.constant 1.000000e+00 : f32
    %386 = arith.subf %7, %cst_111 : f32
    %cst_112 = arith.constant 0.000000e+00 : f32
    %387 = vector.broadcast %cst_112 : f32 to vector<16x28xf32>
    %388 = arith.maximumf %387, %380 : vector<16x28xf32>
    %389 = vector.broadcast %386 : f32 to vector<16x28xf32>
    %390 = arith.minimumf %389, %388 : vector<16x28xf32>
    %391 = arith.subf %390, %239 : vector<16x28xf32>
    %392 = math.absf %391 : vector<16x28xf32>
    %cst_113 = arith.constant 1.000000e+00 : f32
    %393 = vector.broadcast %cst_113 : f32 to vector<16x28xf32>
    %394 = arith.subf %393, %392 : vector<16x28xf32>
    %cst_114 = arith.constant 0.000000e+00 : f32
    %395 = vector.broadcast %cst_114 : f32 to vector<16x28xf32>
    %396 = arith.maximumf %395, %394 : vector<16x28xf32>
    %397 = arith.extui %385 : vector<16x28xi1> to vector<16x28xi32>
    %398 = arith.sitofp %397 : vector<16x28xi32> to vector<16x28xf32>
    %399 = arith.mulf %396, %398 : vector<16x28xf32>
    %400 = arith.addf %372, %399 : vector<16x28xf32>
    %401 = vector.broadcast %84 : f32 to vector<16x28xf32>
    %402 = arith.mulf %241, %401 : vector<16x28xf32>
    %403 = vector.broadcast %66 : f32 to vector<16x28xf32>
    %404 = arith.addf %403, %402 : vector<16x28xf32>
    %cst_115 = arith.constant 2.000000e+00 : f32
    %405 = arith.divf %84, %cst_115 : f32
    %cst_116 = arith.constant 1.500000e+00 : f32
    %406 = arith.mulf %cst_116, %405 : f32
    %407 = vector.broadcast %406 : f32 to vector<16x28xf32>
    %408 = arith.addf %404, %407 : vector<16x28xf32>
    %cst_117 = arith.constant -1.000000e+00 : f32
    %409 = vector.broadcast %cst_117 : f32 to vector<16x28xf32>
    %410 = arith.cmpf oge, %408, %409 : vector<16x28xf32>
    %411 = vector.broadcast %7 : f32 to vector<16x28xf32>
    %412 = arith.cmpf ole, %408, %411 : vector<16x28xf32>
    %413 = arith.andi %410, %412 : vector<16x28xi1>
    %cst_118 = arith.constant 1.000000e+00 : f32
    %414 = arith.subf %7, %cst_118 : f32
    %cst_119 = arith.constant 0.000000e+00 : f32
    %415 = vector.broadcast %cst_119 : f32 to vector<16x28xf32>
    %416 = arith.maximumf %415, %408 : vector<16x28xf32>
    %417 = vector.broadcast %414 : f32 to vector<16x28xf32>
    %418 = arith.minimumf %417, %416 : vector<16x28xf32>
    %419 = arith.subf %418, %239 : vector<16x28xf32>
    %420 = math.absf %419 : vector<16x28xf32>
    %cst_120 = arith.constant 1.000000e+00 : f32
    %421 = vector.broadcast %cst_120 : f32 to vector<16x28xf32>
    %422 = arith.subf %421, %420 : vector<16x28xf32>
    %cst_121 = arith.constant 0.000000e+00 : f32
    %423 = vector.broadcast %cst_121 : f32 to vector<16x28xf32>
    %424 = arith.maximumf %423, %422 : vector<16x28xf32>
    %425 = arith.extui %413 : vector<16x28xi1> to vector<16x28xi32>
    %426 = arith.sitofp %425 : vector<16x28xi32> to vector<16x28xf32>
    %427 = arith.mulf %424, %426 : vector<16x28xf32>
    %428 = arith.addf %400, %427 : vector<16x28xf32>
    %cst_122 = arith.constant 5.000000e-01 : f32
    %429 = vector.broadcast %cst_122 : f32 to vector<16x28xf32>
    %430 = arith.mulf %428, %429 : vector<16x28xf32>
    %431 = vector.extract_strided_slice %237 {offsets = [56, 0], sizes = [28, 64], strides = [1, 1]} : vector<112x64xf32> to vector<28x64xf32>
    %432 = vector.shape_cast %431 : vector<28x64xf32> to vector<112x16xf32>
    %cst_123 = arith.constant dense<0.000000e+00> : vector<112x28xf32>
    %433 = tpu.matmul %432, %430, %cst_123 {dimension_numbers = #tpu.dot_dimension_numbers<[1], [0], [0], [1], [0, 0, 1, 1], [], []>} : vector<112x16xf32>, vector<16x28xf32>, vector<112x28xf32> -> vector<112x28xf32>
    %c2 = arith.constant 2 : index
    %c0_124 = arith.constant 0 : index
    %c0_125 = arith.constant 0 : index
    %434 = vector.load %arg8[%c2, %c0_124, %c0_125] : memref<4x112x28xf32, #tpu.memory_space<vmem>>, vector<1x112x28xf32>
    %435 = vector.shape_cast %434 : vector<1x112x28xf32> to vector<112x28xf32>
    %436 = vector.shape_cast %433 : vector<112x28xf32> to vector<1x112x28xf32>
    tpu.vector_store %arg8[%c2, %c0_124, %c0_125], %436 {strides = array<i32>} : memref<4x112x28xf32, #tpu.memory_space<vmem>>, vector<1x112x28xf32>,
    %cst_126 = arith.constant 0.000000e+00 : f32
    %437 = vector.broadcast %cst_126 : f32 to vector<16x28xf32>
    %438 = vector.broadcast %109 : f32 to vector<16x28xf32>
    %439 = arith.mulf %241, %438 : vector<16x28xf32>
    %440 = vector.broadcast %91 : f32 to vector<16x28xf32>
    %441 = arith.addf %440, %439 : vector<16x28xf32>
    %cst_127 = arith.constant 2.000000e+00 : f32
    %442 = arith.divf %109, %cst_127 : f32
    %cst_128 = arith.constant 5.000000e-01 : f32
    %443 = arith.mulf %cst_128, %442 : f32
    %444 = vector.broadcast %443 : f32 to vector<16x28xf32>
    %445 = arith.addf %441, %444 : vector<16x28xf32>
    %cst_129 = arith.constant -1.000000e+00 : f32
    %446 = vector.broadcast %cst_129 : f32 to vector<16x28xf32>
    %447 = arith.cmpf oge, %445, %446 : vector<16x28xf32>
    %448 = vector.broadcast %7 : f32 to vector<16x28xf32>
    %449 = arith.cmpf ole, %445, %448 : vector<16x28xf32>
    %450 = arith.andi %447, %449 : vector<16x28xi1>
    %cst_130 = arith.constant 1.000000e+00 : f32
    %451 = arith.subf %7, %cst_130 : f32
    %cst_131 = arith.constant 0.000000e+00 : f32
    %452 = vector.broadcast %cst_131 : f32 to vector<16x28xf32>
    %453 = arith.maximumf %452, %445 : vector<16x28xf32>
    %454 = vector.broadcast %451 : f32 to vector<16x28xf32>
    %455 = arith.minimumf %454, %453 : vector<16x28xf32>
    %456 = arith.subf %455, %239 : vector<16x28xf32>
    %457 = math.absf %456 : vector<16x28xf32>
    %cst_132 = arith.constant 1.000000e+00 : f32
    %458 = vector.broadcast %cst_132 : f32 to vector<16x28xf32>
    %459 = arith.subf %458, %457 : vector<16x28xf32>
    %cst_133 = arith.constant 0.000000e+00 : f32
    %460 = vector.broadcast %cst_133 : f32 to vector<16x28xf32>
    %461 = arith.maximumf %460, %459 : vector<16x28xf32>
    %462 = arith.extui %450 : vector<16x28xi1> to vector<16x28xi32>
    %463 = arith.sitofp %462 : vector<16x28xi32> to vector<16x28xf32>
    %464 = arith.mulf %461, %463 : vector<16x28xf32>
    %465 = arith.addf %437, %464 : vector<16x28xf32>
    %466 = vector.broadcast %109 : f32 to vector<16x28xf32>
    %467 = arith.mulf %241, %466 : vector<16x28xf32>
    %468 = vector.broadcast %91 : f32 to vector<16x28xf32>
    %469 = arith.addf %468, %467 : vector<16x28xf32>
    %cst_134 = arith.constant 2.000000e+00 : f32
    %470 = arith.divf %109, %cst_134 : f32
    %cst_135 = arith.constant 1.500000e+00 : f32
    %471 = arith.mulf %cst_135, %470 : f32
    %472 = vector.broadcast %471 : f32 to vector<16x28xf32>
    %473 = arith.addf %469, %472 : vector<16x28xf32>
    %cst_136 = arith.constant -1.000000e+00 : f32
    %474 = vector.broadcast %cst_136 : f32 to vector<16x28xf32>
    %475 = arith.cmpf oge, %473, %474 : vector<16x28xf32>
    %476 = vector.broadcast %7 : f32 to vector<16x28xf32>
    %477 = arith.cmpf ole, %473, %476 : vector<16x28xf32>
    %478 = arith.andi %475, %477 : vector<16x28xi1>
    %cst_137 = arith.constant 1.000000e+00 : f32
    %479 = arith.subf %7, %cst_137 : f32
    %cst_138 = arith.constant 0.000000e+00 : f32
    %480 = vector.broadcast %cst_138 : f32 to vector<16x28xf32>
    %481 = arith.maximumf %480, %473 : vector<16x28xf32>
    %482 = vector.broadcast %479 : f32 to vector<16x28xf32>
    %483 = arith.minimumf %482, %481 : vector<16x28xf32>
    %484 = arith.subf %483, %239 : vector<16x28xf32>
    %485 = math.absf %484 : vector<16x28xf32>
    %cst_139 = arith.constant 1.000000e+00 : f32
    %486 = vector.broadcast %cst_139 : f32 to vector<16x28xf32>
    %487 = arith.subf %486, %485 : vector<16x28xf32>
    %cst_140 = arith.constant 0.000000e+00 : f32
    %488 = vector.broadcast %cst_140 : f32 to vector<16x28xf32>
    %489 = arith.maximumf %488, %487 : vector<16x28xf32>
    %490 = arith.extui %478 : vector<16x28xi1> to vector<16x28xi32>
    %491 = arith.sitofp %490 : vector<16x28xi32> to vector<16x28xf32>
    %492 = arith.mulf %489, %491 : vector<16x28xf32>
    %493 = arith.addf %465, %492 : vector<16x28xf32>
    %cst_141 = arith.constant 5.000000e-01 : f32
    %494 = vector.broadcast %cst_141 : f32 to vector<16x28xf32>
    %495 = arith.mulf %493, %494 : vector<16x28xf32>
    %496 = vector.extract_strided_slice %237 {offsets = [84, 0], sizes = [28, 64], strides = [1, 1]} : vector<112x64xf32> to vector<28x64xf32>
    %497 = vector.shape_cast %496 : vector<28x64xf32> to vector<112x16xf32>
    %cst_142 = arith.constant dense<0.000000e+00> : vector<112x28xf32>
    %498 = tpu.matmul %497, %495, %cst_142 {dimension_numbers = #tpu.dot_dimension_numbers<[1], [0], [0], [1], [0, 0, 1, 1], [], []>} : vector<112x16xf32>, vector<16x28xf32>, vector<112x28xf32> -> vector<112x28xf32>
    %c3 = arith.constant 3 : index
    %c0_143 = arith.constant 0 : index
    %c0_144 = arith.constant 0 : index
    %499 = vector.load %arg8[%c3, %c0_143, %c0_144] : memref<4x112x28xf32, #tpu.memory_space<vmem>>, vector<1x112x28xf32>
    %500 = vector.shape_cast %499 : vector<1x112x28xf32> to vector<112x28xf32>
    %501 = vector.shape_cast %498 : vector<112x28xf32> to vector<1x112x28xf32>
    tpu.vector_store %arg8[%c3, %c0_143, %c0_144], %501 {strides = array<i32>} : memref<4x112x28xf32, #tpu.memory_space<vmem>>, vector<1x112x28xf32>,
    return
  }
  func.func @transform_0(%arg0: i32, %arg1: memref<5xi32, #tpu.memory_space<smem>>, %arg2: memref<5xi32, #tpu.memory_space<smem>>) -> i32 {
    %c0_i32 = arith.constant 0 : i32
    %c0_i32_0 = arith.constant 0 : i32
    return %c0_i32 : i32
  }
  func.func @transform_1(%arg0: i32, %arg1: memref<5xi32, #tpu.memory_space<smem>>, %arg2: memref<5xi32, #tpu.memory_space<smem>>) -> i32 {
    %c0_i32 = arith.constant 0 : i32
    %c0_i32_0 = arith.constant 0 : i32
    return %c0_i32 : i32
  }
  func.func @transform_2(%arg0: i32, %arg1: memref<5xi32, #tpu.memory_space<smem>>, %arg2: memref<5xi32, #tpu.memory_space<smem>>) -> i32 {
    %c0_i32 = arith.constant 0 : i32
    %c0_i32_0 = arith.constant 0 : i32
    return %c0_i32 : i32
  }
  func.func @transform_3(%arg0: i32, %arg1: memref<5xi32, #tpu.memory_space<smem>>, %arg2: memref<5xi32, #tpu.memory_space<smem>>) -> i32 {
    %c0_i32 = arith.constant 0 : i32
    %c0_i32_0 = arith.constant 0 : i32
    return %c0_i32 : i32
  }
  func.func @transform_4(%arg0: i32, %arg1: memref<5xi32, #tpu.memory_space<smem>>, %arg2: memref<5xi32, #tpu.memory_space<smem>>) -> (i32, i32, i32, i32) {
    %0 = arith.index_cast %arg0 : i32 to index
    %1 = memref.load %arg1[%0] : memref<5xi32, #tpu.memory_space<smem>>
    %2 = arith.index_cast %arg0 : i32 to index
    %3 = memref.load %arg2[%2] : memref<5xi32, #tpu.memory_space<smem>>
    %c0_i32 = arith.constant 0 : i32
    %c0_i32_0 = arith.constant 0 : i32
    %c0_i32_1 = arith.constant 0 : i32
    return %1, %3, %c0_i32, %c0_i32_0 : i32, i32, i32, i32
  }
  func.func @transform_5(%arg0: i32, %arg1: memref<5xi32, #tpu.memory_space<smem>>, %arg2: memref<5xi32, #tpu.memory_space<smem>>) -> (i32, i32, i32) {
    %c0_i32 = arith.constant 0 : i32
    %c0_i32_0 = arith.constant 0 : i32
    %c0_i32_1 = arith.constant 0 : i32
    return %arg0, %c0_i32, %c0_i32_0 : i32, i32, i32
  }
}

module attributes {stable_mosaic.version = 11 : i64} {
  func.func @kernel(%arg0: i32, %arg1: memref<5xi32, #tpu.memory_space<smem>>, %arg2: memref<5xi32, #tpu.memory_space<smem>>, %arg3: memref<80xf32, #tpu.memory_space<smem>>, %arg4: memref<2xf32, #tpu.memory_space<smem>>, %arg5: memref<2xf32, #tpu.memory_space<smem>>, %arg6: memref<2xf32, #tpu.memory_space<smem>>, %arg7: memref<1x1x16x64xf32, #tpu.memory_space<vmem>>, %arg8: memref<4x112x28xf32, #tpu.memory_space<vmem>>) attributes {dimension_semantics = [#tpu.dimension_semantics<parallel>], iteration_bounds = array<i64: 5>, scalar_prefetch = 2 : i64, scratch_operands = 0 : i64, tpu.core_type = #tpu.core_type<tc>, window_params = [{transform_indices = @transform_0, window_bounds = array<i64: 80>}, {transform_indices = @transform_1, window_bounds = array<i64: 2>}, {transform_indices = @transform_2, window_bounds = array<i64: 2>}, {transform_indices = @transform_3, window_bounds = array<i64: 2>}, {transform_indices = @transform_4, window_bounds = array<i64: 1, 1, 16, 64>}, {transform_indices = @transform_5, window_bounds = array<i64: 4, 112, 28>}]} {
    %0 = arith.index_cast %arg0 : i32 to index
    %1 = memref.load %arg1[%0] : memref<5xi32, #tpu.memory_space<smem>>
    %2 = arith.index_cast %1 : i32 to index
    %3 = memref.load %arg4[%2] : memref<2xf32, #tpu.memory_space<smem>>
    %4 = arith.index_cast %1 : i32 to index
    %5 = memref.load %arg5[%4] : memref<2xf32, #tpu.memory_space<smem>>
    %6 = arith.index_cast %1 : i32 to index
    %7 = memref.load %arg6[%6] : memref<2xf32, #tpu.memory_space<smem>>
    %c0 = arith.constant 0 : index
    %c0_0 = arith.constant 0 : index
    %c0_1 = arith.constant 0 : index
    %c0_2 = arith.constant 0 : index
    %8 = vector.load %arg7[%c0, %c0_0, %c0_1, %c0_2] : memref<1x1x16x64xf32, #tpu.memory_space<vmem>>, vector<1x1x16x64xf32>
    %9 = vector.shape_cast %8 : vector<1x1x16x64xf32> to vector<16x64xf32>
    %c4_i32 = arith.constant 4 : i32
    %10 = arith.muli %arg0, %c4_i32 : i32
    %c0_i32 = arith.constant 0 : i32
    %11 = arith.addi %10, %c0_i32 : i32
    %c4_i32_3 = arith.constant 4 : i32
    %12 = arith.muli %c4_i32_3, %11 : i32
    %c0_i32_4 = arith.constant 0 : i32
    %13 = arith.addi %12, %c0_i32_4 : i32
    %14 = arith.index_cast %13 : i32 to index
    %15 = memref.load %arg3[%14] : memref<80xf32, #tpu.memory_space<smem>>
    %16 = arith.mulf %15, %3 : f32
    %c1_i32 = arith.constant 1 : i32
    %17 = arith.addi %12, %c1_i32 : i32
    %18 = arith.index_cast %17 : i32 to index
    %19 = memref.load %arg3[%18] : memref<80xf32, #tpu.memory_space<smem>>
    %20 = arith.mulf %19, %3 : f32
    %c2_i32 = arith.constant 2 : i32
    %21 = arith.addi %12, %c2_i32 : i32
    %22 = arith.index_cast %21 : i32 to index
    %23 = memref.load %arg3[%22] : memref<80xf32, #tpu.memory_space<smem>>
    %24 = arith.mulf %23, %3 : f32
    %c3_i32 = arith.constant 3 : i32
    %25 = arith.addi %12, %c3_i32 : i32
    %26 = arith.index_cast %25 : i32 to index
    %27 = memref.load %arg3[%26] : memref<80xf32, #tpu.memory_space<smem>>
    %28 = arith.mulf %27, %3 : f32
    %29 = arith.subf %24, %16 : f32
    %cst = arith.constant 1.000000e+00 : f32
    %30 = arith.maximumf %29, %cst : f32
    %31 = arith.subf %28, %20 : f32
    %cst_5 = arith.constant 1.000000e+00 : f32
    %32 = arith.maximumf %31, %cst_5 : f32
    %cst_6 = arith.constant 2.800000e+01 : f32
    %33 = arith.divf %32, %cst_6 : f32
    %cst_7 = arith.constant 2.800000e+01 : f32
    %34 = arith.divf %30, %cst_7 : f32
    %c4_i32_8 = arith.constant 4 : i32
    %35 = arith.muli %arg0, %c4_i32_8 : i32
    %c1_i32_9 = arith.constant 1 : i32
    %36 = arith.addi %35, %c1_i32_9 : i32
    %c4_i32_10 = arith.constant 4 : i32
    %37 = arith.muli %c4_i32_10, %36 : i32
    %c0_i32_11 = arith.constant 0 : i32
    %38 = arith.addi %37, %c0_i32_11 : i32
    %39 = arith.index_cast %38 : i32 to index
    %40 = memref.load %arg3[%39] : memref<80xf32, #tpu.memory_space<smem>>
    %41 = arith.mulf %40, %3 : f32
    %c1_i32_12 = arith.constant 1 : i32
    %42 = arith.addi %37, %c1_i32_12 : i32
    %43 = arith.index_cast %42 : i32 to index
    %44 = memref.load %arg3[%43] : memref<80xf32, #tpu.memory_space<smem>>
    %45 = arith.mulf %44, %3 : f32
    %c2_i32_13 = arith.constant 2 : i32
    %46 = arith.addi %37, %c2_i32_13 : i32
    %47 = arith.index_cast %46 : i32 to index
    %48 = memref.load %arg3[%47] : memref<80xf32, #tpu.memory_space<smem>>
    %49 = arith.mulf %48, %3 : f32
    %c3_i32_14 = arith.constant 3 : i32
    %50 = arith.addi %37, %c3_i32_14 : i32
    %51 = arith.index_cast %50 : i32 to index
    %52 = memref.load %arg3[%51] : memref<80xf32, #tpu.memory_space<smem>>
    %53 = arith.mulf %52, %3 : f32
    %54 = arith.subf %49, %41 : f32
    %cst_15 = arith.constant 1.000000e+00 : f32
    %55 = arith.maximumf %54, %cst_15 : f32
    %56 = arith.subf %53, %45 : f32
    %cst_16 = arith.constant 1.000000e+00 : f32
    %57 = arith.maximumf %56, %cst_16 : f32
    %cst_17 = arith.constant 2.800000e+01 : f32
    %58 = arith.divf %57, %cst_17 : f32
    %cst_18 = arith.constant 2.800000e+01 : f32
    %59 = arith.divf %55, %cst_18 : f32
    %c4_i32_19 = arith.constant 4 : i32
    %60 = arith.muli %arg0, %c4_i32_19 : i32
    %c2_i32_20 = arith.constant 2 : i32
    %61 = arith.addi %60, %c2_i32_20 : i32
    %c4_i32_21 = arith.constant 4 : i32
    %62 = arith.muli %c4_i32_21, %61 : i32
    %c0_i32_22 = arith.constant 0 : i32
    %63 = arith.addi %62, %c0_i32_22 : i32
    %64 = arith.index_cast %63 : i32 to index
    %65 = memref.load %arg3[%64] : memref<80xf32, #tpu.memory_space<smem>>
    %66 = arith.mulf %65, %3 : f32
    %c1_i32_23 = arith.constant 1 : i32
    %67 = arith.addi %62, %c1_i32_23 : i32
    %68 = arith.index_cast %67 : i32 to index
    %69 = memref.load %arg3[%68] : memref<80xf32, #tpu.memory_space<smem>>
    %70 = arith.mulf %69, %3 : f32
    %c2_i32_24 = arith.constant 2 : i32
    %71 = arith.addi %62, %c2_i32_24 : i32
    %72 = arith.index_cast %71 : i32 to index
    %73 = memref.load %arg3[%72] : memref<80xf32, #tpu.memory_space<smem>>
    %74 = arith.mulf %73, %3 : f32
    %c3_i32_25 = arith.constant 3 : i32
    %75 = arith.addi %62, %c3_i32_25 : i32
    %76 = arith.index_cast %75 : i32 to index
    %77 = memref.load %arg3[%76] : memref<80xf32, #tpu.memory_space<smem>>
    %78 = arith.mulf %77, %3 : f32
    %79 = arith.subf %74, %66 : f32
    %cst_26 = arith.constant 1.000000e+00 : f32
    %80 = arith.maximumf %79, %cst_26 : f32
    %81 = arith.subf %78, %70 : f32
    %cst_27 = arith.constant 1.000000e+00 : f32
    %82 = arith.maximumf %81, %cst_27 : f32
    %cst_28 = arith.constant 2.800000e+01 : f32
    %83 = arith.divf %82, %cst_28 : f32
    %cst_29 = arith.constant 2.800000e+01 : f32
    %84 = arith.divf %80, %cst_29 : f32
    %c4_i32_30 = arith.constant 4 : i32
    %85 = arith.muli %arg0, %c4_i32_30 : i32
    %c3_i32_31 = arith.constant 3 : i32
    %86 = arith.addi %85, %c3_i32_31 : i32
    %c4_i32_32 = arith.constant 4 : i32
    %87 = arith.muli %c4_i32_32, %86 : i32
    %c0_i32_33 = arith.constant 0 : i32
    %88 = arith.addi %87, %c0_i32_33 : i32
    %89 = arith.index_cast %88 : i32 to index
    %90 = memref.load %arg3[%89] : memref<80xf32, #tpu.memory_space<smem>>
    %91 = arith.mulf %90, %3 : f32
    %c1_i32_34 = arith.constant 1 : i32
    %92 = arith.addi %87, %c1_i32_34 : i32
    %93 = arith.index_cast %92 : i32 to index
    %94 = memref.load %arg3[%93] : memref<80xf32, #tpu.memory_space<smem>>
    %95 = arith.mulf %94, %3 : f32
    %c2_i32_35 = arith.constant 2 : i32
    %96 = arith.addi %87, %c2_i32_35 : i32
    %97 = arith.index_cast %96 : i32 to index
    %98 = memref.load %arg3[%97] : memref<80xf32, #tpu.memory_space<smem>>
    %99 = arith.mulf %98, %3 : f32
    %c3_i32_36 = arith.constant 3 : i32
    %100 = arith.addi %87, %c3_i32_36 : i32
    %101 = arith.index_cast %100 : i32 to index
    %102 = memref.load %arg3[%101] : memref<80xf32, #tpu.memory_space<smem>>
    %103 = arith.mulf %102, %3 : f32
    %104 = arith.subf %99, %91 : f32
    %cst_37 = arith.constant 1.000000e+00 : f32
    %105 = arith.maximumf %104, %cst_37 : f32
    %106 = arith.subf %103, %95 : f32
    %cst_38 = arith.constant 1.000000e+00 : f32
    %107 = arith.maximumf %106, %cst_38 : f32
    %cst_39 = arith.constant 2.800000e+01 : f32
    %108 = arith.divf %107, %cst_39 : f32
    %cst_40 = arith.constant 2.800000e+01 : f32
    %109 = arith.divf %105, %cst_40 : f32
    %110 = tpu.iota {dimensions = array<i32: 0>} : vector<112x16xi32>
    %111 = tpu.iota {dimensions = array<i32: 1>} : vector<112x16xi32>
    %112 = arith.sitofp %111 : vector<112x16xi32> to vector<112x16xf32>
    %cst_41 = arith.constant 0.000000e+00 : f32
    %113 = vector.broadcast %cst_41 : f32 to vector<112x16xf32>
    %cst_42 = arith.constant 0.000000e+00 : f32
    %114 = vector.broadcast %cst_42 : f32 to vector<112x16xf32>
    %115 = arith.sitofp %110 : vector<112x16xi32> to vector<112x16xf32>
    %c0_i32_43 = arith.constant 0 : i32
    %116 = vector.broadcast %c0_i32_43 : i32 to vector<112x16xi32>
    %117 = arith.cmpi sge, %110, %116 : vector<112x16xi32>
    %c28_i32 = arith.constant 28 : i32
    %118 = vector.broadcast %c28_i32 : i32 to vector<112x16xi32>
    %119 = arith.cmpi slt, %110, %118 : vector<112x16xi32>
    %120 = arith.andi %117, %119 : vector<112x16xi1>
    %121 = arith.extui %120 : vector<112x16xi1> to vector<112x16xi32>
    %122 = arith.sitofp %121 : vector<112x16xi32> to vector<112x16xf32>
    %123 = vector.broadcast %20 : f32 to vector<112x16xf32>
    %124 = arith.mulf %122, %123 : vector<112x16xf32>
    %125 = arith.addf %113, %124 : vector<112x16xf32>
    %126 = vector.broadcast %33 : f32 to vector<112x16xf32>
    %127 = arith.mulf %122, %126 : vector<112x16xf32>
    %128 = arith.addf %114, %127 : vector<112x16xf32>
    %cst_44 = arith.constant 0.000000e+00 : f32
    %129 = vector.broadcast %cst_44 : f32 to vector<112x16xf32>
    %130 = arith.mulf %122, %129 : vector<112x16xf32>
    %131 = arith.subf %115, %130 : vector<112x16xf32>
    %c28_i32_45 = arith.constant 28 : i32
    %132 = vector.broadcast %c28_i32_45 : i32 to vector<112x16xi32>
    %133 = arith.cmpi sge, %110, %132 : vector<112x16xi32>
    %c56_i32 = arith.constant 56 : i32
    %134 = vector.broadcast %c56_i32 : i32 to vector<112x16xi32>
    %135 = arith.cmpi slt, %110, %134 : vector<112x16xi32>
    %136 = arith.andi %133, %135 : vector<112x16xi1>
    %137 = arith.extui %136 : vector<112x16xi1> to vector<112x16xi32>
    %138 = arith.sitofp %137 : vector<112x16xi32> to vector<112x16xf32>
    %139 = vector.broadcast %45 : f32 to vector<112x16xf32>
    %140 = arith.mulf %138, %139 : vector<112x16xf32>
    %141 = arith.addf %125, %140 : vector<112x16xf32>
    %142 = vector.broadcast %58 : f32 to vector<112x16xf32>
    %143 = arith.mulf %138, %142 : vector<112x16xf32>
    %144 = arith.addf %128, %143 : vector<112x16xf32>
    %cst_46 = arith.constant 2.800000e+01 : f32
    %145 = vector.broadcast %cst_46 : f32 to vector<112x16xf32>
    %146 = arith.mulf %138, %145 : vector<112x16xf32>
    %147 = arith.subf %131, %146 : vector<112x16xf32>
    %c56_i32_47 = arith.constant 56 : i32
    %148 = vector.broadcast %c56_i32_47 : i32 to vector<112x16xi32>
    %149 = arith.cmpi sge, %110, %148 : vector<112x16xi32>
    %c84_i32 = arith.constant 84 : i32
    %150 = vector.broadcast %c84_i32 : i32 to vector<112x16xi32>
    %151 = arith.cmpi slt, %110, %150 : vector<112x16xi32>
    %152 = arith.andi %149, %151 : vector<112x16xi1>
    %153 = arith.extui %152 : vector<112x16xi1> to vector<112x16xi32>
    %154 = arith.sitofp %153 : vector<112x16xi32> to vector<112x16xf32>
    %155 = vector.broadcast %70 : f32 to vector<112x16xf32>
    %156 = arith.mulf %154, %155 : vector<112x16xf32>
    %157 = arith.addf %141, %156 : vector<112x16xf32>
    %158 = vector.broadcast %83 : f32 to vector<112x16xf32>
    %159 = arith.mulf %154, %158 : vector<112x16xf32>
    %160 = arith.addf %144, %159 : vector<112x16xf32>
    %cst_48 = arith.constant 5.600000e+01 : f32
    %161 = vector.broadcast %cst_48 : f32 to vector<112x16xf32>
    %162 = arith.mulf %154, %161 : vector<112x16xf32>
    %163 = arith.subf %147, %162 : vector<112x16xf32>
    %c84_i32_49 = arith.constant 84 : i32
    %164 = vector.broadcast %c84_i32_49 : i32 to vector<112x16xi32>
    %165 = arith.cmpi sge, %110, %164 : vector<112x16xi32>
    %c112_i32 = arith.constant 112 : i32
    %166 = vector.broadcast %c112_i32 : i32 to vector<112x16xi32>
    %167 = arith.cmpi slt, %110, %166 : vector<112x16xi32>
    %168 = arith.andi %165, %167 : vector<112x16xi1>
    %169 = arith.extui %168 : vector<112x16xi1> to vector<112x16xi32>
    %170 = arith.sitofp %169 : vector<112x16xi32> to vector<112x16xf32>
    %171 = vector.broadcast %95 : f32 to vector<112x16xf32>
    %172 = arith.mulf %170, %171 : vector<112x16xf32>
    %173 = arith.addf %157, %172 : vector<112x16xf32>
    %174 = vector.broadcast %108 : f32 to vector<112x16xf32>
    %175 = arith.mulf %170, %174 : vector<112x16xf32>
    %176 = arith.addf %160, %175 : vector<112x16xf32>
    %cst_50 = arith.constant 8.400000e+01 : f32
    %177 = vector.broadcast %cst_50 : f32 to vector<112x16xf32>
    %178 = arith.mulf %170, %177 : vector<112x16xf32>
    %179 = arith.subf %163, %178 : vector<112x16xf32>
    %cst_51 = arith.constant 0.000000e+00 : f32
    %180 = vector.broadcast %cst_51 : f32 to vector<112x16xf32>
    %181 = arith.mulf %179, %176 : vector<112x16xf32>
    %182 = arith.addf %173, %181 : vector<112x16xf32>
    %cst_52 = arith.constant 2.000000e+00 : f32
    %183 = vector.broadcast %cst_52 : f32 to vector<112x16xf32>
    %184 = arith.divf %176, %183 : vector<112x16xf32>
    %cst_53 = arith.constant 5.000000e-01 : f32
    %185 = vector.broadcast %cst_53 : f32 to vector<112x16xf32>
    %186 = arith.mulf %185, %184 : vector<112x16xf32>
    %187 = arith.addf %182, %186 : vector<112x16xf32>
    %cst_54 = arith.constant -1.000000e+00 : f32
    %188 = vector.broadcast %cst_54 : f32 to vector<112x16xf32>
    %189 = arith.cmpf oge, %187, %188 : vector<112x16xf32>
    %190 = vector.broadcast %5 : f32 to vector<112x16xf32>
    %191 = arith.cmpf ole, %187, %190 : vector<112x16xf32>
    %192 = arith.andi %189, %191 : vector<112x16xi1>
    %cst_55 = arith.constant 1.000000e+00 : f32
    %193 = arith.subf %5, %cst_55 : f32
    %cst_56 = arith.constant 0.000000e+00 : f32
    %194 = vector.broadcast %cst_56 : f32 to vector<112x16xf32>
    %195 = arith.maximumf %194, %187 : vector<112x16xf32>
    %196 = vector.broadcast %193 : f32 to vector<112x16xf32>
    %197 = arith.minimumf %196, %195 : vector<112x16xf32>
    %198 = arith.subf %197, %112 : vector<112x16xf32>
    %199 = math.absf %198 : vector<112x16xf32>
    %cst_57 = arith.constant 1.000000e+00 : f32
    %200 = vector.broadcast %cst_57 : f32 to vector<112x16xf32>
    %201 = arith.subf %200, %199 : vector<112x16xf32>
    %cst_58 = arith.constant 0.000000e+00 : f32
    %202 = vector.broadcast %cst_58 : f32 to vector<112x16xf32>
    %203 = arith.maximumf %202, %201 : vector<112x16xf32>
    %204 = arith.extui %192 : vector<112x16xi1> to vector<112x16xi32>
    %205 = arith.sitofp %204 : vector<112x16xi32> to vector<112x16xf32>
    %206 = arith.mulf %203, %205 : vector<112x16xf32>
    %207 = arith.addf %180, %206 : vector<112x16xf32>
    %208 = arith.mulf %179, %176 : vector<112x16xf32>
    %209 = arith.addf %173, %208 : vector<112x16xf32>
    %cst_59 = arith.constant 2.000000e+00 : f32
    %210 = vector.broadcast %cst_59 : f32 to vector<112x16xf32>
    %211 = arith.divf %176, %210 : vector<112x16xf32>
    %cst_60 = arith.constant 1.500000e+00 : f32
    %212 = vector.broadcast %cst_60 : f32 to vector<112x16xf32>
    %213 = arith.mulf %212, %211 : vector<112x16xf32>
    %214 = arith.addf %209, %213 : vector<112x16xf32>
    %cst_61 = arith.constant -1.000000e+00 : f32
    %215 = vector.broadcast %cst_61 : f32 to vector<112x16xf32>
    %216 = arith.cmpf oge, %214, %215 : vector<112x16xf32>
    %217 = vector.broadcast %5 : f32 to vector<112x16xf32>
    %218 = arith.cmpf ole, %214, %217 : vector<112x16xf32>
    %219 = arith.andi %216, %218 : vector<112x16xi1>
    %cst_62 = arith.constant 1.000000e+00 : f32
    %220 = arith.subf %5, %cst_62 : f32
    %cst_63 = arith.constant 0.000000e+00 : f32
    %221 = vector.broadcast %cst_63 : f32 to vector<112x16xf32>
    %222 = arith.maximumf %221, %214 : vector<112x16xf32>
    %223 = vector.broadcast %220 : f32 to vector<112x16xf32>
    %224 = arith.minimumf %223, %222 : vector<112x16xf32>
    %225 = arith.subf %224, %112 : vector<112x16xf32>
    %226 = math.absf %225 : vector<112x16xf32>
    %cst_64 = arith.constant 1.000000e+00 : f32
    %227 = vector.broadcast %cst_64 : f32 to vector<112x16xf32>
    %228 = arith.subf %227, %226 : vector<112x16xf32>
    %cst_65 = arith.constant 0.000000e+00 : f32
    %229 = vector.broadcast %cst_65 : f32 to vector<112x16xf32>
    %230 = arith.maximumf %229, %228 : vector<112x16xf32>
    %231 = arith.extui %219 : vector<112x16xi1> to vector<112x16xi32>
    %232 = arith.sitofp %231 : vector<112x16xi32> to vector<112x16xf32>
    %233 = arith.mulf %230, %232 : vector<112x16xf32>
    %234 = arith.addf %207, %233 : vector<112x16xf32>
    %cst_66 = arith.constant 5.000000e-01 : f32
    %235 = vector.broadcast %cst_66 : f32 to vector<112x16xf32>
    %236 = arith.mulf %234, %235 : vector<112x16xf32>
    %cst_67 = arith.constant dense<0.000000e+00> : vector<112x64xf32>
    %237 = tpu.matmul %236, %9, %cst_67 {dimension_numbers = #tpu.dot_dimension_numbers<[1], [0], [0], [1], [0, 0, 1, 1], [], []>} : vector<112x16xf32>, vector<16x64xf32>, vector<112x64xf32> -> vector<112x64xf32>
    %238 = tpu.iota {dimensions = array<i32: 0>} : vector<16x28xi32>
    %239 = arith.sitofp %238 : vector<16x28xi32> to vector<16x28xf32>
    %240 = tpu.iota {dimensions = array<i32: 1>} : vector<16x28xi32>
    %241 = arith.sitofp %240 : vector<16x28xi32> to vector<16x28xf32>
    %cst_68 = arith.constant 0.000000e+00 : f32
    %242 = vector.broadcast %cst_68 : f32 to vector<16x28xf32>
    %243 = vector.broadcast %34 : f32 to vector<16x28xf32>
    %244 = arith.mulf %241, %243 : vector<16x28xf32>
    %245 = vector.broadcast %16 : f32 to vector<16x28xf32>
    %246 = arith.addf %245, %244 : vector<16x28xf32>
    %cst_69 = arith.constant 2.000000e+00 : f32
    %247 = arith.divf %34, %cst_69 : f32
    %cst_70 = arith.constant 5.000000e-01 : f32
    %248 = arith.mulf %cst_70, %247 : f32
    %249 = vector.broadcast %248 : f32 to vector<16x28xf32>
    %250 = arith.addf %246, %249 : vector<16x28xf32>
    %cst_71 = arith.constant -1.000000e+00 : f32
    %251 = vector.broadcast %cst_71 : f32 to vector<16x28xf32>
    %252 = arith.cmpf oge, %250, %251 : vector<16x28xf32>
    %253 = vector.broadcast %7 : f32 to vector<16x28xf32>
    %254 = arith.cmpf ole, %250, %253 : vector<16x28xf32>
    %255 = arith.andi %252, %254 : vector<16x28xi1>
    %cst_72 = arith.constant 1.000000e+00 : f32
    %256 = arith.subf %7, %cst_72 : f32
    %cst_73 = arith.constant 0.000000e+00 : f32
    %257 = vector.broadcast %cst_73 : f32 to vector<16x28xf32>
    %258 = arith.maximumf %257, %250 : vector<16x28xf32>
    %259 = vector.broadcast %256 : f32 to vector<16x28xf32>
    %260 = arith.minimumf %259, %258 : vector<16x28xf32>
    %261 = arith.subf %260, %239 : vector<16x28xf32>
    %262 = math.absf %261 : vector<16x28xf32>
    %cst_74 = arith.constant 1.000000e+00 : f32
    %263 = vector.broadcast %cst_74 : f32 to vector<16x28xf32>
    %264 = arith.subf %263, %262 : vector<16x28xf32>
    %cst_75 = arith.constant 0.000000e+00 : f32
    %265 = vector.broadcast %cst_75 : f32 to vector<16x28xf32>
    %266 = arith.maximumf %265, %264 : vector<16x28xf32>
    %267 = arith.extui %255 : vector<16x28xi1> to vector<16x28xi32>
    %268 = arith.sitofp %267 : vector<16x28xi32> to vector<16x28xf32>
    %269 = arith.mulf %266, %268 : vector<16x28xf32>
    %270 = arith.addf %242, %269 : vector<16x28xf32>
    %271 = vector.broadcast %34 : f32 to vector<16x28xf32>
    %272 = arith.mulf %241, %271 : vector<16x28xf32>
    %273 = vector.broadcast %16 : f32 to vector<16x28xf32>
    %274 = arith.addf %273, %272 : vector<16x28xf32>
    %cst_76 = arith.constant 2.000000e+00 : f32
    %275 = arith.divf %34, %cst_76 : f32
    %cst_77 = arith.constant 1.500000e+00 : f32
    %276 = arith.mulf %cst_77, %275 : f32
    %277 = vector.broadcast %276 : f32 to vector<16x28xf32>
    %278 = arith.addf %274, %277 : vector<16x28xf32>
    %cst_78 = arith.constant -1.000000e+00 : f32
    %279 = vector.broadcast %cst_78 : f32 to vector<16x28xf32>
    %280 = arith.cmpf oge, %278, %279 : vector<16x28xf32>
    %281 = vector.broadcast %7 : f32 to vector<16x28xf32>
    %282 = arith.cmpf ole, %278, %281 : vector<16x28xf32>
    %283 = arith.andi %280, %282 : vector<16x28xi1>
    %cst_79 = arith.constant 1.000000e+00 : f32
    %284 = arith.subf %7, %cst_79 : f32
    %cst_80 = arith.constant 0.000000e+00 : f32
    %285 = vector.broadcast %cst_80 : f32 to vector<16x28xf32>
    %286 = arith.maximumf %285, %278 : vector<16x28xf32>
    %287 = vector.broadcast %284 : f32 to vector<16x28xf32>
    %288 = arith.minimumf %287, %286 : vector<16x28xf32>
    %289 = arith.subf %288, %239 : vector<16x28xf32>
    %290 = math.absf %289 : vector<16x28xf32>
    %cst_81 = arith.constant 1.000000e+00 : f32
    %291 = vector.broadcast %cst_81 : f32 to vector<16x28xf32>
    %292 = arith.subf %291, %290 : vector<16x28xf32>
    %cst_82 = arith.constant 0.000000e+00 : f32
    %293 = vector.broadcast %cst_82 : f32 to vector<16x28xf32>
    %294 = arith.maximumf %293, %292 : vector<16x28xf32>
    %295 = arith.extui %283 : vector<16x28xi1> to vector<16x28xi32>
    %296 = arith.sitofp %295 : vector<16x28xi32> to vector<16x28xf32>
    %297 = arith.mulf %294, %296 : vector<16x28xf32>
    %298 = arith.addf %270, %297 : vector<16x28xf32>
    %cst_83 = arith.constant 5.000000e-01 : f32
    %299 = vector.broadcast %cst_83 : f32 to vector<16x28xf32>
    %300 = arith.mulf %298, %299 : vector<16x28xf32>
    %301 = vector.extract_strided_slice %237 {offsets = [0, 0], sizes = [28, 64], strides = [1, 1]} : vector<112x64xf32> to vector<28x64xf32>
    %302 = vector.extract_strided_slice %301 {offsets = [0, 0], sizes = [28, 16], strides = [1, 1]} : vector<28x64xf32> to vector<28x16xf32>
    %cst_84 = arith.constant dense<0.000000e+00> : vector<28x28xf32>
    %303 = tpu.matmul %302, %300, %cst_84 {dimension_numbers = #tpu.dot_dimension_numbers<[1], [0], [0], [1], [0, 0, 1, 1], [], []>} : vector<28x16xf32>, vector<16x28xf32>, vector<28x28xf32> -> vector<28x28xf32>
    %c0_85 = arith.constant 0 : index
    %c0_86 = arith.constant 0 : index
    %c0_87 = arith.constant 0 : index
    %304 = vector.load %arg8[%c0_85, %c0_86, %c0_87] : memref<4x112x28xf32, #tpu.memory_space<vmem>>, vector<1x28x28xf32>
    %305 = vector.shape_cast %304 : vector<1x28x28xf32> to vector<28x28xf32>
    %306 = vector.shape_cast %303 : vector<28x28xf32> to vector<1x28x28xf32>
    tpu.vector_store %arg8[%c0_85, %c0_86, %c0_87], %306 {strides = array<i32>} : memref<4x112x28xf32, #tpu.memory_space<vmem>>, vector<1x28x28xf32>,
    %307 = vector.extract_strided_slice %301 {offsets = [0, 16], sizes = [28, 16], strides = [1, 1]} : vector<28x64xf32> to vector<28x16xf32>
    %cst_88 = arith.constant dense<0.000000e+00> : vector<28x28xf32>
    %308 = tpu.matmul %307, %300, %cst_88 {dimension_numbers = #tpu.dot_dimension_numbers<[1], [0], [0], [1], [0, 0, 1, 1], [], []>} : vector<28x16xf32>, vector<16x28xf32>, vector<28x28xf32> -> vector<28x28xf32>
    %c0_89 = arith.constant 0 : index
    %c28 = arith.constant 28 : index
    %c0_90 = arith.constant 0 : index
    %309 = vector.load %arg8[%c0_89, %c28, %c0_90] : memref<4x112x28xf32, #tpu.memory_space<vmem>>, vector<1x28x28xf32>
    %310 = vector.shape_cast %309 : vector<1x28x28xf32> to vector<28x28xf32>
    %311 = vector.shape_cast %308 : vector<28x28xf32> to vector<1x28x28xf32>
    tpu.vector_store %arg8[%c0_89, %c28, %c0_90], %311 {strides = array<i32>} : memref<4x112x28xf32, #tpu.memory_space<vmem>>, vector<1x28x28xf32>,
    %312 = vector.extract_strided_slice %301 {offsets = [0, 32], sizes = [28, 16], strides = [1, 1]} : vector<28x64xf32> to vector<28x16xf32>
    %cst_91 = arith.constant dense<0.000000e+00> : vector<28x28xf32>
    %313 = tpu.matmul %312, %300, %cst_91 {dimension_numbers = #tpu.dot_dimension_numbers<[1], [0], [0], [1], [0, 0, 1, 1], [], []>} : vector<28x16xf32>, vector<16x28xf32>, vector<28x28xf32> -> vector<28x28xf32>
    %c0_92 = arith.constant 0 : index
    %c56 = arith.constant 56 : index
    %c0_93 = arith.constant 0 : index
    %314 = vector.load %arg8[%c0_92, %c56, %c0_93] : memref<4x112x28xf32, #tpu.memory_space<vmem>>, vector<1x28x28xf32>
    %315 = vector.shape_cast %314 : vector<1x28x28xf32> to vector<28x28xf32>
    %316 = vector.shape_cast %313 : vector<28x28xf32> to vector<1x28x28xf32>
    tpu.vector_store %arg8[%c0_92, %c56, %c0_93], %316 {strides = array<i32>} : memref<4x112x28xf32, #tpu.memory_space<vmem>>, vector<1x28x28xf32>,
    %317 = vector.extract_strided_slice %301 {offsets = [0, 48], sizes = [28, 16], strides = [1, 1]} : vector<28x64xf32> to vector<28x16xf32>
    %cst_94 = arith.constant dense<0.000000e+00> : vector<28x28xf32>
    %318 = tpu.matmul %317, %300, %cst_94 {dimension_numbers = #tpu.dot_dimension_numbers<[1], [0], [0], [1], [0, 0, 1, 1], [], []>} : vector<28x16xf32>, vector<16x28xf32>, vector<28x28xf32> -> vector<28x28xf32>
    %c0_95 = arith.constant 0 : index
    %c84 = arith.constant 84 : index
    %c0_96 = arith.constant 0 : index
    %319 = vector.load %arg8[%c0_95, %c84, %c0_96] : memref<4x112x28xf32, #tpu.memory_space<vmem>>, vector<1x28x28xf32>
    %320 = vector.shape_cast %319 : vector<1x28x28xf32> to vector<28x28xf32>
    %321 = vector.shape_cast %318 : vector<28x28xf32> to vector<1x28x28xf32>
    tpu.vector_store %arg8[%c0_95, %c84, %c0_96], %321 {strides = array<i32>} : memref<4x112x28xf32, #tpu.memory_space<vmem>>, vector<1x28x28xf32>,
    %cst_97 = arith.constant 0.000000e+00 : f32
    %322 = vector.broadcast %cst_97 : f32 to vector<16x28xf32>
    %323 = vector.broadcast %59 : f32 to vector<16x28xf32>
    %324 = arith.mulf %241, %323 : vector<16x28xf32>
    %325 = vector.broadcast %41 : f32 to vector<16x28xf32>
    %326 = arith.addf %325, %324 : vector<16x28xf32>
    %cst_98 = arith.constant 2.000000e+00 : f32
    %327 = arith.divf %59, %cst_98 : f32
    %cst_99 = arith.constant 5.000000e-01 : f32
    %328 = arith.mulf %cst_99, %327 : f32
    %329 = vector.broadcast %328 : f32 to vector<16x28xf32>
    %330 = arith.addf %326, %329 : vector<16x28xf32>
    %cst_100 = arith.constant -1.000000e+00 : f32
    %331 = vector.broadcast %cst_100 : f32 to vector<16x28xf32>
    %332 = arith.cmpf oge, %330, %331 : vector<16x28xf32>
    %333 = vector.broadcast %7 : f32 to vector<16x28xf32>
    %334 = arith.cmpf ole, %330, %333 : vector<16x28xf32>
    %335 = arith.andi %332, %334 : vector<16x28xi1>
    %cst_101 = arith.constant 1.000000e+00 : f32
    %336 = arith.subf %7, %cst_101 : f32
    %cst_102 = arith.constant 0.000000e+00 : f32
    %337 = vector.broadcast %cst_102 : f32 to vector<16x28xf32>
    %338 = arith.maximumf %337, %330 : vector<16x28xf32>
    %339 = vector.broadcast %336 : f32 to vector<16x28xf32>
    %340 = arith.minimumf %339, %338 : vector<16x28xf32>
    %341 = arith.subf %340, %239 : vector<16x28xf32>
    %342 = math.absf %341 : vector<16x28xf32>
    %cst_103 = arith.constant 1.000000e+00 : f32
    %343 = vector.broadcast %cst_103 : f32 to vector<16x28xf32>
    %344 = arith.subf %343, %342 : vector<16x28xf32>
    %cst_104 = arith.constant 0.000000e+00 : f32
    %345 = vector.broadcast %cst_104 : f32 to vector<16x28xf32>
    %346 = arith.maximumf %345, %344 : vector<16x28xf32>
    %347 = arith.extui %335 : vector<16x28xi1> to vector<16x28xi32>
    %348 = arith.sitofp %347 : vector<16x28xi32> to vector<16x28xf32>
    %349 = arith.mulf %346, %348 : vector<16x28xf32>
    %350 = arith.addf %322, %349 : vector<16x28xf32>
    %351 = vector.broadcast %59 : f32 to vector<16x28xf32>
    %352 = arith.mulf %241, %351 : vector<16x28xf32>
    %353 = vector.broadcast %41 : f32 to vector<16x28xf32>
    %354 = arith.addf %353, %352 : vector<16x28xf32>
    %cst_105 = arith.constant 2.000000e+00 : f32
    %355 = arith.divf %59, %cst_105 : f32
    %cst_106 = arith.constant 1.500000e+00 : f32
    %356 = arith.mulf %cst_106, %355 : f32
    %357 = vector.broadcast %356 : f32 to vector<16x28xf32>
    %358 = arith.addf %354, %357 : vector<16x28xf32>
    %cst_107 = arith.constant -1.000000e+00 : f32
    %359 = vector.broadcast %cst_107 : f32 to vector<16x28xf32>
    %360 = arith.cmpf oge, %358, %359 : vector<16x28xf32>
    %361 = vector.broadcast %7 : f32 to vector<16x28xf32>
    %362 = arith.cmpf ole, %358, %361 : vector<16x28xf32>
    %363 = arith.andi %360, %362 : vector<16x28xi1>
    %cst_108 = arith.constant 1.000000e+00 : f32
    %364 = arith.subf %7, %cst_108 : f32
    %cst_109 = arith.constant 0.000000e+00 : f32
    %365 = vector.broadcast %cst_109 : f32 to vector<16x28xf32>
    %366 = arith.maximumf %365, %358 : vector<16x28xf32>
    %367 = vector.broadcast %364 : f32 to vector<16x28xf32>
    %368 = arith.minimumf %367, %366 : vector<16x28xf32>
    %369 = arith.subf %368, %239 : vector<16x28xf32>
    %370 = math.absf %369 : vector<16x28xf32>
    %cst_110 = arith.constant 1.000000e+00 : f32
    %371 = vector.broadcast %cst_110 : f32 to vector<16x28xf32>
    %372 = arith.subf %371, %370 : vector<16x28xf32>
    %cst_111 = arith.constant 0.000000e+00 : f32
    %373 = vector.broadcast %cst_111 : f32 to vector<16x28xf32>
    %374 = arith.maximumf %373, %372 : vector<16x28xf32>
    %375 = arith.extui %363 : vector<16x28xi1> to vector<16x28xi32>
    %376 = arith.sitofp %375 : vector<16x28xi32> to vector<16x28xf32>
    %377 = arith.mulf %374, %376 : vector<16x28xf32>
    %378 = arith.addf %350, %377 : vector<16x28xf32>
    %cst_112 = arith.constant 5.000000e-01 : f32
    %379 = vector.broadcast %cst_112 : f32 to vector<16x28xf32>
    %380 = arith.mulf %378, %379 : vector<16x28xf32>
    %381 = vector.extract_strided_slice %237 {offsets = [28, 0], sizes = [28, 64], strides = [1, 1]} : vector<112x64xf32> to vector<28x64xf32>
    %382 = vector.extract_strided_slice %381 {offsets = [0, 0], sizes = [28, 16], strides = [1, 1]} : vector<28x64xf32> to vector<28x16xf32>
    %cst_113 = arith.constant dense<0.000000e+00> : vector<28x28xf32>
    %383 = tpu.matmul %382, %380, %cst_113 {dimension_numbers = #tpu.dot_dimension_numbers<[1], [0], [0], [1], [0, 0, 1, 1], [], []>} : vector<28x16xf32>, vector<16x28xf32>, vector<28x28xf32> -> vector<28x28xf32>
    %c1 = arith.constant 1 : index
    %c0_114 = arith.constant 0 : index
    %c0_115 = arith.constant 0 : index
    %384 = vector.load %arg8[%c1, %c0_114, %c0_115] : memref<4x112x28xf32, #tpu.memory_space<vmem>>, vector<1x28x28xf32>
    %385 = vector.shape_cast %384 : vector<1x28x28xf32> to vector<28x28xf32>
    %386 = vector.shape_cast %383 : vector<28x28xf32> to vector<1x28x28xf32>
    tpu.vector_store %arg8[%c1, %c0_114, %c0_115], %386 {strides = array<i32>} : memref<4x112x28xf32, #tpu.memory_space<vmem>>, vector<1x28x28xf32>,
    %387 = vector.extract_strided_slice %381 {offsets = [0, 16], sizes = [28, 16], strides = [1, 1]} : vector<28x64xf32> to vector<28x16xf32>
    %cst_116 = arith.constant dense<0.000000e+00> : vector<28x28xf32>
    %388 = tpu.matmul %387, %380, %cst_116 {dimension_numbers = #tpu.dot_dimension_numbers<[1], [0], [0], [1], [0, 0, 1, 1], [], []>} : vector<28x16xf32>, vector<16x28xf32>, vector<28x28xf32> -> vector<28x28xf32>
    %c1_117 = arith.constant 1 : index
    %c28_118 = arith.constant 28 : index
    %c0_119 = arith.constant 0 : index
    %389 = vector.load %arg8[%c1_117, %c28_118, %c0_119] : memref<4x112x28xf32, #tpu.memory_space<vmem>>, vector<1x28x28xf32>
    %390 = vector.shape_cast %389 : vector<1x28x28xf32> to vector<28x28xf32>
    %391 = vector.shape_cast %388 : vector<28x28xf32> to vector<1x28x28xf32>
    tpu.vector_store %arg8[%c1_117, %c28_118, %c0_119], %391 {strides = array<i32>} : memref<4x112x28xf32, #tpu.memory_space<vmem>>, vector<1x28x28xf32>,
    %392 = vector.extract_strided_slice %381 {offsets = [0, 32], sizes = [28, 16], strides = [1, 1]} : vector<28x64xf32> to vector<28x16xf32>
    %cst_120 = arith.constant dense<0.000000e+00> : vector<28x28xf32>
    %393 = tpu.matmul %392, %380, %cst_120 {dimension_numbers = #tpu.dot_dimension_numbers<[1], [0], [0], [1], [0, 0, 1, 1], [], []>} : vector<28x16xf32>, vector<16x28xf32>, vector<28x28xf32> -> vector<28x28xf32>
    %c1_121 = arith.constant 1 : index
    %c56_122 = arith.constant 56 : index
    %c0_123 = arith.constant 0 : index
    %394 = vector.load %arg8[%c1_121, %c56_122, %c0_123] : memref<4x112x28xf32, #tpu.memory_space<vmem>>, vector<1x28x28xf32>
    %395 = vector.shape_cast %394 : vector<1x28x28xf32> to vector<28x28xf32>
    %396 = vector.shape_cast %393 : vector<28x28xf32> to vector<1x28x28xf32>
    tpu.vector_store %arg8[%c1_121, %c56_122, %c0_123], %396 {strides = array<i32>} : memref<4x112x28xf32, #tpu.memory_space<vmem>>, vector<1x28x28xf32>,
    %397 = vector.extract_strided_slice %381 {offsets = [0, 48], sizes = [28, 16], strides = [1, 1]} : vector<28x64xf32> to vector<28x16xf32>
    %cst_124 = arith.constant dense<0.000000e+00> : vector<28x28xf32>
    %398 = tpu.matmul %397, %380, %cst_124 {dimension_numbers = #tpu.dot_dimension_numbers<[1], [0], [0], [1], [0, 0, 1, 1], [], []>} : vector<28x16xf32>, vector<16x28xf32>, vector<28x28xf32> -> vector<28x28xf32>
    %c1_125 = arith.constant 1 : index
    %c84_126 = arith.constant 84 : index
    %c0_127 = arith.constant 0 : index
    %399 = vector.load %arg8[%c1_125, %c84_126, %c0_127] : memref<4x112x28xf32, #tpu.memory_space<vmem>>, vector<1x28x28xf32>
    %400 = vector.shape_cast %399 : vector<1x28x28xf32> to vector<28x28xf32>
    %401 = vector.shape_cast %398 : vector<28x28xf32> to vector<1x28x28xf32>
    tpu.vector_store %arg8[%c1_125, %c84_126, %c0_127], %401 {strides = array<i32>} : memref<4x112x28xf32, #tpu.memory_space<vmem>>, vector<1x28x28xf32>,
    %cst_128 = arith.constant 0.000000e+00 : f32
    %402 = vector.broadcast %cst_128 : f32 to vector<16x28xf32>
    %403 = vector.broadcast %84 : f32 to vector<16x28xf32>
    %404 = arith.mulf %241, %403 : vector<16x28xf32>
    %405 = vector.broadcast %66 : f32 to vector<16x28xf32>
    %406 = arith.addf %405, %404 : vector<16x28xf32>
    %cst_129 = arith.constant 2.000000e+00 : f32
    %407 = arith.divf %84, %cst_129 : f32
    %cst_130 = arith.constant 5.000000e-01 : f32
    %408 = arith.mulf %cst_130, %407 : f32
    %409 = vector.broadcast %408 : f32 to vector<16x28xf32>
    %410 = arith.addf %406, %409 : vector<16x28xf32>
    %cst_131 = arith.constant -1.000000e+00 : f32
    %411 = vector.broadcast %cst_131 : f32 to vector<16x28xf32>
    %412 = arith.cmpf oge, %410, %411 : vector<16x28xf32>
    %413 = vector.broadcast %7 : f32 to vector<16x28xf32>
    %414 = arith.cmpf ole, %410, %413 : vector<16x28xf32>
    %415 = arith.andi %412, %414 : vector<16x28xi1>
    %cst_132 = arith.constant 1.000000e+00 : f32
    %416 = arith.subf %7, %cst_132 : f32
    %cst_133 = arith.constant 0.000000e+00 : f32
    %417 = vector.broadcast %cst_133 : f32 to vector<16x28xf32>
    %418 = arith.maximumf %417, %410 : vector<16x28xf32>
    %419 = vector.broadcast %416 : f32 to vector<16x28xf32>
    %420 = arith.minimumf %419, %418 : vector<16x28xf32>
    %421 = arith.subf %420, %239 : vector<16x28xf32>
    %422 = math.absf %421 : vector<16x28xf32>
    %cst_134 = arith.constant 1.000000e+00 : f32
    %423 = vector.broadcast %cst_134 : f32 to vector<16x28xf32>
    %424 = arith.subf %423, %422 : vector<16x28xf32>
    %cst_135 = arith.constant 0.000000e+00 : f32
    %425 = vector.broadcast %cst_135 : f32 to vector<16x28xf32>
    %426 = arith.maximumf %425, %424 : vector<16x28xf32>
    %427 = arith.extui %415 : vector<16x28xi1> to vector<16x28xi32>
    %428 = arith.sitofp %427 : vector<16x28xi32> to vector<16x28xf32>
    %429 = arith.mulf %426, %428 : vector<16x28xf32>
    %430 = arith.addf %402, %429 : vector<16x28xf32>
    %431 = vector.broadcast %84 : f32 to vector<16x28xf32>
    %432 = arith.mulf %241, %431 : vector<16x28xf32>
    %433 = vector.broadcast %66 : f32 to vector<16x28xf32>
    %434 = arith.addf %433, %432 : vector<16x28xf32>
    %cst_136 = arith.constant 2.000000e+00 : f32
    %435 = arith.divf %84, %cst_136 : f32
    %cst_137 = arith.constant 1.500000e+00 : f32
    %436 = arith.mulf %cst_137, %435 : f32
    %437 = vector.broadcast %436 : f32 to vector<16x28xf32>
    %438 = arith.addf %434, %437 : vector<16x28xf32>
    %cst_138 = arith.constant -1.000000e+00 : f32
    %439 = vector.broadcast %cst_138 : f32 to vector<16x28xf32>
    %440 = arith.cmpf oge, %438, %439 : vector<16x28xf32>
    %441 = vector.broadcast %7 : f32 to vector<16x28xf32>
    %442 = arith.cmpf ole, %438, %441 : vector<16x28xf32>
    %443 = arith.andi %440, %442 : vector<16x28xi1>
    %cst_139 = arith.constant 1.000000e+00 : f32
    %444 = arith.subf %7, %cst_139 : f32
    %cst_140 = arith.constant 0.000000e+00 : f32
    %445 = vector.broadcast %cst_140 : f32 to vector<16x28xf32>
    %446 = arith.maximumf %445, %438 : vector<16x28xf32>
    %447 = vector.broadcast %444 : f32 to vector<16x28xf32>
    %448 = arith.minimumf %447, %446 : vector<16x28xf32>
    %449 = arith.subf %448, %239 : vector<16x28xf32>
    %450 = math.absf %449 : vector<16x28xf32>
    %cst_141 = arith.constant 1.000000e+00 : f32
    %451 = vector.broadcast %cst_141 : f32 to vector<16x28xf32>
    %452 = arith.subf %451, %450 : vector<16x28xf32>
    %cst_142 = arith.constant 0.000000e+00 : f32
    %453 = vector.broadcast %cst_142 : f32 to vector<16x28xf32>
    %454 = arith.maximumf %453, %452 : vector<16x28xf32>
    %455 = arith.extui %443 : vector<16x28xi1> to vector<16x28xi32>
    %456 = arith.sitofp %455 : vector<16x28xi32> to vector<16x28xf32>
    %457 = arith.mulf %454, %456 : vector<16x28xf32>
    %458 = arith.addf %430, %457 : vector<16x28xf32>
    %cst_143 = arith.constant 5.000000e-01 : f32
    %459 = vector.broadcast %cst_143 : f32 to vector<16x28xf32>
    %460 = arith.mulf %458, %459 : vector<16x28xf32>
    %461 = vector.extract_strided_slice %237 {offsets = [56, 0], sizes = [28, 64], strides = [1, 1]} : vector<112x64xf32> to vector<28x64xf32>
    %462 = vector.extract_strided_slice %461 {offsets = [0, 0], sizes = [28, 16], strides = [1, 1]} : vector<28x64xf32> to vector<28x16xf32>
    %cst_144 = arith.constant dense<0.000000e+00> : vector<28x28xf32>
    %463 = tpu.matmul %462, %460, %cst_144 {dimension_numbers = #tpu.dot_dimension_numbers<[1], [0], [0], [1], [0, 0, 1, 1], [], []>} : vector<28x16xf32>, vector<16x28xf32>, vector<28x28xf32> -> vector<28x28xf32>
    %c2 = arith.constant 2 : index
    %c0_145 = arith.constant 0 : index
    %c0_146 = arith.constant 0 : index
    %464 = vector.load %arg8[%c2, %c0_145, %c0_146] : memref<4x112x28xf32, #tpu.memory_space<vmem>>, vector<1x28x28xf32>
    %465 = vector.shape_cast %464 : vector<1x28x28xf32> to vector<28x28xf32>
    %466 = vector.shape_cast %463 : vector<28x28xf32> to vector<1x28x28xf32>
    tpu.vector_store %arg8[%c2, %c0_145, %c0_146], %466 {strides = array<i32>} : memref<4x112x28xf32, #tpu.memory_space<vmem>>, vector<1x28x28xf32>,
    %467 = vector.extract_strided_slice %461 {offsets = [0, 16], sizes = [28, 16], strides = [1, 1]} : vector<28x64xf32> to vector<28x16xf32>
    %cst_147 = arith.constant dense<0.000000e+00> : vector<28x28xf32>
    %468 = tpu.matmul %467, %460, %cst_147 {dimension_numbers = #tpu.dot_dimension_numbers<[1], [0], [0], [1], [0, 0, 1, 1], [], []>} : vector<28x16xf32>, vector<16x28xf32>, vector<28x28xf32> -> vector<28x28xf32>
    %c2_148 = arith.constant 2 : index
    %c28_149 = arith.constant 28 : index
    %c0_150 = arith.constant 0 : index
    %469 = vector.load %arg8[%c2_148, %c28_149, %c0_150] : memref<4x112x28xf32, #tpu.memory_space<vmem>>, vector<1x28x28xf32>
    %470 = vector.shape_cast %469 : vector<1x28x28xf32> to vector<28x28xf32>
    %471 = vector.shape_cast %468 : vector<28x28xf32> to vector<1x28x28xf32>
    tpu.vector_store %arg8[%c2_148, %c28_149, %c0_150], %471 {strides = array<i32>} : memref<4x112x28xf32, #tpu.memory_space<vmem>>, vector<1x28x28xf32>,
    %472 = vector.extract_strided_slice %461 {offsets = [0, 32], sizes = [28, 16], strides = [1, 1]} : vector<28x64xf32> to vector<28x16xf32>
    %cst_151 = arith.constant dense<0.000000e+00> : vector<28x28xf32>
    %473 = tpu.matmul %472, %460, %cst_151 {dimension_numbers = #tpu.dot_dimension_numbers<[1], [0], [0], [1], [0, 0, 1, 1], [], []>} : vector<28x16xf32>, vector<16x28xf32>, vector<28x28xf32> -> vector<28x28xf32>
    %c2_152 = arith.constant 2 : index
    %c56_153 = arith.constant 56 : index
    %c0_154 = arith.constant 0 : index
    %474 = vector.load %arg8[%c2_152, %c56_153, %c0_154] : memref<4x112x28xf32, #tpu.memory_space<vmem>>, vector<1x28x28xf32>
    %475 = vector.shape_cast %474 : vector<1x28x28xf32> to vector<28x28xf32>
    %476 = vector.shape_cast %473 : vector<28x28xf32> to vector<1x28x28xf32>
    tpu.vector_store %arg8[%c2_152, %c56_153, %c0_154], %476 {strides = array<i32>} : memref<4x112x28xf32, #tpu.memory_space<vmem>>, vector<1x28x28xf32>,
    %477 = vector.extract_strided_slice %461 {offsets = [0, 48], sizes = [28, 16], strides = [1, 1]} : vector<28x64xf32> to vector<28x16xf32>
    %cst_155 = arith.constant dense<0.000000e+00> : vector<28x28xf32>
    %478 = tpu.matmul %477, %460, %cst_155 {dimension_numbers = #tpu.dot_dimension_numbers<[1], [0], [0], [1], [0, 0, 1, 1], [], []>} : vector<28x16xf32>, vector<16x28xf32>, vector<28x28xf32> -> vector<28x28xf32>
    %c2_156 = arith.constant 2 : index
    %c84_157 = arith.constant 84 : index
    %c0_158 = arith.constant 0 : index
    %479 = vector.load %arg8[%c2_156, %c84_157, %c0_158] : memref<4x112x28xf32, #tpu.memory_space<vmem>>, vector<1x28x28xf32>
    %480 = vector.shape_cast %479 : vector<1x28x28xf32> to vector<28x28xf32>
    %481 = vector.shape_cast %478 : vector<28x28xf32> to vector<1x28x28xf32>
    tpu.vector_store %arg8[%c2_156, %c84_157, %c0_158], %481 {strides = array<i32>} : memref<4x112x28xf32, #tpu.memory_space<vmem>>, vector<1x28x28xf32>,
    %cst_159 = arith.constant 0.000000e+00 : f32
    %482 = vector.broadcast %cst_159 : f32 to vector<16x28xf32>
    %483 = vector.broadcast %109 : f32 to vector<16x28xf32>
    %484 = arith.mulf %241, %483 : vector<16x28xf32>
    %485 = vector.broadcast %91 : f32 to vector<16x28xf32>
    %486 = arith.addf %485, %484 : vector<16x28xf32>
    %cst_160 = arith.constant 2.000000e+00 : f32
    %487 = arith.divf %109, %cst_160 : f32
    %cst_161 = arith.constant 5.000000e-01 : f32
    %488 = arith.mulf %cst_161, %487 : f32
    %489 = vector.broadcast %488 : f32 to vector<16x28xf32>
    %490 = arith.addf %486, %489 : vector<16x28xf32>
    %cst_162 = arith.constant -1.000000e+00 : f32
    %491 = vector.broadcast %cst_162 : f32 to vector<16x28xf32>
    %492 = arith.cmpf oge, %490, %491 : vector<16x28xf32>
    %493 = vector.broadcast %7 : f32 to vector<16x28xf32>
    %494 = arith.cmpf ole, %490, %493 : vector<16x28xf32>
    %495 = arith.andi %492, %494 : vector<16x28xi1>
    %cst_163 = arith.constant 1.000000e+00 : f32
    %496 = arith.subf %7, %cst_163 : f32
    %cst_164 = arith.constant 0.000000e+00 : f32
    %497 = vector.broadcast %cst_164 : f32 to vector<16x28xf32>
    %498 = arith.maximumf %497, %490 : vector<16x28xf32>
    %499 = vector.broadcast %496 : f32 to vector<16x28xf32>
    %500 = arith.minimumf %499, %498 : vector<16x28xf32>
    %501 = arith.subf %500, %239 : vector<16x28xf32>
    %502 = math.absf %501 : vector<16x28xf32>
    %cst_165 = arith.constant 1.000000e+00 : f32
    %503 = vector.broadcast %cst_165 : f32 to vector<16x28xf32>
    %504 = arith.subf %503, %502 : vector<16x28xf32>
    %cst_166 = arith.constant 0.000000e+00 : f32
    %505 = vector.broadcast %cst_166 : f32 to vector<16x28xf32>
    %506 = arith.maximumf %505, %504 : vector<16x28xf32>
    %507 = arith.extui %495 : vector<16x28xi1> to vector<16x28xi32>
    %508 = arith.sitofp %507 : vector<16x28xi32> to vector<16x28xf32>
    %509 = arith.mulf %506, %508 : vector<16x28xf32>
    %510 = arith.addf %482, %509 : vector<16x28xf32>
    %511 = vector.broadcast %109 : f32 to vector<16x28xf32>
    %512 = arith.mulf %241, %511 : vector<16x28xf32>
    %513 = vector.broadcast %91 : f32 to vector<16x28xf32>
    %514 = arith.addf %513, %512 : vector<16x28xf32>
    %cst_167 = arith.constant 2.000000e+00 : f32
    %515 = arith.divf %109, %cst_167 : f32
    %cst_168 = arith.constant 1.500000e+00 : f32
    %516 = arith.mulf %cst_168, %515 : f32
    %517 = vector.broadcast %516 : f32 to vector<16x28xf32>
    %518 = arith.addf %514, %517 : vector<16x28xf32>
    %cst_169 = arith.constant -1.000000e+00 : f32
    %519 = vector.broadcast %cst_169 : f32 to vector<16x28xf32>
    %520 = arith.cmpf oge, %518, %519 : vector<16x28xf32>
    %521 = vector.broadcast %7 : f32 to vector<16x28xf32>
    %522 = arith.cmpf ole, %518, %521 : vector<16x28xf32>
    %523 = arith.andi %520, %522 : vector<16x28xi1>
    %cst_170 = arith.constant 1.000000e+00 : f32
    %524 = arith.subf %7, %cst_170 : f32
    %cst_171 = arith.constant 0.000000e+00 : f32
    %525 = vector.broadcast %cst_171 : f32 to vector<16x28xf32>
    %526 = arith.maximumf %525, %518 : vector<16x28xf32>
    %527 = vector.broadcast %524 : f32 to vector<16x28xf32>
    %528 = arith.minimumf %527, %526 : vector<16x28xf32>
    %529 = arith.subf %528, %239 : vector<16x28xf32>
    %530 = math.absf %529 : vector<16x28xf32>
    %cst_172 = arith.constant 1.000000e+00 : f32
    %531 = vector.broadcast %cst_172 : f32 to vector<16x28xf32>
    %532 = arith.subf %531, %530 : vector<16x28xf32>
    %cst_173 = arith.constant 0.000000e+00 : f32
    %533 = vector.broadcast %cst_173 : f32 to vector<16x28xf32>
    %534 = arith.maximumf %533, %532 : vector<16x28xf32>
    %535 = arith.extui %523 : vector<16x28xi1> to vector<16x28xi32>
    %536 = arith.sitofp %535 : vector<16x28xi32> to vector<16x28xf32>
    %537 = arith.mulf %534, %536 : vector<16x28xf32>
    %538 = arith.addf %510, %537 : vector<16x28xf32>
    %cst_174 = arith.constant 5.000000e-01 : f32
    %539 = vector.broadcast %cst_174 : f32 to vector<16x28xf32>
    %540 = arith.mulf %538, %539 : vector<16x28xf32>
    %541 = vector.extract_strided_slice %237 {offsets = [84, 0], sizes = [28, 64], strides = [1, 1]} : vector<112x64xf32> to vector<28x64xf32>
    %542 = vector.extract_strided_slice %541 {offsets = [0, 0], sizes = [28, 16], strides = [1, 1]} : vector<28x64xf32> to vector<28x16xf32>
    %cst_175 = arith.constant dense<0.000000e+00> : vector<28x28xf32>
    %543 = tpu.matmul %542, %540, %cst_175 {dimension_numbers = #tpu.dot_dimension_numbers<[1], [0], [0], [1], [0, 0, 1, 1], [], []>} : vector<28x16xf32>, vector<16x28xf32>, vector<28x28xf32> -> vector<28x28xf32>
    %c3 = arith.constant 3 : index
    %c0_176 = arith.constant 0 : index
    %c0_177 = arith.constant 0 : index
    %544 = vector.load %arg8[%c3, %c0_176, %c0_177] : memref<4x112x28xf32, #tpu.memory_space<vmem>>, vector<1x28x28xf32>
    %545 = vector.shape_cast %544 : vector<1x28x28xf32> to vector<28x28xf32>
    %546 = vector.shape_cast %543 : vector<28x28xf32> to vector<1x28x28xf32>
    tpu.vector_store %arg8[%c3, %c0_176, %c0_177], %546 {strides = array<i32>} : memref<4x112x28xf32, #tpu.memory_space<vmem>>, vector<1x28x28xf32>,
    %547 = vector.extract_strided_slice %541 {offsets = [0, 16], sizes = [28, 16], strides = [1, 1]} : vector<28x64xf32> to vector<28x16xf32>
    %cst_178 = arith.constant dense<0.000000e+00> : vector<28x28xf32>
    %548 = tpu.matmul %547, %540, %cst_178 {dimension_numbers = #tpu.dot_dimension_numbers<[1], [0], [0], [1], [0, 0, 1, 1], [], []>} : vector<28x16xf32>, vector<16x28xf32>, vector<28x28xf32> -> vector<28x28xf32>
    %c3_179 = arith.constant 3 : index
    %c28_180 = arith.constant 28 : index
    %c0_181 = arith.constant 0 : index
    %549 = vector.load %arg8[%c3_179, %c28_180, %c0_181] : memref<4x112x28xf32, #tpu.memory_space<vmem>>, vector<1x28x28xf32>
    %550 = vector.shape_cast %549 : vector<1x28x28xf32> to vector<28x28xf32>
    %551 = vector.shape_cast %548 : vector<28x28xf32> to vector<1x28x28xf32>
    tpu.vector_store %arg8[%c3_179, %c28_180, %c0_181], %551 {strides = array<i32>} : memref<4x112x28xf32, #tpu.memory_space<vmem>>, vector<1x28x28xf32>,
    %552 = vector.extract_strided_slice %541 {offsets = [0, 32], sizes = [28, 16], strides = [1, 1]} : vector<28x64xf32> to vector<28x16xf32>
    %cst_182 = arith.constant dense<0.000000e+00> : vector<28x28xf32>
    %553 = tpu.matmul %552, %540, %cst_182 {dimension_numbers = #tpu.dot_dimension_numbers<[1], [0], [0], [1], [0, 0, 1, 1], [], []>} : vector<28x16xf32>, vector<16x28xf32>, vector<28x28xf32> -> vector<28x28xf32>
    %c3_183 = arith.constant 3 : index
    %c56_184 = arith.constant 56 : index
    %c0_185 = arith.constant 0 : index
    %554 = vector.load %arg8[%c3_183, %c56_184, %c0_185] : memref<4x112x28xf32, #tpu.memory_space<vmem>>, vector<1x28x28xf32>
    %555 = vector.shape_cast %554 : vector<1x28x28xf32> to vector<28x28xf32>
    %556 = vector.shape_cast %553 : vector<28x28xf32> to vector<1x28x28xf32>
    tpu.vector_store %arg8[%c3_183, %c56_184, %c0_185], %556 {strides = array<i32>} : memref<4x112x28xf32, #tpu.memory_space<vmem>>, vector<1x28x28xf32>,
    %557 = vector.extract_strided_slice %541 {offsets = [0, 48], sizes = [28, 16], strides = [1, 1]} : vector<28x64xf32> to vector<28x16xf32>
    %cst_186 = arith.constant dense<0.000000e+00> : vector<28x28xf32>
    %558 = tpu.matmul %557, %540, %cst_186 {dimension_numbers = #tpu.dot_dimension_numbers<[1], [0], [0], [1], [0, 0, 1, 1], [], []>} : vector<28x16xf32>, vector<16x28xf32>, vector<28x28xf32> -> vector<28x28xf32>
    %c3_187 = arith.constant 3 : index
    %c84_188 = arith.constant 84 : index
    %c0_189 = arith.constant 0 : index
    %559 = vector.load %arg8[%c3_187, %c84_188, %c0_189] : memref<4x112x28xf32, #tpu.memory_space<vmem>>, vector<1x28x28xf32>
    %560 = vector.shape_cast %559 : vector<1x28x28xf32> to vector<28x28xf32>
    %561 = vector.shape_cast %558 : vector<28x28xf32> to vector<1x28x28xf32>
    tpu.vector_store %arg8[%c3_187, %c84_188, %c0_189], %561 {strides = array<i32>} : memref<4x112x28xf32, #tpu.memory_space<vmem>>, vector<1x28x28xf32>,
    return
  }
  func.func @transform_0(%arg0: i32, %arg1: memref<5xi32, #tpu.memory_space<smem>>, %arg2: memref<5xi32, #tpu.memory_space<smem>>) -> i32 {
    %c0_i32 = arith.constant 0 : i32
    %c0_i32_0 = arith.constant 0 : i32
    return %c0_i32 : i32
  }
  func.func @transform_1(%arg0: i32, %arg1: memref<5xi32, #tpu.memory_space<smem>>, %arg2: memref<5xi32, #tpu.memory_space<smem>>) -> i32 {
    %c0_i32 = arith.constant 0 : i32
    %c0_i32_0 = arith.constant 0 : i32
    return %c0_i32 : i32
  }
  func.func @transform_2(%arg0: i32, %arg1: memref<5xi32, #tpu.memory_space<smem>>, %arg2: memref<5xi32, #tpu.memory_space<smem>>) -> i32 {
    %c0_i32 = arith.constant 0 : i32
    %c0_i32_0 = arith.constant 0 : i32
    return %c0_i32 : i32
  }
  func.func @transform_3(%arg0: i32, %arg1: memref<5xi32, #tpu.memory_space<smem>>, %arg2: memref<5xi32, #tpu.memory_space<smem>>) -> i32 {
    %c0_i32 = arith.constant 0 : i32
    %c0_i32_0 = arith.constant 0 : i32
    return %c0_i32 : i32
  }
  func.func @transform_4(%arg0: i32, %arg1: memref<5xi32, #tpu.memory_space<smem>>, %arg2: memref<5xi32, #tpu.memory_space<smem>>) -> (i32, i32, i32, i32) {
    %0 = arith.index_cast %arg0 : i32 to index
    %1 = memref.load %arg1[%0] : memref<5xi32, #tpu.memory_space<smem>>
    %2 = arith.index_cast %arg0 : i32 to index
    %3 = memref.load %arg2[%2] : memref<5xi32, #tpu.memory_space<smem>>
    %c0_i32 = arith.constant 0 : i32
    %c0_i32_0 = arith.constant 0 : i32
    %c0_i32_1 = arith.constant 0 : i32
    return %1, %3, %c0_i32, %c0_i32_0 : i32, i32, i32, i32
  }
  func.func @transform_5(%arg0: i32, %arg1: memref<5xi32, #tpu.memory_space<smem>>, %arg2: memref<5xi32, #tpu.memory_space<smem>>) -> (i32, i32, i32) {
    %c0_i32 = arith.constant 0 : i32
    %c0_i32_0 = arith.constant 0 : i32
    %c0_i32_1 = arith.constant 0 : i32
    return %arg0, %c0_i32, %c0_i32_0 : i32, i32, i32
  }
}

</mosaic_0001>

<bundles_post_ra>
// kernel: tpu_custom_call.1
= control target key start
LH: loop header
LB: loop body
LE: loop exit
PB: predicated region body
PF: predicated region fallthrough
CT: control target
= control target key end

     0   :  { %s5670_s0 = inlined_call_operand.hbm [shape: s32[5], index: 0, kind: input, shape index: {}]   ;;  %s5671_s2 = inlined_call_operand.hbm [shape: f32[80], index: 2, kind: input, shape index: {}]   ;;  %s5672_s3 = inlined_call_operand.hbm [shape: f32[2], index: 3, kind: input, shape index: {}]   ;;  %s5673_s4 = inlined_call_operand.hbm [shape: f32[2], index: 4, kind: input, shape index: {}]   ;;  %s5674_s5 = inlined_call_operand.hbm [shape: f32[2], index: 5, kind: input, shape index: {}]   ;;  %s5675_s6 = inlined_call_operand.hbm [shape: f32[2,2,16,64], index: 6, kind: input, shape index: {}]   ;;  %s5676_s7 = inlined_call_operand.vmem [shape: f32[20,112,28], index: 7, kind: output, shape index: {}]   ;;  %s5677_s1 = inlined_call_operand.hbm [shape: s32[5], index: 1, kind: input, shape index: {}]  }
   0x1   :  { %s4410_s26 = scalar_lea.hbm %s5670_s0, 16 }
   0x2   :  { %p4411_p0 = scmp.ne.s32.totalorder %s5670_s0, %s4410_s26  ;;  %p4414_p1 = scmp.lt.u32.totalorder %s4410_s26, %s5670_s0 }
   0x4   :  { %p4416_p2 = pnand %p4414_p1, %p4411_p0 }
   0x6   :  { %4419 = shalt.err (!%p4416_p2)  }
   0x7   :  { %s4562_s8 = smov [#allocation3]   ;;  %s4420_s13 = scalar_lea.hbm %s5677_s1, 16 }
   0x8   :  { %13 = dma.hbm_to_smem %s5670_s0, 16, %s4562_s8, [#allocation2] }
   0x9   :  { %p4421_p3 = scmp.ne.s32.totalorder %s5677_s1, %s4420_s13  ;;  %p4424_p4 = scmp.lt.u32.totalorder %s4420_s13, %s5677_s1 }
   0xb   :  { %p4426_p5 = pnand %p4424_p4, %p4421_p3 }
   0xd   :  { %4429 = shalt.err (!%p4426_p5)  }
   0xe   :  { %s4563_s18 = smov [#allocation4]  }
   0xf   :  { %15 = dma.hbm_to_smem %s5677_s1, 16, %s4563_s18, [#allocation2] }
  0x10   :  { %4528 = dma.done.wait [#allocation2], 32 }
  0x11   :  { %4529 = vsyncadd [#allocation2], 4294967264 }
  0x12   :  { %17 = sfence }
  0x13   :  { %18 = vsyncpa [#allocation7], 0 }
  0x14   :  { %19 = vsyncpa [#allocation9], 0 }
  0x15   :  { %20 = vsyncpa [#allocation12], 0 }
  0x16   :  { %21 = vsyncpa [#allocation6], 0 }
  0x17   :  { %23 = vsyncpa [#allocation6 + $0x1], 0  ;;  %s4640_s0 = smov 0   ;;  %s4642_s21 = smov 0  }
  0x18   :  { %s4644_s22 = smov 0   ;;  %s4646_s23 = smov 0  }
  0x19 LB: > { %s4659_s1 = sadd.s32 4294967295, %s4560_s23   ;;  %p139_p6 = scmp.ne.s32.totalorder %s4552_s21, %s4548_s0  ;;  %s4560_s23 = sphi %s4646_s23, %s5697_s23   ;;  %s4556_s22 = sphi %s4644_s22, %s5696_s22   ;;  %s4552_s21 = sphi %s4642_s21, %s5695_s21   ;;  %s4548_s0 = sphi %s4640_s0, %s5694_s0  }
  0x1a   : > { %p5678_p7 = scmp.eq.s32.totalorder %s4659_s1, 0  ;;  %p3736_p8 = scmp.ge.s32.totalorder %s4560_s23, 1 }
  0x1b   : > { %p176_p9 = scmp.lt.s32.totalorder %s4560_s23, 6  ;;  %s4678_s26 = sadd.s32 1, %s4560_s23  }
  0x1c   : > { %p4667_p10 = por %p5678_p7, %p139_p6  ;;  %s4687_s28 = sld [smem:[#allocation3 + %s4560_s23]] }
  0x1d   : > { %p4671_p11 = pnand %p3736_p8, %p176_p9  ;;  %s4690_s29 = sld [smem:[#allocation4 + %s4560_s23]] }
  0x1e   : > { %s5680_s24 = scalar_select %p4667_p10, 1, 0 }
  0x1f   : > { %p4335_p12 = pneg %p4671_p11  ;;  %s4693_s30 = sld [smem:[#allocation3 + %s4678_s26]] }
  0x20   : > { %s4430_s10 = scalar_lea.hbm %s5672_s3, 16 }
  0x21   : > { %p4682_p13 = pnand %p4335_p12, %p5678_p7  ;;  %p4431_p0 = scmp.ne.s32.totalorder %s5672_s3, %s4430_s10 }
  0x22   : > { %p4437_p4 = scmp.lt.u32.totalorder %s4430_s10, %s5672_s3 }
  0x23   : > { %p4432_p1 = pneg %p4682_p13 }
  0x25   : > { %p4433_p2 = pnand %p4432_p1, %p4431_p0 }
  0x27   : > { %p4434_p3 = pneg %p4433_p2 }
  0x29   : > { %p4439_p5 = pnand %p4437_p4, %p4434_p3 }
  0x2b   : > { %4442 = shalt.err (!%p4439_p5)
}
  0x2c   : > { %s4564_s15 = smov [#allocation8]   ;;  %s4443_s20 = scalar_lea.hbm %s5671_s2, 16 }
  0x2d   : > { %4341 = dma.hbm_to_smem (!%p4682_p13), %s5672_s3, 16, %s4564_s15, [#allocation9]  }
  0x2e   : > { %p4444_p6 = scmp.ne.s32.totalorder %s5671_s2, %s4443_s20  ;;  %p4450_p12 = scmp.lt.u32.totalorder %s4443_s20, %s5671_s2 }
  0x30   : > { %p4446_p8 = pnand %p4444_p6, %p4432_p1 }
  0x32   : > { %p4447_p9 = pneg %p4446_p8 }
  0x34   : > { %p4452_p0 = pnand %p4450_p12, %p4447_p9 }
  0x36   : > { %4455 = shalt.err (!%p4452_p0)
}
  0x37   : > { %s4565_s11 = smov [#allocation5]   ;;  %s4456_s16 = scalar_lea.hbm %s5673_s4, 16 }
  0x38   : > { %4338 = dma.hbm_to_smem (!%p4682_p13), %s5671_s2, 16, %s4565_s11, [#allocation7]  }
  0x39   : > { %p4457_p2 = scmp.ne.s32.totalorder %s5673_s4, %s4456_s16  ;;  %p4463_p5 = scmp.lt.u32.totalorder %s4456_s16, %s5673_s4 }
  0x3b   : > { %p4459_p3 = pnand %p4457_p2, %p4432_p1 }
  0x3d   : > { %p4460_p4 = pneg %p4459_p3 }
  0x3f   : > { %p4465_p6 = pnand %p4463_p5, %p4460_p4 }
  0x41   : > { %4468 = shalt.err (!%p4465_p6)
}
  0x42   : > { %s4566_s0 = smov [#allocation10]   ;;  %s4469_s12 = scalar_lea.hbm %s5674_s5, 16 }
  0x43   : > { %4344 = dma.hbm_to_smem (!%p4682_p13), %s5673_s4, 16, %s4566_s0, [#allocation9]  }
  0x44   : > { %p4470_p8 = scmp.ne.s32.totalorder %s5674_s5, %s4469_s12  ;;  %p4476_p0 = scmp.lt.u32.totalorder %s4469_s12, %s5674_s5 }
  0x46   : > { %p4472_p9 = pnand %p4470_p8, %p4432_p1 }
  0x48   : > { %p4473_p12 = pneg %p4472_p9 }
  0x4a   : > { %p4478_p2 = pnand %p4476_p0, %p4473_p12 }
  0x4c   : > { %4481 = shalt.err (!%p4478_p2)
}
  0x4d   : > { %s4567_s17 = smov [#allocation11]   ;;  %s120_s20 = sld [smem:[#allocation4 + %s4678_s26]] }
  0x4e   : > { %4347 = dma.hbm_to_smem (!%p4682_p13), %s5674_s5, 16, %s4567_s17, [#allocation12]  }
  0x4f   : > { %p133_p1 = scmp.ne.s32.totalorder %s4556_s22, %s4552_s21  ;;  %p134_p3 = scmp.eq.s32.totalorder %s4560_s23, 0 }
  0x50   : > { %s121_s27 = ssub.s32 %s4687_s28, %s4693_s30  ;;  %s225_s8 = sand.u32 1, %s4556_s22  }
  0x51   : > { %p4771_p4 = por %p134_p3, %p133_p1  ;;  %s126_s10 = sadd.s32 1, %s4556_s22 }
  0x52   : > { %p4360_p5 = scmp.lt.s32.totalorder %s4560_s23, 5  ;;  %s3742_s12 = sshll.u32 %s225_s8, 4 }
  0x53   : > { %s122_s9 = ssub.s32 %s4690_s29, %s120_s20  ;;  %s5699_s23 = smov (!%p4771_p4, %s4560_s23), 0 }
  0x54   : > { %s123_s11 = sor.u32 %s122_s9, %s121_s27  ;;  %s5703_s23 = smov (!%p4360_p5, %s5699_s23), 0 }
  0x55   : > { %p124_p6 = scmp.eq.s32.totalorder %s123_s11, 0  ;;  %p4791_p13 = pnand %p4360_p5, %p4771_p4 }
  0x56   : > { %s4321_s13 = scalar_select %p4771_p4, [#allocation3], [#allocation14] }
  0x57   : > { %s4782_s14 = scalar_select %p124_p6, %s4556_s22, %s126_s10  }
  0x58   : > { %s5701_s13 = smov (!%p4360_p5, %s4321_s13), [#allocation16]  ;;  %s229_s17 = scalar_lea.vmem [#allocation13], %s3742_s12 }
  0x59   : > { %s4323_s28 = scalar_select %p4771_p4, [#allocation4], [#allocation15] }
  0x5a   : > { %s230_s30 = sld [smem:[%s5701_s13 + %s5703_s23]]  ;;  %s240_s18 = sshll.u32 %s229_s17, 4  ;;  %s4795_s18 = int_to_ptr.vmem [resolvable:$true] %s240_s18 }
  0x5b   : > { %s5705_s28 = smov (!%p4360_p5, %s4323_s28), [#allocation17]  ;;  %s4802_s11 = scalar_lea.sflag [#allocation6], %s225_s8 }
  0x5c   : > { %s231_s29 = sld [smem:[%s5705_s28 + %s5703_s23]]  ;;  %p4484_p9 = pneg %p4791_p13 }
  0x5d   : > { %s4487_s28 = scalar_lea.hbm %s5675_s6, 1024 }
  0x60   : > { %s3744_s16 = sshll.u32 %s230_s30, 2 }
  0x62   : > { %s3743_s19 = sshll.u32 %s231_s29, 1 }
  0x63   : > { %s237_s20 = sadd.s32 %s3744_s16, %s3743_s19 }
  0x64   : > { %s3745_s27 = sshll.u32 %s237_s20, 7 }
  0x65   : > { %s4800_s0 = scalar_lea.hbm %s5675_s6, %s3745_s27 }
  0x66   : > { %s4482_s23 = scalar_lea.hbm %s4800_s0, 256  ;;  %p4488_p2 = scmp.lt.u32.totalorder %s4800_s0, %s5675_s6 }
  0x67   : > { %p4483_p8 = scmp.ne.s32.totalorder %s4800_s0, %s4482_s23  ;;  %p4489_p1 = scmp.lt.u32.totalorder %s4487_s28, %s4482_s23 }
  0x68   : > { %p4491_p4 = scmp.lt.u32.totalorder %s4482_s23, %s4800_s0 }
  0x69   : > { %p4485_p12 = pnand %p4484_p9, %p4483_p8  ;;  %p4490_p3 = por %p4489_p1, %p4488_p2 }
  0x6b   : > { %p4486_p0 = pneg %p4485_p12  ;;  %p4492_p5 = por %p4491_p4, %p4490_p3 }
  0x6d   : > { %p4493_p6 = pnand %p4492_p5, %p4486_p0 }
  0x6f   : > { %4496 = shalt.err (!%p4493_p6)
}
  0x70   : > { %s4497_s8 = scalar_lea.vmem %s4795_s18, 256  ;;  %s4568_s16 = smov [#allocation13]  }
  0x71   : > { %p4498_p8 = scmp.ne.s32.totalorder %s4795_s18, %s4497_s8  ;;  %s4502_s17 = sshll.u32 %s4568_s16, 4  ;;  %s4503_s17 = int_to_ptr.vmem [resolvable:$false] %s4502_s17 }
  0x72   : > { %s4504_s19 = scalar_lea.vmem %s4503_s17, 512  ;;  %p4505_p10 = scmp.lt.s32.totalorder %s4795_s18, %s4503_s17 }
  0x73   : > { %p4500_p12 = pnand %p4498_p8, %p4484_p9  ;;  %p4506_p2 = scmp.lt.s32.totalorder %s4504_s19, %s4497_s8 }
  0x75   : > { %p4501_p7 = pneg %p4500_p12  ;;  %p4507_p1 = por %p4506_p2, %p4505_p10 }
  0x77   : > { %p4508_p3 = pnand %p4507_p1, %p4501_p7 }
  0x79   : > { %4511 = shalt.err (!%p4508_p3)
}
  0x7a   : > { %s4569_s20 = smov 128   ;;  %s4570_s27 = smov 8  }
  0x7b   : > { %4355 = dma.hbm_to_vmem [thread:$0]  (!%p4791_p13), %s4800_s0, 256, %s4795_s18, %s4802_s11, %s4569_s20, %s4569_s20, %s4570_s27  }
  0x7c   : > { %252 = sbr.rel (%p4671_p11) target bundleno = 852 (0x354), region = 40  ;;  %p5685_p9 = scmp.eq.s32.totalorder (!%p4671_p11), %s4659_s1, 0 }
  0x83   : > { %4531 = dma.done.wait (%p5685_p9), [#allocation7], 16   ;;  %p5686_p0 = pmov %p5685_p9 }
  0x85   : > { %4533 = vsyncadd (%p5686_p0), [#allocation7], 4294967280  ;;  %p5687_p7 = pmov %p5686_p0 }
  0x86   : > { %p5688_p10 = pmov %p5686_p0 }
  0x87   : > { %4535 = dma.done.wait (%p5687_p7), [#allocation9], 32  }
  0x88   : > { %4537 = vsyncadd (%p5688_p10), [#allocation9], 4294967264  ;;  %p5689_p4 = pmov %p5686_p0 }
  0x89   : > { %p5690_p13 = pmov %p5686_p0 }
  0x8a   : > { %4539 = dma.done.wait (%p5689_p4), [#allocation12], 16  }
  0x8b   : > { %4541 = vsyncadd (%p5690_p13), [#allocation12], 4294967280  ;;  %s270_s25 = sand.u32 1, %s4552_s21   ;;  %p5691_p11 = scmp.ne.s32.totalorder %s5680_s24, 0 }
  0x8c   : > { %s3751_s15 = sshll.u32 %s270_s25, 4  ;;  %s271_s18 = scalar_lea.sflag [#allocation6], %s270_s25 }
  0x8d   : > { %s274_s9 = scalar_lea.vmem [#allocation13], %s3751_s15 }
  0x8e   : > { %4543 = dma.done.wait (%p5691_p11), %s271_s18, 256  }
  0x8f   : > { %4545 = vsyncadd (%p5691_p11), %s271_s18, 4294967040 }
  0x90   : > { %279 = sfence }
  0x91   : > { %v316_v0 = vld [vmem:[%s274_s9] sm:$0xff]  ;;  %v317_v1 = vld [vmem:[%s274_s9 + $0x8] sm:$0xff]  ;;  %s4850_s10 = sld [smem:[#allocation3 + %s4659_s1]]  ;;  %s4853_s0 = sshll.u32 %s4659_s1, 4  ;;  %v410_v2 = vlaneseq  ;;  %v4571_v10 = vmov 0.0  }
  0x92   : > { %v4244_v3 = vpack.c.bf16 %v317_v1, %v316_v0  ;;  %s321_s11 = sadd.s32 1, %s4853_s0  ;;  %s327_s24 = sadd.s32 3, %s4853_s0 }
  0x93   : > { %v4857_v4 = vshrl.u32 %v410_v2, 7  ;;  %s322_s23 = sld [smem:[#allocation5 + %s321_s11]]  ;;  %s4860_s12 = sadd.s32 4, %s4853_s0  ;;  %v426_v9 = vand.u32 127, %v410_v2 }
  0x94   : > { %4245 = vmatprep.subr.bf16.mxu0 %v4244_v3  ;;  %s328_s13 = sld [smem:[#allocation5 + %s327_s24]]  ;;  %s345_s28 = sadd.s32 1, %s4860_s12 }
  0x95   : > { %4247 = vmatpush3.bf16.msra.mxu0 %v4244_v3  ;;  %s346_s29 = sld [smem:[#allocation5 + %s345_s28]]  ;;  %v414_v5 = vadd.s32 24, %v4857_v4  ;;  %s351_s8 = sadd.s32 3, %s4860_s12  ;;  %v415_v6 = vadd.s32 32, %v4857_v4  ;;  %v416_v7 = vadd.s32 40, %v4857_v4  ;;  %v417_v8 = vadd.s32 48, %v4857_v4 }
  0x96   : > { %s4868_s16 = sld [smem:[#allocation5 + %s351_s8]]  ;;  %s4871_s17 = sadd.s32 8, %s4853_s0  ;;  %v412_v12 = vadd.s32 8, %v4857_v4  ;;  %v4894_v13 = vadd.s32 80, %v4857_v4  ;;  %v4901_v14 = vadd.s32 16, %v4857_v4  ;;  %v418_v18 = vadd.s32 56, %v4857_v4 }
  0x97   : > { %s4864_s30 = sld [smem:[#allocation8 + %s4850_s10]]  ;;  %s368_s19 = sadd.s32 1, %s4871_s17  ;;  %vm459_vm0 = vcmp.lt.s32.totalorder %v414_v5, 28  ;;  %v431_v15 = vcvt.s32.f32 %v414_v5  ;;  %vm601_vm1 = vcmp.ge.s32.totalorder %v414_v5, 28  ;;  %v432_v17 = vcvt.s32.f32 %v415_v6 }
  0x98   : > { %s4874_s20 = sld [smem:[#allocation5 + %s368_s19]]  ;;  %s374_s15 = sadd.s32 3, %s4871_s17  ;;  %v4890_v11 = vsel %vm459_vm0, 1.0, %v4571_v10  ;;  %v419_v19 = vadd.s32 64, %v4857_v4  ;;  %v433_v20 = vcvt.s32.f32 %v416_v7  ;;  %v434_v21 = vcvt.s32.f32 %v417_v8 }
  0x99   : > { %s4887_s9 = sld [smem:[#allocation5 + %s374_s15]]  ;;  %v573_v16 = vmul.f32 0.0, %v4890_v11  ;;  %v420_v22 = vadd.s32 72, %v4857_v4  ;;  %v4915_v23 = vcvt.s32.f32 %v426_v9  ;;  %v4918_v24 = vcvt.s32.f32 %v4857_v4  ;;  %s4572_s8 = smov 1.0  }
  0x9a   : > { %s4897_s11 = sld [smem:[#allocation10 + %s4850_s10]]  ;;  %v3760_v25 = vsel %vm601_vm1, 1.0, %v4571_v10  ;;  %vm778_vm2 = vcmp.lt.s32.totalorder %v4894_v13, 84  ;;  %v4926_v26 = vcvt.s32.f32 %v412_v12  ;;  %v430_v27 = vcvt.s32.f32 %v4901_v14 }
  0x9b   : > { %v4929_v28 = vsub.f32 %v431_v15, %v573_v16  ;;  %v4931_v29 = vmul.f32 28.0, %v3760_v25  ;;  %v4939_v31 = vadd.f32 -28.0, %v432_v17  ;;  %v435_v32 = vcvt.s32.f32 %v418_v18 }
  0x9c   : > { %v436_v33 = vcvt.s32.f32 %v419_v19  ;;  %v4944_v34 = vadd.f32 -28.0, %v433_v20  ;;  %v4946_v35 = vadd.f32 -28.0, %v434_v21  ;;  %v437_v36 = vcvt.s32.f32 %v420_v22 }
  0x9d   : > { %s4877_s27 = smul.f32 %s322_s23, %s4864_s30  ;;  %v3764_v37 = vsel %vm778_vm2, 1.0, %v4571_v10  ;;  %v422_v41 = vadd.s32 88, %v4857_v4  ;;  %v743_v44 = vsub.f32 %v4929_v28, %v4931_v29  ;;  %vm920_vm3 = vcmp.ge.s32.totalorder %v4894_v13, 84 }
  0x9e   : > { %s329_s25 = smul.f32 %s328_s13, %s4864_s30  ;;  %s4907_s13 = sadd.s32 12, %s4853_s0  ;;  %v4964_v45 = vadd.f32 -56.0, %v435_v32  ;;  %v4966_v46 = vadd.f32 -56.0, %v436_v33  ;;  %v438_v47 = vcvt.s32.f32 %v4894_v13  ;;  %v892_v48 = vmul.f32 56.0, %v3764_v37 }
  0x9f   : > { %s4885_s18 = smul.f32 %s346_s29, %s4864_s30  ;;  %s391_s19 = sadd.s32 1, %s4907_s13  ;;  %v512_v38 = vstv %s4877_s27  ;;  %v423_v52 = vadd.s32 96, %v4857_v4  ;;  %v3768_v56 = vsel %vm920_vm3, 1.0, %v4571_v10  ;;  %v4972_v58 = vadd.f32 -56.0, %v437_v36 }
  0xa0   : > { %s332_s24 = ssub.f32 %s329_s25, %s4877_s27  ;;  %s353_s23 = smul.f32 %s4868_s16, %s4864_s30  ;;  %v4954_v40 = vstv %s4897_s11  ;;  %v517_v42 = vmul.f32 0.0, %v512_v38  ;;  %v516_v53 = vmul.f32 %v4890_v11, %v512_v38  ;;  %v424_v60 = vadd.s32 104, %v4857_v4 }
  0xa1   : > { %s370_s29 = smul.f32 %s4874_s20, %s4864_s30  ;;  %v668_v30 = vstv %s4885_s18  ;;  %v439_v0 = vcvt.s32.f32 %v422_v41  ;;  %v4978_v2 = vsub.f32 %v438_v47, %v892_v48  ;;  %v4980_v3 = vmul.f32 84.0, %v3768_v56 }
  0xa2   : > { %s356_s28 = ssub.f32 %s353_s23, %s4885_s18  ;;  %s4923_s16 = smax.f32 %s4572_s8, %s332_s24  ;;  %v669_v43 = vmul.f32 0.0, %v668_v30  ;;  %v672_v55 = vmul.f32 %v3760_v25, %v668_v30  ;;  %v440_v5 = vcvt.s32.f32 %v423_v52  ;;  %v687_v9 = vadd.f32 %v668_v30, %v517_v42 }
  0xa3   : > { %s376_s25 = smul.f32 %s4887_s9, %s4864_s30  ;;  %s4942_s24 = sld [smem:[#allocation5 + %s391_s19]]  ;;  %v824_v39 = vstv %s370_s29  ;;  %v1062_v20 = vsub.f32 %v4978_v2, %v4980_v3  ;;  %v3769_v21 = vadd.f32 -84.0, %v439_v0 }
  0xa4   : > { %s4934_s20 = smax.f32 %s4572_s8, %s356_s28  ;;  %s336_s23 = smul.f32 0.035714287, %s4923_s16  ;;  %v690_v49 = vadd.f32 %v669_v43, %v517_v42  ;;  %v825_v51 = vmul.f32 0.0, %v824_v39  ;;  %v683_v6 = vadd.f32 %v669_v43, %v512_v38  ;;  %v686_v8 = vadd.f32 %v672_v55, %v516_v53 }
  0xa5   : > { %s360_s15 = smul.f32 0.035714287, %s4934_s20  ;;  %s379_s9 = ssub.f32 %s376_s25, %s370_s29  ;;  %v835_v12 = vmul.f32 %v3764_v37, %v824_v39  ;;  %v3770_v22 = vadd.f32 -84.0, %v440_v5 }
  0xa6   : > { %s397_s18 = sadd.s32 3, %s4907_s13  ;;  %v541_v54 = vstv %s336_s23  ;;  %v850_v59 = vadd.f32 %v825_v51, %v690_v49  ;;  %s4985_s20 = sld [smem:[#allocation5 + %s4853_s0]]  ;;  %v846_v32 = vadd.f32 %v824_v39, %v690_v49  ;;  %v842_v36 = vadd.f32 %v825_v51, %v686_v8 }
  0xa7   : > { %s380_s28 = smax.f32 %s4572_s8, %s379_s9  ;;  %s4962_s19 = sld [smem:[#allocation5 + %s397_s18]]  ;;  %v697_v50 = vstv %s360_s15  ;;  %v546_v57 = vmul.f32 0.0, %v541_v54  ;;  %v545_v62 = vmul.f32 %v4890_v11, %v541_v54  ;;  %v441_v11 = vcvt.s32.f32 %v424_v60 }
  0xa8   : > { %s383_s27 = smul.f32 0.035714287, %s380_s28  ;;  %v698_v61 = vmul.f32 0.0, %v697_v50  ;;  %v701_v63 = vmul.f32 %v3760_v25, %v697_v50  ;;  %s3772_s15 = sadd.f32 -1.0, %s4897_s11  ;;  %v839_v25 = vadd.f32 %v825_v51, %v683_v6  ;;  %v843_v38 = vadd.f32 %v825_v51, %v687_v9 }
  0xa9   : > { %s393_s29 = smul.f32 %s4942_s24, %s4864_s30  ;;  %v716_v4 = vadd.f32 %v697_v50, %v546_v57  ;;  %v849_v41 = vadd.f32 %v835_v12, %v690_v49  ;;  %v4993_v48 = vadd.f32 -84.0, %v441_v11  ;;  %s5138_s9 = sld [smem:[#allocation11 + %s4850_s10]] }
  0xaa   : > { %v853_v1 = vstv %s383_s27  ;;  %v712_v15 = vadd.f32 %v698_v61, %v541_v54  ;;  %v719_v16 = vadd.f32 %v698_v61, %v546_v57  ;;  %v715_v18 = vadd.f32 %v701_v63, %v545_v62  ;;  %s324_s18 = sadd.s32 2, %s4853_s0 }
  0xab   : > { %v980_v7 = vstv %s393_s29  ;;  %v854_v17 = vmul.f32 0.0, %v853_v1  ;;  %v864_v19 = vmul.f32 %v3764_v37, %v853_v1  ;;  %v4995_v52 = vstv %s3772_s15  ;;  %s5148_s10 = sld [smem:[#allocation5 + %s324_s18]]  ;;  %s348_s15 = sadd.s32 2, %s4860_s12 }
  0xac   : > { %v4987_v13 = vadd.f32 %v980_v7, %v850_v59  ;;  %v981_v30 = vmul.f32 0.0, %v980_v7  ;;  %v991_v42 = vmul.f32 %v3768_v56, %v980_v7  ;;  %v875_v53 = vadd.f32 %v853_v1, %v719_v16  ;;  %s5001_s11 = smul.f32 %s4985_s20, %s4864_s30 }
  0xad   : > { %s399_s16 = smul.f32 %s4962_s19, %s4864_s30  ;;  %v879_v33 = vadd.f32 %v854_v17, %v719_v16  ;;  %v868_v43 = vadd.f32 %v854_v17, %v712_v15  ;;  %v871_v37 = vadd.f32 %v854_v17, %v715_v18  ;;  %v872_v47 = vadd.f32 %v854_v17, %v716_v4 }
  0xae   : > { %v878_v54 = vadd.f32 %v864_v19, %v719_v16  ;;  %v995_v55 = vadd.f32 %v981_v30, %v839_v25  ;;  %v998_v49 = vadd.f32 %v981_v30, %v842_v36  ;;  %v5003_v51 = vadd.f32 %v981_v30, %v843_v38 }
  0xaf   : > { %s402_s25 = ssub.f32 %s399_s16, %s393_s29  ;;  %v5005_v60 = vadd.f32 %v981_v30, %v846_v32  ;;  %v5007_v61 = vadd.f32 %v991_v42, %v849_v41  ;;  %v1726_v1 = vstv %s5001_s11 }
  0xb0   : > { %s3815_s0 = sadd.f32 -1.0, %s5138_s9 }
  0xb1   : > { %s403_s24 = smax.f32 %s4572_s8, %s402_s25  ;;  %s326_s28 = smul.f32 %s5148_s10, %s4864_s30 }
  0xb2   : > { %s406_s23 = smul.f32 0.035714287, %s403_s24  ;;  %s349_s24 = sld [smem:[#allocation5 + %s348_s15]] }
  0xb3   : > { %s330_s19 = ssub.f32 %s326_s28, %s5001_s11 }
  0xb4   : > { %v1009_v50 = vstv %s406_s23  ;;  %s343_s23 = sld [smem:[#allocation5 + %s4860_s12]] }
  0xb5   : > { %v1010_v39 = vmul.f32 0.0, %v1009_v50  ;;  %v1020_v57 = vmul.f32 %v3768_v56, %v1009_v50  ;;  %v4997_v59 = vadd.f32 %v1009_v50, %v879_v33  ;;  %s5201_s27 = smax.f32 %s4572_s8, %s330_s19 }
  0xb6   : > { %s339_s29 = smul.f32 0.035714287, %s5201_s27  ;;  %s4573_s27 = smov 96  }
  0xb7   : > { %v1024_v62 = vadd.f32 %v1010_v39, %v868_v43  ;;  %v1027_v63 = vadd.f32 %v1010_v39, %v871_v37  ;;  %v5009_v0 = vadd.f32 %v1010_v39, %v872_v47  ;;  %v5012_v5 = vadd.f32 %v1010_v39, %v875_v53 }
  0xb8   : > { %v5014_v56 = vadd.f32 %v1020_v57, %v878_v54  ;;  %v5017_v6 = vmul.f32 %v3769_v21, %v4997_v59  ;;  %v5020_v7 = vmul.f32 %v3770_v22, %v4997_v59  ;;  %s5231_s16 = smul.f32 0.5, %s339_s29 }
  0xb9   : > { %v1066_v8 = vmul.f32 %v1024_v62, %v4918_v24  ;;  %v1095_v9 = vmul.f32 0.5, %v1024_v62  ;;  %v1067_v4 = vmul.f32 %v1024_v62, %v4926_v26  ;;  %v1068_v12 = vmul.f32 %v1024_v62, %v430_v27  ;;  %s350_s11 = smul.f32 %s349_s24, %s4864_s30 }
  0xba   : > { %v1069_v11 = vmul.f32 %v1027_v63, %v743_v44  ;;  %v1098_v15 = vmul.f32 0.5, %v1027_v63  ;;  %v5031_v16 = vmul.f32 %v4939_v31, %v5009_v0  ;;  %v5034_v17 = vmul.f32 0.5, %v5009_v0  ;;  %s1731_s20 = smul.f32 0.5, %s5231_s16 }
  0xbb   : > { %v1080_v18 = vadd.f32 %v1066_v8, %v995_v55  ;;  %v1109_v19 = vmul.f32 0.5, %v1095_v9  ;;  %v1322_v21 = vmul.f32 1.5, %v1095_v9  ;;  %v1081_v22 = vadd.f32 %v1067_v4, %v995_v55  ;;  %s1756_s25 = smul.f32 1.5, %s5231_s16  ;;  %s4575_s16 = smov 80  }
  0xbc   : > { %v1082_v25 = vadd.f32 %v1068_v12, %v995_v55  ;;  %v1083_v30 = vadd.f32 %v1069_v11, %v998_v49  ;;  %v1112_v14 = vmul.f32 0.5, %v1098_v15  ;;  %v1325_v27 = vmul.f32 1.5, %v1098_v15 }
  0xbd   : > { %v1123_v32 = vadd.f32 %v1109_v19, %v1080_v18  ;;  %v1336_v33 = vadd.f32 %v1322_v21, %v1080_v18  ;;  %v1124_v28 = vadd.f32 %v1109_v19, %v1081_v22  ;;  %v1337_v29 = vadd.f32 %v1322_v21, %v1081_v22 }
  0xbe   : > { %v1125_v44 = vadd.f32 %v1109_v19, %v1082_v25  ;;  %v1338_v36 = vadd.f32 %v1322_v21, %v1082_v25  ;;  %v5036_v38 = vadd.f32 %v1112_v14, %v1083_v30  ;;  %v5038_v31 = vadd.f32 %v1325_v27, %v1083_v30 }
  0xbf   : > { %vm1137_vm4 = vcmp.ge.f32.partialorder %v1123_v32, -1.0  ;;  %vm1152_vm5 = vcmp.le.f32.partialorder %v1123_v32, %v4954_v40  ;;  %v1181_v41 = vmax.f32 %v1123_v32, 0.0  ;;  %vm1350_vm6 = vcmp.ge.f32.partialorder %v1336_v33, -1.0 }
  0xc0   : > { %vm1166_vm7 = vmand %vm1137_vm4, %vm1152_vm5  ;;  %vm1364_vm8 = vcmp.le.f32.partialorder %v1336_v33, %v4954_v40  ;;  %v1392_v42 = vmax.f32 %v1336_v33, 0.0  ;;  %vm1138_vm9 = vcmp.ge.f32.partialorder %v1124_v28, -1.0  ;;  %vm1153_vm10 = vcmp.le.f32.partialorder %v1124_v28, %v4954_v40 }
  0xc1   : > { %v1196_v43 = vmin.f32 %v4995_v52, %v1181_v41  ;;  %v3773_v37 = vsel %vm1166_vm7, 1.0, %v4571_v10  ;;  %vm1378_vm11 = vmand %vm1350_vm6, %vm1364_vm8  ;;  %v1182_v47 = vmax.f32 %v1124_v28, 0.0  ;;  %vm1351_vm12 = vcmp.ge.f32.partialorder %v1337_v29, -1.0 }
  0xc2   : > { %v1406_v50 = vmin.f32 %v4995_v52, %v1392_v42  ;;  %v3787_v53 = vsel %vm1378_vm11, 1.0, %v4571_v10  ;;  %vm1167_vm13 = vmand %vm1138_vm9, %vm1153_vm10  ;;  %vm1365_vm14 = vcmp.le.f32.partialorder %v1337_v29, %v4954_v40  ;;  %v1393_v54 = vmax.f32 %v1337_v29, 0.0 }
  0xc3   : > { %v1210_v55 = vsub.f32 %v1196_v43, %v4915_v23  ;;  %v1197_v39 = vmin.f32 %v4995_v52, %v1182_v47  ;;  %v3774_v57 = vsel %vm1167_vm13, 1.0, %v4571_v10  ;;  %vm1379_vm15 = vmand %vm1351_vm12, %vm1365_vm14  ;;  %vm1139_vm0 = vcmp.ge.f32.partialorder %v1125_v44, -1.0 }
  0xc4   : > { %v1420_v49 = vsub.f32 %v1406_v50, %v4915_v23  ;;  %v1407_v62 = vmin.f32 %v4995_v52, %v1393_v54  ;;  %v3788_v63 = vsel %vm1379_vm15, 1.0, %v4571_v10  ;;  %vm1154_vm1 = vcmp.le.f32.partialorder %v1125_v44, %v4954_v40 }
  0xc5   : > { %v1224_v8 = vand.u32 2147483647, %v1210_v55  ;;  %v1211_v9 = vsub.f32 %v1197_v39, %v4915_v23  ;;  %vm1168_vm2 = vmand %vm1139_vm0, %vm1154_vm1  ;;  %v1183_v4 = vmax.f32 %v1125_v44, 0.0  ;;  %vm1352_vm3 = vcmp.ge.f32.partialorder %v1338_v36, -1.0 }
  0xc6   : > { %v1434_v12 = vand.u32 2147483647, %v1420_v49  ;;  %v1421_v11 = vsub.f32 %v1407_v62, %v4915_v23  ;;  %v3775_v15 = vsel %vm1168_vm2, 1.0, %v4571_v10  ;;  %vm1366_vm4 = vcmp.le.f32.partialorder %v1338_v36, %v4954_v40 }
  0xc7   : > { %v1238_v18 = vsub.f32 1.0, %v1224_v8  ;;  %vm1546_vm5 = vcmask 130048   ;;  %v1225_v19 = vand.u32 2147483647, %v1211_v9  ;;  %v1198_v21 = vmin.f32 %v4995_v52, %v1183_v4  ;;  %vm1380_vm6 = vmand %vm1352_vm3, %vm1366_vm4 }
  0xc8   : > { %v1394_v22 = vmax.f32 %v1338_v36, 0.0  ;;  %v1448_v25 = vsub.f32 1.0, %v1434_v12  ;;  %v1435_v30 = vand.u32 2147483647, %v1421_v11  ;;  %v3789_v14 = vsel %vm1380_vm6, 1.0, %v4571_v10 }
  0xc9   : > { %vm1140_vm7 = vcmp.ge.f32.partialorder %v5036_v38, -1.0  ;;  %v1252_v27 = vmax.f32 %v1238_v18, 0.0  ;;  %v1239_v32 = vsub.f32 1.0, %v1225_v19  ;;  %v1212_v33 = vsub.f32 %v1198_v21, %v4915_v23 }
  0xca   : > { %v1408_v28 = vmin.f32 %v4995_v52, %v1394_v22  ;;  %v1462_v29 = vmax.f32 %v1448_v25, 0.0  ;;  %v1449_v44 = vsub.f32 1.0, %v1435_v30  ;;  %vm1155_vm8 = vcmp.le.f32.partialorder %v5036_v38, %v4954_v40 }
  0xcb   : > { %v1184_v41 = vmax.f32 %v5036_v38, 0.0  ;;  %v1294_v36 = vmul.f32 %v3773_v37, %v1252_v27  ;;  %v1253_v42 = vmax.f32 %v1239_v32, 0.0  ;;  %v1226_v43 = vand.u32 2147483647, %v1212_v33  ;;  %vm1169_vm9 = vmand %vm1140_vm7, %vm1155_vm8 }
  0xcc   : > { %v1422_v47 = vsub.f32 %v1408_v28, %v4915_v23  ;;  %v1504_v50 = vmul.f32 %v3787_v53, %v1462_v29  ;;  %v1463_v54 = vmax.f32 %v1449_v44, 0.0  ;;  %v3776_v39 = vsel %vm1169_vm9, 1.0, %v4571_v10 }
  0xcd   : > { %v1199_v55 = vmin.f32 %v4995_v52, %v1184_v41  ;;  %v1295_v49 = vmul.f32 %v3774_v57, %v1253_v42  ;;  %v1240_v62 = vsub.f32 1.0, %v1226_v43  ;;  %vm1353_vm10 = vcmp.ge.f32.partialorder %v5038_v31, -1.0 }
  0xce   : > { %v1436_v8 = vand.u32 2147483647, %v1422_v47  ;;  %v1518_v9 = vadd.f32 %v1504_v50, %v1294_v36  ;;  %v1505_v4 = vmul.f32 %v3788_v63, %v1463_v54  ;;  %vm1367_vm11 = vcmp.le.f32.partialorder %v5038_v31, %v4954_v40 }
  0xcf   : > { %v1213_v38 = vsub.f32 %v1199_v55, %v4915_v23  ;;  %v1254_v37 = vmax.f32 %v1240_v62, 0.0  ;;  %vm1381_vm12 = vmand %vm1353_vm10, %vm1367_vm11  ;;  %v1395_v53 = vmax.f32 %v5038_v31, 0.0  ;;  %v1084_v11 = vadd.f32 %v5031_v16, %v5003_v51 }
  0xd0   : > { %v1450_v12 = vsub.f32 1.0, %v1436_v8  ;;  %v1532_v57 = vmul.f32 0.5, %v1518_v9  ;;  %v1519_v18 = vadd.f32 %v1505_v4, %v1295_v49  ;;  %v3790_v21 = vsel %vm1381_vm12, 1.0, %v4571_v10 }
  0xd1   : > { %v1227_v19 = vand.u32 2147483647, %v1213_v38  ;;  %v1296_v22 = vmul.f32 %v3775_v15, %v1254_v37  ;;  %v1409_v25 = vmin.f32 %v4995_v52, %v1395_v53  ;;  %v1113_v30 = vmul.f32 0.5, %v5034_v17 }
  0xd2   : > { %v1464_v63 = vmax.f32 %v1450_v12, 0.0  ;;  %4063 = vmatprep.mubr.msk.f32.mxu0 %vm1546_vm5, %v1532_v57  ;;  %v1533_v27 = vmul.f32 0.5, %v1519_v18  ;;  %v1326_v31 = vmul.f32 1.5, %v5034_v17  ;;  %v1071_v16 = vmul.f32 %v4944_v34, %v5009_v0 }
  0xd3   : > { %v1241_v32 = vsub.f32 1.0, %v1227_v19  ;;  %v1423_v28 = vsub.f32 %v1409_v25, %v4915_v23  ;;  %v1127_v29 = vadd.f32 %v1113_v30, %v1084_v11  ;;  %v1072_v15 = vmul.f32 %v4946_v35, %v5009_v0 }
  0xd4   : > { %v1506_v33 = vmul.f32 %v3789_v14, %v1464_v63  ;;  %4064 = vmatmul.mubr.msk.f32.vlgmr.msra.gmra.mrb[0].mxu0 %vm1546_vm5, %v1533_v27  ;;  %v1340_v41 = vadd.f32 %v1326_v31, %v1084_v11  ;;  %v1085_v36 = vadd.f32 %v1071_v16, %v5003_v51  ;;  %v1073_v42 = vmul.f32 %v4964_v45, %v5012_v5 }
  0xd5   : > { %v1255_v44 = vmax.f32 %v1241_v32, 0.0  ;;  %v1437_v43 = vand.u32 2147483647, %v1423_v28  ;;  %vm1141_vm13 = vcmp.ge.f32.partialorder %v1127_v29, -1.0  ;;  %vm1156_vm14 = vcmp.le.f32.partialorder %v1127_v29, %v4954_v40 }
  0xd6   : > { %v1520_v17 = vadd.f32 %v1506_v33, %v1296_v22  ;;  %vm1170_vm15 = vmand %vm1141_vm13, %vm1156_vm14  ;;  %v1185_v14 = vmax.f32 %v1127_v29, 0.0  ;;  %vm1354_vm0 = vcmp.ge.f32.partialorder %v1340_v41, -1.0  ;;  %vm1368_vm1 = vcmp.le.f32.partialorder %v1340_v41, %v4954_v40 }
  0xd7   : > { %v1297_v34 = vmul.f32 %v3776_v39, %v1255_v44  ;;  %v1451_v0 = vsub.f32 1.0, %v1437_v43  ;;  %v3777_v47 = vsel %vm1170_vm15, 1.0, %v4571_v10  ;;  %vm1382_vm2 = vmand %vm1354_vm0, %vm1368_vm1  ;;  %v1396_v50 = vmax.f32 %v1340_v41, 0.0 }
  0xd8   : > { %v1534_v35 = vmul.f32 0.5, %v1520_v17  ;;  %v1200_v54 = vmin.f32 %v4995_v52, %v1185_v14  ;;  %v3791_v45 = vsel %vm1382_vm2, 1.0, %v4571_v10  ;;  %v1128_v55 = vadd.f32 %v1113_v30, %v1085_v36 }
  0xd9   : > { %v1341_v49 = vadd.f32 %v1326_v31, %v1085_v36  ;;  %v1465_v39 = vmax.f32 %v1451_v0, 0.0  ;;  %v1410_v62 = vmin.f32 %v4995_v52, %v1396_v50  ;;  %v1086_v8 = vadd.f32 %v1072_v15, %v5003_v51 }
  0xda   : > { %4066 = vmatprep.mubr.msk.f32.mxu0 %vm1546_vm5, %v1534_v35  ;;  %v1087_v9 = vadd.f32 %v1073_v42, %v5005_v60  ;;  %v1214_v4 = vsub.f32 %v1200_v54, %v4915_v23  ;;  %vm1142_vm3 = vcmp.ge.f32.partialorder %v1128_v55, -1.0  ;;  %vm1157_vm4 = vcmp.le.f32.partialorder %v1128_v55, %v4954_v40 }
  0xdb   : > { %v1186_v38 = vmax.f32 %v1128_v55, 0.0  ;;  %v1507_v37 = vmul.f32 %v3790_v21, %v1465_v39  ;;  %v1424_v12 = vsub.f32 %v1410_v62, %v4915_v23  ;;  %vm1171_vm6 = vmand %vm1142_vm3, %vm1157_vm4  ;;  %vm1355_vm7 = vcmp.ge.f32.partialorder %v1341_v49, -1.0 }
  0xdc   : > { %vm1369_vm8 = vcmp.le.f32.partialorder %v1341_v49, %v4954_v40  ;;  %v1228_v53 = vand.u32 2147483647, %v1214_v4  ;;  %v3778_v51 = vsel %vm1171_vm6, 1.0, %v4571_v10  ;;  %v1397_v57 = vmax.f32 %v1341_v49, 0.0 }
  0xdd   : > { %v1201_v11 = vmin.f32 %v4995_v52, %v1186_v38  ;;  %vm1383_vm9 = vmand %vm1355_vm7, %vm1369_vm8  ;;  %v1521_v18 = vadd.f32 %v1507_v37, %v1297_v34  ;;  %v1438_v19 = vand.u32 2147483647, %v1424_v12  ;;  %v1129_v63 = vadd.f32 %v1113_v30, %v1086_v8 }
  0xde   : > { %v3792_v22 = vsel %vm1383_vm9, 1.0, %v4571_v10  ;;  %v1242_v25 = vsub.f32 1.0, %v1228_v53  ;;  %v1411_v27 = vmin.f32 %v4995_v52, %v1397_v57  ;;  %v1342_v32 = vadd.f32 %v1326_v31, %v1086_v8 }
  0xdf   : > { %v1215_v21 = vsub.f32 %v1201_v11, %v4915_v23  ;;  %v1535_v16 = vmul.f32 0.5, %v1521_v18  ;;  %v1452_v33 = vsub.f32 1.0, %v1438_v19  ;;  %vm1143_vm10 = vcmp.ge.f32.partialorder %v1129_v63, -1.0 }
  0xe0   : > { %vm1158_vm11 = vcmp.le.f32.partialorder %v1129_v63, %v4954_v40  ;;  %v1256_v28 = vmax.f32 %v1242_v25, 0.0  ;;  %v1425_v15 = vsub.f32 %v1411_v27, %v4915_v23  ;;  %v1187_v44 = vmax.f32 %v1129_v63, 0.0 }
  0xe1   : > { %v1229_v29 = vand.u32 2147483647, %v1215_v21  ;;  %vm1172_vm12 = vmand %vm1143_vm10, %vm1158_vm11  ;;  %4067 = vmatmul.mubr.msk.f32.gmra.mrb[2].mxu0 %vm1546_vm5, %v1535_v16  ;;  %v1466_v30 = vmax.f32 %v1452_v33, 0.0  ;;  %vm1356_vm13 = vcmp.ge.f32.partialorder %v1342_v32, -1.0  ;;  %vm1370_vm14 = vcmp.le.f32.partialorder %v1342_v32, %v4954_v40 }
  0xe2   : > { %v3779_v41 = vsel %vm1172_vm12, 1.0, %v4571_v10  ;;  %v1298_v31 = vmul.f32 %v3777_v47, %v1256_v28  ;;  %v1439_v42 = vand.u32 2147483647, %v1425_v15  ;;  %v1202_v17 = vmin.f32 %v4995_v52, %v1187_v44  ;;  %vm1384_vm15 = vmand %vm1356_vm13, %vm1370_vm14 }
  0xe3   : > { %v1243_v36 = vsub.f32 1.0, %v1229_v29  ;;  %v1508_v43 = vmul.f32 %v3791_v45, %v1466_v30  ;;  %v1398_v34 = vmax.f32 %v1342_v32, 0.0  ;;  %v3793_v14 = vsel %vm1384_vm15, 1.0, %v4571_v10 }
  0xe4   : > { %v1102_v35 = vmul.f32 0.5, %v5012_v5  ;;  %v1453_v50 = vsub.f32 1.0, %v1439_v42  ;;  %v1216_v54 = vsub.f32 %v1202_v17, %v4915_v23  ;;  %v1074_v55 = vmul.f32 %v4966_v46, %v5012_v5 }
  0xe5   : > { %v1257_v0 = vmax.f32 %v1243_v36, 0.0  ;;  %v1522_v49 = vadd.f32 %v1508_v43, %v1298_v31  ;;  %v1412_v47 = vmin.f32 %v4995_v52, %v1398_v34 }
  0xe6   : > { %v5121_v39 = vmul.f32 0.5, %v1102_v35  ;;  %v5123_v62 = vmul.f32 1.5, %v1102_v35  ;;  %v1467_v8 = vmax.f32 %v1453_v50, 0.0  ;;  %v1230_v4 = vand.u32 2147483647, %v1216_v54 }
  0xe7   : > { %v1299_v45 = vmul.f32 %v3778_v51, %v1257_v0  ;;  %v1088_v38 = vadd.f32 %v1074_v55, %v5005_v60  ;;  %v1536_v37 = vmul.f32 0.5, %v1522_v49  ;;  %v1426_v12 = vsub.f32 %v1412_v47, %v4915_v23 }
  0xe8   : > { %v1130_v53 = vadd.f32 %v5121_v39, %v1087_v9  ;;  %v1343_v11 = vadd.f32 %v5123_v62, %v1087_v9  ;;  %v1509_v46 = vmul.f32 %v3792_v22, %v1467_v8  ;;  %v1244_v57 = vsub.f32 1.0, %v1230_v4 }
  0xe9   : > { %v1131_v18 = vadd.f32 %v5121_v39, %v1088_v38  ;;  %v1344_v19 = vadd.f32 %v5123_v62, %v1088_v38  ;;  %4069 = vmatprep.mubr.msk.f32.mxu0 %vm1546_vm5, %v1536_v37  ;;  %v1440_v51 = vand.u32 2147483647, %v1426_v12  ;;  %v1075_v0 = vmul.f32 %v4972_v58, %v5012_v5 }
  0xea   : > { %vm1144_vm0 = vcmp.ge.f32.partialorder %v1130_v53, -1.0  ;;  %vm1159_vm1 = vcmp.le.f32.partialorder %v1130_v53, %v4954_v40  ;;  %v1188_v63 = vmax.f32 %v1130_v53, 0.0  ;;  %v1523_v25 = vadd.f32 %v1509_v46, %v1299_v45 }
  0xeb   : > { %v1258_v21 = vmax.f32 %v1244_v57, 0.0  ;;  %vm1173_vm2 = vmand %vm1144_vm0, %vm1159_vm1  ;;  %vm1357_vm3 = vcmp.ge.f32.partialorder %v1343_v11, -1.0  ;;  %vm1371_vm4 = vcmp.le.f32.partialorder %v1343_v11, %v4954_v40  ;;  %v1454_v9 = vsub.f32 1.0, %v1440_v51 }
  0xec   : > { %v1203_v22 = vmin.f32 %v4995_v52, %v1188_v63  ;;  %v3780_v27 = vsel %vm1173_vm2, 1.0, %v4571_v10  ;;  %vm1385_vm6 = vmand %vm1357_vm3, %vm1371_vm4  ;;  %v1399_v32 = vmax.f32 %v1343_v11, 0.0  ;;  %v1537_v16 = vmul.f32 0.5, %v1523_v25 }
  0xed   : > { %v1300_v33 = vmul.f32 %v3779_v41, %v1258_v21  ;;  %v3794_v28 = vsel %vm1385_vm6, 1.0, %v4571_v10  ;;  %vm1145_vm7 = vcmp.ge.f32.partialorder %v1131_v18, -1.0  ;;  %v1468_v29 = vmax.f32 %v1454_v9, 0.0 }
  0xee   : > { %v1217_v15 = vsub.f32 %v1203_v22, %v4915_v23  ;;  %v1413_v44 = vmin.f32 %v4995_v52, %v1399_v32  ;;  %vm1160_vm8 = vcmp.le.f32.partialorder %v1131_v18, %v4954_v40  ;;  %4070 = vmatmul.mubr.msk.f32.gmra.mrb[4].mxu0 %vm1546_vm5, %v1537_v16  ;;  %v1189_v30 = vmax.f32 %v1131_v18, 0.0 }
  0xef   : > { %vm1174_vm9 = vmand %vm1145_vm7, %vm1160_vm8  ;;  %vm1358_vm10 = vcmp.ge.f32.partialorder %v1344_v19, -1.0  ;;  %vm1372_vm11 = vcmp.le.f32.partialorder %v1344_v19, %v4954_v40  ;;  %v1400_v41 = vmax.f32 %v1344_v19, 0.0  ;;  %v1510_v31 = vmul.f32 %v3793_v14, %v1468_v29 }
  0xf0   : > { %v1231_v36 = vand.u32 2147483647, %v1217_v15  ;;  %v1427_v42 = vsub.f32 %v1413_v44, %v4915_v23  ;;  %v3781_v17 = vsel %vm1174_vm9, 1.0, %v4571_v10  ;;  %vm1386_vm12 = vmand %vm1358_vm10, %vm1372_vm11  ;;  %v1204_v43 = vmin.f32 %v4995_v52, %v1189_v30 }
  0xf1   : > { %v1414_v34 = vmin.f32 %v4995_v52, %v1400_v41  ;;  %v3795_v35 = vsel %vm1386_vm12, 1.0, %v4571_v10  ;;  %v1524_v50 = vadd.f32 %v1510_v31, %v1300_v33  ;;  %v1076_v55 = vmul.f32 %v1062_v20, %v5014_v56 }
  0xf2   : > { %v1245_v14 = vsub.f32 1.0, %v1231_v36  ;;  %v1441_v54 = vand.u32 2147483647, %v1427_v42  ;;  %v1218_v49 = vsub.f32 %v1204_v43, %v4915_v23  ;;  %v1089_v45 = vadd.f32 %v1075_v0, %v5005_v60 }
  0xf3   : > { %v1428_v47 = vsub.f32 %v1414_v34, %v4915_v23  ;;  %v1105_v8 = vmul.f32 0.5, %v5014_v56  ;;  %v1538_v4 = vmul.f32 0.5, %v1524_v50  ;;  %v1090_v5 = vadd.f32 %v1076_v55, %v5007_v61 }
  0xf4   : > { %v1259_v38 = vmax.f32 %v1245_v14, 0.0  ;;  %v1455_v58 = vsub.f32 1.0, %v1441_v54  ;;  %v1232_v37 = vand.u32 2147483647, %v1218_v49  ;;  %v1132_v53 = vadd.f32 %v5121_v39, %v1089_v45 }
  0xf5   : > { %v1442_v12 = vand.u32 2147483647, %v1428_v47  ;;  %v1345_v2 = vadd.f32 %v5123_v62, %v1089_v45  ;;  %4072 = vmatprep.mubr.msk.f32.mxu0 %vm1546_vm5, %v1538_v4  ;;  %v1119_v60 = vmul.f32 0.5, %v1105_v8  ;;  %v1332_v56 = vmul.f32 1.5, %v1105_v8 }
  0xf6   : > { %v1301_v3 = vmul.f32 %v3780_v27, %v1259_v38  ;;  %v1469_v20 = vmax.f32 %v1455_v58, 0.0  ;;  %v1246_v11 = vsub.f32 1.0, %v1232_v37  ;;  %vm1146_vm13 = vcmp.ge.f32.partialorder %v1132_v53, -1.0 }
  0xf7   : > { %v1456_v46 = vsub.f32 1.0, %v1442_v12  ;;  %vm1161_vm14 = vcmp.le.f32.partialorder %v1132_v53, %v4954_v40  ;;  %v1190_v39 = vmax.f32 %v1132_v53, 0.0  ;;  %vm1359_vm0 = vcmp.ge.f32.partialorder %v1345_v2, -1.0 }
  0xf8   : > { %v1511_v61 = vmul.f32 %v3794_v28, %v1469_v20  ;;  %vm5169_vm15 = vmand %vm1146_vm13, %vm1161_vm14  ;;  %vm1373_vm1 = vcmp.le.f32.partialorder %v1345_v2, %v4954_v40  ;;  %v1260_v62 = vmax.f32 %v1246_v11, 0.0  ;;  %v1401_v19 = vmax.f32 %v1345_v2, 0.0 }
  0xf9   : > { %v1470_v18 = vmax.f32 %v1456_v46, 0.0  ;;  %vm1387_vm2 = vmand %vm1359_vm0, %vm1373_vm1  ;;  %v5176_v51 = vstv %s3815_s0  ;;  %v1205_v25 = vmin.f32 %v4995_v52, %v1190_v39  ;;  %v1133_v21 = vadd.f32 %v1119_v60, %v1090_v5 }
  0xfa   : > { %v1525_v63 = vadd.f32 %v1511_v61, %v1301_v3  ;;  %v1106_v9 = vmul.f32 0.5, %v4997_v59  ;;  %v1302_v22 = vmul.f32 %v3781_v17, %v1260_v62  ;;  %v1415_v32 = vmin.f32 %v4995_v52, %v1401_v19 }
  0xfb   : > { %v1512_v27 = vmul.f32 %v3795_v35, %v1470_v18  ;;  %v1346_v16 = vadd.f32 %v1332_v56, %v1090_v5  ;;  %v1219_v28 = vsub.f32 %v1205_v25, %v4915_v23  ;;  %v3782_v29 = vsel %vm5169_vm15, 1.0, %v4571_v10 }
  0xfc   : > { %v1539_v33 = vmul.f32 0.5, %v1525_v63  ;;  %v3796_v15 = vsel %vm1387_vm2, 1.0, %v4571_v10  ;;  %v1429_v30 = vsub.f32 %v1415_v32, %v4915_v23  ;;  %vm1147_vm3 = vcmp.ge.f32.partialorder %v1133_v21, -1.0 }
  0xfd   : > { %v1526_v44 = vadd.f32 %v1512_v27, %v1302_v22  ;;  %v1191_v41 = vmax.f32 %v1133_v21, 0.0  ;;  %v1233_v31 = vand.u32 2147483647, %v1219_v28  ;;  %vm1162_vm4 = vcmp.le.f32.partialorder %v1133_v21, %v4954_v40 }
  0xfe   : > { %4073 = vmatmul.mubr.msk.f32.gmra.mrb[6].mxu0 %vm1546_vm5, %v1539_v33  ;;  %vm1360_vm6 = vcmp.ge.f32.partialorder %v1346_v16, -1.0  ;;  %v1402_v36 = vmax.f32 %v1346_v16, 0.0  ;;  %v1443_v17 = vand.u32 2147483647, %v1429_v30  ;;  %v1091_v34 = vadd.f32 %v5017_v6, %v4987_v13  ;;  %vm1176_vm8 = vmand %vm1147_vm3, %vm1162_vm4 }
  0xff   : > { %v1540_v42 = vmul.f32 0.5, %v1526_v44  ;;  %v1206_v43 = vmin.f32 %v4995_v52, %v1191_v41  ;;  %v1247_v35 = vsub.f32 1.0, %v1233_v31  ;;  %vm1374_vm7 = vcmp.le.f32.partialorder %v1346_v16, %v4954_v40 }
 0x100   : > { %v1416_v0 = vmin.f32 %v4995_v52, %v1402_v36  ;;  %v1120_v50 = vmul.f32 0.5, %v1106_v9  ;;  %v1457_v14 = vsub.f32 1.0, %v1443_v17  ;;  %v1333_v55 = vmul.f32 1.5, %v1106_v9  ;;  %vm1388_vm9 = vmand %vm1360_vm6, %vm1374_vm7 }
 0x101   : > { %4075 = vmatprep.mubr.msk.f32.mxu0 %vm1546_vm5, %v1540_v42  ;;  %v1220_v54 = vsub.f32 %v1206_v43, %v4915_v23  ;;  %v1092_v49 = vadd.f32 %v5020_v7, %v4987_v13  ;;  %v1261_v6 = vmax.f32 %v1247_v35, 0.0  ;;  %v1079_v8 = vmul.f32 %v4993_v48, %v4997_v59 }
 0x102   : > { %v1430_v47 = vsub.f32 %v1416_v0, %v4915_v23  ;;  %v1134_v45 = vadd.f32 %v1120_v50, %v1091_v34  ;;  %v1471_v4 = vmax.f32 %v1457_v14, 0.0  ;;  %v1347_v58 = vadd.f32 %v1333_v55, %v1091_v34 }
 0x103   : > { %v1234_v38 = vand.u32 2147483647, %v1220_v54  ;;  %v1135_v5 = vadd.f32 %v1120_v50, %v1092_v49  ;;  %v1303_v37 = vmul.f32 %v3782_v29, %v1261_v6  ;;  %v3783_v12 = vsel %vm1176_vm8, 1.0, %v4571_v10 }
 0x104   : > { %v1444_v7 = vand.u32 2147483647, %v1430_v47  ;;  %vm1148_vm10 = vcmp.ge.f32.partialorder %v1134_v45, -1.0  ;;  %v1513_v53 = vmul.f32 %v3796_v15, %v1471_v4  ;;  %vm1163_vm11 = vcmp.le.f32.partialorder %v1134_v45, %v4954_v40 }
 0x105   : > { %v1248_v2 = vsub.f32 1.0, %v1234_v38  ;;  %v1192_v48 = vmax.f32 %v1134_v45, 0.0  ;;  %vm1361_vm12 = vcmp.ge.f32.partialorder %v1347_v58, -1.0  ;;  %vm1375_vm13 = vcmp.le.f32.partialorder %v1347_v58, %v4954_v40  ;;  %vm1177_vm14 = vmand %vm1148_vm10, %vm1163_vm11 }
 0x106   : > { %v1458_v59 = vsub.f32 1.0, %v1444_v7  ;;  %v1403_v3 = vmax.f32 %v1347_v58, 0.0  ;;  %v1527_v20 = vadd.f32 %v1513_v53, %v1303_v37  ;;  %v3797_v56 = vsel %vm1388_vm9, 1.0, %v4571_v10  ;;  %vm1389_vm0 = vmand %vm1361_vm12, %vm1375_vm13 }
 0x107   : > { %v1262_v60 = vmax.f32 %v1248_v2, 0.0  ;;  %v1207_v11 = vmin.f32 %v4995_v52, %v1192_v48  ;;  %vm1149_vm15 = vcmp.ge.f32.partialorder %v1135_v5, -1.0  ;;  %v1724_v57 = vstv %s339_s29  ;;  %s4574_s29 = smov 112  }
 0x108   : > { %v1472_v46 = vmax.f32 %v1458_v59, 0.0  ;;  %v1417_v61 = vmin.f32 %v4995_v52, %v1403_v3  ;;  %v1541_v39 = vmul.f32 0.5, %v1527_v20  ;;  %v1193_v19 = vmax.f32 %v1135_v5, 0.0 }
 0x109   : > { %v1304_v62 = vmul.f32 %v3783_v12, %v1262_v60  ;;  %v1221_v18 = vsub.f32 %v1207_v11, %v4915_v23  ;;  %vm1164_vm1 = vcmp.le.f32.partialorder %v1135_v5, %v4954_v40  ;;  %v1348_v21 = vadd.f32 %v1333_v55, %v1092_v49 }
 0x10a   : > { %v1514_v63 = vmul.f32 %v3797_v56, %v1472_v46  ;;  %v1431_v25 = vsub.f32 %v1417_v61, %v4915_v23  ;;  %4076 = vmatmul.mubr.msk.f32.gmra.mrb[8].mxu0 %vm1546_vm5, %v1541_v39  ;;  %v3784_v22 = vsel %vm1177_vm14, 1.0, %v4571_v10  ;;  %v1208_v27 = vmin.f32 %v4995_v52, %v1193_v19  ;;  %vm1178_vm2 = vmand %vm1149_vm15, %vm1164_vm1 }
 0x10b   : > { %v1235_v9 = vand.u32 2147483647, %v1221_v18  ;;  %v1093_v32 = vadd.f32 %v1079_v8, %v4987_v13  ;;  %v3798_v28 = vsel %vm1389_vm0, 1.0, %v4571_v10  ;;  %v1725_v29 = vmul.f32 %v1724_v57, %v4915_v23 }
 0x10c   : > { %v1528_v16 = vadd.f32 %v1514_v63, %v1304_v62  ;;  %v1445_v33 = vand.u32 2147483647, %v1431_v25  ;;  %v1222_v44 = vsub.f32 %v1208_v27, %v4915_v23  ;;  %v1404_v30 = vmax.f32 %v1348_v21, 0.0 }
 0x10d   : > { %v1249_v15 = vsub.f32 1.0, %v1235_v9  ;;  %v1136_v41 = vadd.f32 %v1120_v50, %v1093_v32  ;;  %vm1362_vm3 = vcmp.ge.f32.partialorder %v1348_v21, -1.0  ;;  %v1349_v13 = vadd.f32 %v1333_v55, %v1093_v32 }
 0x10e   : > { %v1542_v31 = vmul.f32 0.5, %v1528_v16  ;;  %v1459_v36 = vsub.f32 1.0, %v1445_v33  ;;  %v1236_v17 = vand.u32 2147483647, %v1222_v44  ;;  %vm1376_vm4 = vcmp.le.f32.partialorder %v1348_v21, %v4954_v40 }
 0x10f   : > { %v1263_v42 = vmax.f32 %v1249_v15, 0.0  ;;  %v1418_v43 = vmin.f32 %v4995_v52, %v1404_v30  ;;  %v3785_v35 = vsel %vm1178_vm2, 1.0, %v4571_v10  ;;  %vm1150_vm6 = vcmp.ge.f32.partialorder %v1136_v41, -1.0  ;;  %vm1390_vm8 = vmand %vm1362_vm3, %vm1376_vm4 }
 0x110   : > { %4078 = vmatprep.mubr.msk.f32.mxu0 %vm1546_vm5, %v1542_v31  ;;  %v1473_v34 = vmax.f32 %v1459_v36, 0.0  ;;  %v1194_v0 = vmax.f32 %v1136_v41, 0.0  ;;  %v1250_v14 = vsub.f32 1.0, %v1236_v17  ;;  %vm1165_vm7 = vcmp.le.f32.partialorder %v1136_v41, %v4954_v40 }
 0x111   : > { %v1305_v50 = vmul.f32 %v3784_v22, %v1263_v42  ;;  %v1432_v54 = vsub.f32 %v1418_v43, %v4915_v23  ;;  %vm1363_vm9 = vcmp.ge.f32.partialorder %v1349_v13, -1.0  ;;  %v1405_v6 = vmax.f32 %v1349_v13, 0.0  ;;  %vm1179_vm11 = vmand %vm1150_vm6, %vm1165_vm7 }
 0x112   : > { %v1515_v55 = vmul.f32 %v3798_v28, %v1473_v34  ;;  %v1209_v49 = vmin.f32 %v4995_v52, %v1194_v0  ;;  %v1264_v47 = vmax.f32 %v1250_v14, 0.0  ;;  %vm1377_vm10 = vcmp.le.f32.partialorder %v1349_v13, %v4954_v40 }
 0x113   : > { %v1446_v45 = vand.u32 2147483647, %v1432_v54  ;;  %v1727_v8 = vadd.f32 %v1726_v1, %v1725_v29  ;;  %v1419_v58 = vmin.f32 %v4995_v52, %v1405_v6  ;;  %v1732_v5 = vstv %s1731_s20  ;;  %vm1391_vm12 = vmand %vm1363_vm9, %vm1377_vm10  ;;  %s371_s20 = sadd.s32 2, %s4871_s17 }
 0x114   : > { %v1529_v4 = vadd.f32 %v1515_v55, %v1305_v50  ;;  %v1223_v38 = vsub.f32 %v1209_v49, %v4915_v23  ;;  %v3799_v12 = vsel %vm1390_vm8, 1.0, %v4571_v10  ;;  %v1757_v53 = vstv %s1756_s25  ;;  %s366_s25 = sld [smem:[#allocation5 + %s4871_s17]] }
 0x115   : > { %v1460_v37 = vsub.f32 1.0, %v1446_v45  ;;  %v1733_v7 = vadd.f32 %v1732_v5, %v1727_v8  ;;  %v1433_v1 = vsub.f32 %v1419_v58, %v4915_v23  ;;  %v1758_v59 = vadd.f32 %v1757_v53, %v1727_v8  ;;  %s372_s15 = sld [smem:[#allocation5 + %s371_s20]] }
 0x116   : > { %v1543_v2 = vmul.f32 0.5, %v1529_v4  ;;  %v1237_v48 = vand.u32 2147483647, %v1223_v38  ;;  %v1306_v3 = vmul.f32 %v3785_v35, %v1264_v47  ;;  %v5257_v52 = vstv %s5138_s9  ;;  %s344_s9 = smul.f32 %s343_s23, %s4864_s30 }
 0x117   : > { %v1474_v20 = vmax.f32 %v1460_v37, 0.0  ;;  %v1739_v60 = vmax.f32 %v1733_v7, 0.0  ;;  %v3786_v40 = vsel %vm1179_vm11, 1.0, %v4571_v10  ;;  %v1447_v11 = vand.u32 2147483647, %v1433_v1 }
 0x118   : > { %4079 = vmatmul.mubr.msk.f32.gmra.mrb[10].mxu0 %vm1546_vm5, %v1543_v2  ;;  %v1251_v56 = vsub.f32 1.0, %v1237_v48  ;;  %v3800_v61 = vsel %vm1391_vm12, 1.0, %v4571_v10  ;;  %v1762_v39 = vmax.f32 %v1758_v59, 0.0  ;;  %vm1734_vm13 = vcmp.ge.f32.partialorder %v1733_v7, -1.0  ;;  %s354_s18 = ssub.f32 %s350_s11, %s344_s9 }
 0x119   : > { %v1516_v46 = vmul.f32 %v3799_v12, %v1474_v20  ;;  %v1741_v57 = vmin.f32 %v5176_v51, %v1739_v60  ;;  %v1461_v18 = vsub.f32 1.0, %v1447_v11  ;;  %vm1736_vm14 = vcmp.le.f32.partialorder %v1733_v7, %v5257_v52 }
 0x11a   : > { %v1265_v62 = vmax.f32 %v1251_v56, 0.0  ;;  %v1763_v21 = vmin.f32 %v5176_v51, %v1762_v39  ;;  %vm1759_vm15 = vcmp.ge.f32.partialorder %v1758_v59, -1.0  ;;  %vm1760_vm0 = vcmp.le.f32.partialorder %v1758_v59, %v5257_v52  ;;  %vm1737_vm1 = vmand %vm1734_vm13, %vm1736_vm14  ;;  %s355_s10 = smax.f32 %s4572_s8, %s354_s18  ;;  %s367_s24 = smul.f32 %s366_s25, %s4864_s30 }
 0x11b   : > { %v1530_v19 = vadd.f32 %v1516_v46, %v1306_v3  ;;  %v1742_v63 = vsub.f32 %v1741_v57, %v4918_v24  ;;  %v1743_v25 = vsub.f32 %v1741_v57, %v4926_v26  ;;  %v1475_v22 = vmax.f32 %v1461_v18, 0.0  ;;  %vm1761_vm2 = vmand %vm1759_vm15, %vm1760_vm0  ;;  %s363_s0 = smul.f32 0.035714287, %s355_s10 }
 0x11c   : > { %v1307_v9 = vmul.f32 %v3786_v40, %v1265_v62  ;;  %v1764_v33 = vsub.f32 %v1763_v21, %v4918_v24  ;;  %v1765_v29 = vsub.f32 %v1763_v21, %v4926_v26  ;;  %v3816_v31 = vsel %vm1737_vm1, 1.0, %v4571_v10  ;;  %s373_s23 = smul.f32 %s372_s15, %s4864_s30 }
 0x11d   : > { %v1544_v27 = vmul.f32 0.5, %v1530_v19  ;;  %v1744_v32 = vand.u32 2147483647, %v1742_v63  ;;  %v1745_v16 = vand.u32 2147483647, %v1743_v25  ;;  %v1517_v28 = vmul.f32 %v3800_v61, %v1475_v22  ;;  %s2204_s12 = smul.f32 0.5, %s363_s0 }
 0x11e   : > { %v1766_v30 = vand.u32 2147483647, %v1764_v33  ;;  %v1767_v36 = vand.u32 2147483647, %v1765_v29  ;;  %v3817_v35 = vsel %vm1761_vm2, 1.0, %v4571_v10  ;;  %v2198_v38 = vstv %s363_s0  ;;  %s377_s17 = ssub.f32 %s373_s23, %s367_s24 }
 0x11f   : > { %4081 = vmatprep.mubr.msk.f32.mxu0 %vm1546_vm5, %v1544_v27  ;;  %v1746_v15 = vsub.f32 1.0, %v1744_v32  ;;  %v1747_v44 = vsub.f32 1.0, %v1745_v16  ;;  %v1531_v41 = vadd.f32 %v1517_v28, %v1307_v9  ;;  %v2199_v58 = vmul.f32 %v2198_v38, %v4915_v23  ;;  %s2205_s28 = smul.f32 0.5, %s2204_s12 }
 0x120   : > { %v1768_v17 = vsub.f32 1.0, %v1766_v30  ;;  %v1769_v34 = vsub.f32 1.0, %v1767_v36  ;;  %v2200_v5 = vstv %s344_s9  ;;  %s2227_s19 = smul.f32 1.5, %s2204_s12  ;;  %vm2254_vm10 = vcmask 1043456   ;;  %s378_s11 = smax.f32 %s4572_s8, %s377_s17 }
 0x121   : > { %v1748_v13 = vmax.f32 %v1746_v15, 0.0  ;;  %v1749_v42 = vmax.f32 %v1747_v44, 0.0  ;;  %v1545_v43 = vmul.f32 0.5, %v1531_v41  ;;  %v2201_v37 = vadd.f32 %v2200_v5, %v2199_v58  ;;  %s386_s9 = smul.f32 0.035714287, %s378_s11  ;;  %s394_s12 = sadd.s32 2, %s4907_s13 }
 0x122   : > { %v1770_v50 = vmax.f32 %v1768_v17, 0.0  ;;  %v1771_v54 = vmax.f32 %v1769_v34, 0.0  ;;  %v2206_v12 = vstv %s2205_s28  ;;  %v2228_v53 = vstv %s2227_s19  ;;  %s395_s28 = sld [smem:[#allocation5 + %s394_s12]] }
 0x123   : > { %v1752_v0 = vmul.f32 %v3816_v31, %v1748_v13  ;;  %4082 = vmatmul.mubr.msk.f32.gmra.mrb[12].mxu0 %vm1546_vm5, %v1545_v43  ;;  %v1753_v14 = vmul.f32 %v3816_v31, %v1749_v42  ;;  %v2207_v7 = vadd.f32 %v2206_v12, %v2201_v37  ;;  %v2229_v2 = vadd.f32 %v2228_v53, %v2201_v37  ;;  %s2681_s18 = smul.f32 0.5, %s386_s9  ;;  %s389_s19 = sld [smem:[#allocation5 + %s4907_s13]] }
 0x124   : > { %v1774_v55 = vmul.f32 %v3817_v35, %v1770_v50  ;;  %v1775_v49 = vmul.f32 %v3817_v35, %v1771_v54  ;;  %v2675_v54 = vstv %s386_s9 }
 0x125   : > { %v2211_v48 = vmax.f32 %v2207_v7, 0.0  ;;  %v2233_v1 = vmax.f32 %v2229_v2, 0.0  ;;  %vm2208_vm3 = vcmp.ge.f32.partialorder %v2207_v7, -1.0  ;;  %vm2209_vm4 = vcmp.le.f32.partialorder %v2207_v7, %v5257_v52  ;;  %s2682_s10 = smul.f32 0.5, %s2681_s18 }
 0x126   : > { %v1776_v6 = vadd.f32 %v1774_v55, %v1752_v0  ;;  %v1777_v47 = vadd.f32 %v1775_v49, %v1753_v14  ;;  %vm2230_vm6 = vcmp.ge.f32.partialorder %v2229_v2, -1.0  ;;  %vm2231_vm7 = vcmp.le.f32.partialorder %v2229_v2, %v5257_v52  ;;  %vm2210_vm8 = vmand %vm2208_vm3, %vm2209_vm4  ;;  %s2704_s0 = smul.f32 1.5, %s2681_s18 }
 0x127   : > { %v2212_v59 = vmin.f32 %v5176_v51, %v2211_v48  ;;  %v2234_v3 = vmin.f32 %v5176_v51, %v2233_v1  ;;  %v3834_v21 = vsel %vm2210_vm8, 1.0, %v4571_v10  ;;  %vm2232_vm9 = vmand %vm2230_vm6, %vm2231_vm7  ;;  %v2676_v55 = vmul.f32 %v2675_v54, %v4915_v23 }
 0x128   : > { %v1778_v45 = vmul.f32 0.5, %v1776_v6  ;;  %v1779_v8 = vmul.f32 0.5, %v1777_v47  ;;  %v3835_v16 = vsel %vm2232_vm9, 1.0, %v4571_v10  ;;  %v2677_v49 = vstv %s367_s24 }
 0x129   : > { %v2213_v20 = vsub.f32 %v2212_v59, %v4918_v24  ;;  %v2214_v60 = vsub.f32 %v2212_v59, %v4926_v26  ;;  %v2235_v56 = vsub.f32 %v2234_v3, %v4918_v24  ;;  %v2236_v40 = vsub.f32 %v2234_v3, %v4926_v26  ;;  %s390_s20 = smul.f32 %s389_s19, %s4864_s30 }
 0x12a   : > { %v5276_v4 = vpack.c.bf16 %v1779_v8, %v1778_v45  ;;  %v2678_v6 = vadd.f32 %v2677_v49, %v2676_v55  ;;  %v2683_v45 = vstv %s2682_s10  ;;  %v2705_v58 = vstv %s2704_s0 }
 0x12b   : > { %v2215_v11 = vand.u32 2147483647, %v2213_v20  ;;  %v2216_v46 = vand.u32 2147483647, %v2214_v60  ;;  %v2237_v61 = vand.u32 2147483647, %v2235_v56 }
 0x12c   : > { %4249 = vmatprep.subr.bf16.mxu1 %v5276_v4  ;;  %v2238_v57 = vand.u32 2147483647, %v2236_v40  ;;  %v2684_v38 = vadd.f32 %v2683_v45, %v2678_v6  ;;  %v2706_v37 = vadd.f32 %v2705_v58, %v2678_v6  ;;  %vm1877_vm8 = vcmask 228352  }
 0x12d   : > { %4251 = vmatpush3.bf16.msra.mxu1 %v5276_v4  ;;  %v2217_v39 = vsub.f32 1.0, %v2215_v11  ;;  %v2218_v62 = vsub.f32 1.0, %v2216_v46  ;;  %v2239_v63 = vsub.f32 1.0, %v2237_v61  ;;  %vm1881_vm9 = vcmask 224256  }
 0x12e   : > { %4253 = vmatprep.subr.bf16.mxu1 %v5276_v4  ;;  %v2240_v25 = vsub.f32 1.0, %v2238_v57  ;;  %v2688_v12 = vmax.f32 %v2684_v38, 0.0  ;;  %v2710_v53 = vmax.f32 %v2706_v37, 0.0  ;;  %vm2685_vm11 = vcmp.ge.f32.partialorder %v2684_v38, -1.0 }
 0x12f   : > { %v2219_v18 = vmax.f32 %v2217_v39, 0.0  ;;  %v2220_v19 = vmax.f32 %v2218_v62, 0.0  ;;  %v2241_v27 = vmax.f32 %v2239_v63, 0.0  ;;  %vm2686_vm12 = vcmp.le.f32.partialorder %v2684_v38, %v5257_v52 }
 0x130   : > { %v2242_v32 = vmax.f32 %v2240_v25, 0.0  ;;  %v2689_v2 = vmin.f32 %v5176_v51, %v2688_v12  ;;  %v2711_v48 = vmin.f32 %v5176_v51, %v2710_v53  ;;  %vm2707_vm13 = vcmp.ge.f32.partialorder %v2706_v37, -1.0  ;;  %vm2687_vm15 = vmand %vm2685_vm11, %vm2686_vm12 }
 0x131   : > { %v2223_v9 = vmul.f32 %v3834_v21, %v2219_v18  ;;  %v2224_v22 = vmul.f32 %v3834_v21, %v2220_v19  ;;  %v2245_v33 = vmul.f32 %v3835_v16, %v2241_v27  ;;  %vm2708_vm14 = vcmp.le.f32.partialorder %v2706_v37, %v5257_v52 }
 0x132   : > { %v2246_v28 = vmul.f32 %v3835_v16, %v2242_v32  ;;  %v2690_v1 = vsub.f32 %v2689_v2, %v4918_v24  ;;  %v2691_v59 = vsub.f32 %v2689_v2, %v4926_v26  ;;  %v2712_v3 = vsub.f32 %v2711_v48, %v4918_v24  ;;  %vm2709_vm0 = vmand %vm2707_vm13, %vm2708_vm14 }
 0x133   : > { %v2247_v29 = vadd.f32 %v2245_v33, %v2223_v9  ;;  %v2713_v20 = vsub.f32 %v2711_v48, %v4926_v26  ;;  %v3868_v57 = vsel %vm2687_vm15, 1.0, %v4571_v10  ;;  %v3869_v25 = vsel %vm2709_vm0, 1.0, %v4571_v10 }
 0x134   : > { %v2248_v15 = vadd.f32 %v2246_v28, %v2224_v22  ;;  %v2692_v60 = vand.u32 2147483647, %v2690_v1  ;;  %v2693_v56 = vand.u32 2147483647, %v2691_v59  ;;  %v2714_v40 = vand.u32 2147483647, %v2712_v3 }
 0x135   : > { %v2249_v44 = vmul.f32 0.5, %v2247_v29  ;;  %v2715_v11 = vand.u32 2147483647, %v2713_v20  ;;  %v3147_v37 = vstv %s390_s20 }
 0x136   : > { %v2250_v30 = vmul.f32 0.5, %v2248_v15  ;;  %v2694_v46 = vsub.f32 1.0, %v2692_v60  ;;  %v2695_v61 = vsub.f32 1.0, %v2693_v56  ;;  %v2716_v39 = vsub.f32 1.0, %v2714_v40 }
 0x137   : > { %v2717_v62 = vsub.f32 1.0, %v2715_v11 }
 0x138   : > { %v5295_v41 = vpack.c.bf16 %v2250_v30, %v2249_v44  ;;  %v2696_v19 = vmax.f32 %v2694_v46, 0.0  ;;  %v2697_v63 = vmax.f32 %v2695_v61, 0.0  ;;  %v2718_v9 = vmax.f32 %v2716_v39, 0.0 }
 0x139   : > { %v2719_v22 = vmax.f32 %v2717_v62, 0.0 }
 0x13a   : > { %4265 = vmatprep.subr.bf16.mxu0 %v5295_v41  ;;  %v2700_v27 = vmul.f32 %v3868_v57, %v2696_v19  ;;  %v2701_v32 = vmul.f32 %v3868_v57, %v2697_v63  ;;  %v2722_v16 = vmul.f32 %v3869_v25, %v2718_v9 }
 0x13b   : > { %4267 = vmatpush3.bf16.msra.mxu0 %v5295_v41  ;;  %v2723_v33 = vmul.f32 %v3869_v25, %v2719_v22 }
 0x13c   : > { %4273 = vmatprep.subr.bf16.mxu0 %v5295_v41  ;;  %v2724_v28 = vadd.f32 %v2722_v16, %v2700_v27 }
 0x13d   : > { %v2725_v29 = vadd.f32 %v2723_v33, %v2701_v32 }
 0x13e   : > { %v2726_v15 = vmul.f32 0.5, %v2724_v28 }
 0x13f   : > { %v2727_v44 = vmul.f32 0.5, %v2725_v29 }
 0x141   : > { %v5370_v30 = vpack.c.bf16 %v2727_v44, %v2726_v15 }
 0x1a7   : > { %v4065_v31 = vpop.f32.mrb[0].mxu0 }
 0x1a8   : > { %1990 = vrot.lane.b32.xlu1 %v4065_v31, %s4573_s27  ;;  %1885 = vrot.lane.b32.xlu0 %v4065_v31, %s4574_s29  ;;  %v1655_v36 = vpop.f32.mrb[1].mxu0 }
 0x1a9   : > { %4088 = vmatprep.mubr.msk.f32.mxu1 %vm1546_vm5, %v1655_v36 }
 0x1aa   : > { %4089 = vmatmul.mubr.msk.f32.vlgmr.msra.gmra.mrb[0].mxu1 %vm1546_vm5, %v4065_v31 }
 0x1ab   : > { %4255 = vmatpush3.bf16.msra.mxu1 %v5276_v4 }
 0x1ac   : > { %2095 = vrot.lane.b32.xlu1 %v4065_v31, %s4575_s16  ;;  %1883 = vrot.lane.b32.xlu0 %v1655_v36, %s4574_s29 }
 0x1ad   : > { %4257 = vmatprep.subr.bf16.mxu1 %v5276_v4 }
 0x1b0   : > { %1988 = vrot.lane.b32.xlu0 %v1655_v36, %s4573_s27 }
 0x1b4   : > { %v4068_v13 = vpop.f32.mrb[2].mxu0  ;;  %2093 = vrot.lane.b32.xlu0 %v1655_v36, %s4575_s16 }
 0x1b5   : > { %v1665_v42 = vpop.f32.mrb[3].mxu0  ;;  %1889 = vrot.lane.b32.xlu1 %v4068_v13, %s4574_s29  ;;  %v2255_v43 = vrot.slane %v4068_v13, 4 }
 0x1b6   : > { %4091 = vmatprep.mubr.msk.f32.mxu1 %vm1546_vm5, %v1665_v42 }
 0x1b7   : > { %4092 = vmatmul.mubr.msk.f32.gmra.mrb[2].mxu1 %vm1546_vm5, %v4068_v13 }
 0x1b8   : > { %1992 = vrot.lane.b32.xlu0 %v1665_v42, %s4573_s27 }
 0x1b9   : > { %1994 = vrot.lane.b32.xlu1 %v4068_v13, %s4573_s27 }
 0x1bc   : > { %2097 = vrot.lane.b32.xlu0 %v1665_v42, %s4575_s16 }
 0x1bd   : > { %2099 = vrot.lane.b32.xlu1 %v4068_v13, %s4575_s16 }
 0x1c1   : > { %v4071_v17 = vpop.f32.mrb[4].mxu0  ;;  %1887 = vrot.lane.b32.xlu1 %v1665_v42, %s4574_s29 }
 0x1c2   : > { %v2258_v34 = vrot.slane %v4071_v17, 4  ;;  %v1675_v35 = vpop.f32.mrb[5].mxu0 }
 0x1c3   : > { %v2256_v0 = vrot.slane %v1675_v35, 4 }
 0x1c5   : > { %v2259_v50 = vsel %vm2254_vm10, %v2256_v0, %v2258_v34  ;;  %v2257_v14 = vsel %vm2254_vm10, %v2255_v43, %v2256_v0 }
 0x1c6   : > { %4128 = vmatprep.mubr.msk.f32.mxu0 %vm1546_vm5, %v2257_v14  ;;  %2362 = vrot.lane.b32.xlu1 %v2259_v50, %s4574_s29 }
 0x1c7   : > { %4129 = vmatmul.mubr.msk.f32.vlgmr.msra.gmra.mrb[14].mxu0 %vm1546_vm5, %v2259_v50  ;;  %2360 = vrot.lane.b32.xlu0 %v2257_v14, %s4574_s29 }
 0x1c8   : > { %4275 = vmatpush3.bf16.msra.mxu0 %v5295_v41 }
 0x1c9   : > { %4281 = vmatprep.subr.bf16.mxu0 %v5370_v30 }
 0x1ca   : > { %2570 = vrot.lane.b32.xlu1 %v2257_v14, %s4575_s16 }
 0x1cb   : > { %2465 = vrot.lane.b32.xlu0 %v2257_v14, %s4573_s27 }
 0x1ce   : > { %2572 = vrot.lane.b32.xlu1 %v2259_v50, %s4575_s16 }
 0x1cf   : > { %2467 = vrot.lane.b32.xlu0 %v2259_v50, %s4573_s27 }
 0x1d1   : > { %v5335_v47 = vpop.f32.mrb[6].mxu0 }
 0x1d2   : > { %v1685_v8 = vpop.f32.mrb[7].mxu0  ;;  %3040 = vrot.lane.b32.xlu1 %v5335_v47, %s4575_s16 }
 0x1d3   : > { %v2260_v5 = vrot.slane %v1685_v8, 4  ;;  %2830 = vrot.lane.b32.xlu0 %v5335_v47, %s4574_s29 }
 0x1d5   : > { %v2261_v7 = vsel %vm2254_vm10, %v2258_v34, %v2260_v5 }
 0x1d6   : > { %4131 = vmatprep.mubr.msk.f32.mxu0 %vm1546_vm5, %v2261_v7  ;;  %2366 = vrot.lane.b32.xlu1 %v2260_v5, %s4574_s29 }
 0x1d7   : > { %4132 = vmatmul.mubr.msk.f32.gmra.mrb[16].mxu0 %vm1546_vm5, %v2260_v5  ;;  %2935 = vrot.lane.b32.xlu0 %v5335_v47, %s4573_s27 }
 0x1da   : > { %2576 = vrot.lane.b32.xlu1 %v2260_v5, %s4575_s16 }
 0x1db   : > { %2471 = vrot.lane.b32.xlu0 %v2260_v5, %s4573_s27 }
 0x1dd   : > { %v5358_v18 = vpop.f32.mrb[8].mxu0 }
 0x1de   : > { %2574 = vrot.lane.b32.xlu1 %v2261_v7, %s4575_s16  ;;  %v5362_v21 = vpop.f32.mrb[9].mxu0 }
 0x1df   : > { %2364 = vrot.lane.b32.xlu0 %v2261_v7, %s4574_s29 }
 0x1e2   : > { %3044 = vrot.lane.b32.xlu1 %v5358_v18, %s4575_s16 }
 0x1e3   : > { %2469 = vrot.lane.b32.xlu0 %v2261_v7, %s4573_s27 }
 0x1e6   : > { %2832 = vrot.lane.b32.xlu1 %v5362_v21, %s4574_s29 }
 0x1e7   : > { %2834 = vrot.lane.b32.xlu0 %v5358_v18, %s4574_s29 }
 0x1ea   : > { %3042 = vrot.lane.b32.xlu1 %v5362_v21, %s4575_s16 }
 0x1eb   : > { %v4080_v31 = vpop.f32.mrb[10].mxu0  ;;  %2939 = vrot.lane.b32.xlu0 %v5358_v18, %s4573_s27 }
 0x1ec   : > { %v3202_v36 = vrot.slane %v4080_v31, 4  ;;  %v5379_v13 = vpop.f32.mrb[11].mxu0 }
 0x1ed   : > { %v3201_v42 = vrot.slane %v5379_v13, 4 }
 0x1ee   : > { %2836 = vrot.lane.b32.xlu1 %v5379_v13, %s4574_s29 }
 0x1ef   : > { %v5385_v17 = vsel %vm2254_vm10, %v3201_v42, %v3202_v36  ;;  %2937 = vrot.lane.b32.xlu0 %v5362_v21, %s4573_s27 }
 0x1f2   : > { %3046 = vrot.lane.b32.xlu1 %v5379_v13, %s4575_s16 }
 0x1f3   : > { %2941 = vrot.lane.b32.xlu0 %v5379_v13, %s4573_s27 }
 0x1f6   : > { %v4083_v43 = vpop.f32.mrb[12].mxu0  ;;  %3516 = vrot.lane.b32.xlu1 %v5385_v17, %s4575_s16 }
 0x1f7   : > { %v5395_v34 = vrot.slane %v4083_v43, 4  ;;  %v1715_v35 = vpop.f32.mrb[13].mxu0  ;;  %3306 = vrot.lane.b32.xlu0 %v5385_v17, %s4574_s29 }
 0x1f8   : > { %v3204_v0 = vrot.slane %v1715_v35, 4 }
 0x1fa   : > { %3312 = vrot.lane.b32.xlu1 %v5395_v34, %s4574_s29  ;;  %v5402_v50 = vsel %vm2254_vm10, %v3202_v36, %v3204_v0  ;;  %v5408_v14 = vsel %vm2254_vm10, %v3204_v0, %v5395_v34 }
 0x1fb   : > { %3411 = vrot.lane.b32.xlu0 %v5385_v17, %s4573_s27 }
 0x1fe   : > { %3308 = vrot.lane.b32.xlu1 %v5402_v50, %s4574_s29 }
 0x1ff   : > { %3310 = vrot.lane.b32.xlu0 %v5408_v14, %s4574_s29  ;;  %s396_s29 = smul.f32 %s395_s28, %s4864_s30 }
 0x201   : > { %s400_s25 = ssub.f32 %s396_s29, %s390_s20 }
 0x202   : > { %3518 = vrot.lane.b32.xlu1 %v5402_v50, %s4575_s16 }
 0x203   : > { %3413 = vrot.lane.b32.xlu0 %v5402_v50, %s4573_s27  ;;  %s401_s15 = smax.f32 %s4572_s8, %s400_s25  ;;  %s3752_s8 = sshll.u32 %s4659_s1, 2 }
 0x204   : > { %p306_p5 = scmp.lt.s32.totalorder %s3752_s8, 19 }
 0x206   : > { %3520 = vrot.lane.b32.xlu1 %v5408_v14, %s4575_s16  ;;  %s5707_s8 = smov (!%p306_p5, %s3752_s8), 19 }
 0x207   : > { %3415 = vrot.lane.b32.xlu0 %v5408_v14, %s4573_s27  ;;  %s4312_s1 = smul.u32 112, %s5707_s8 }
 0x209   : > { %s5525_s17 = scalar_lea.vmem %s5676_s7, %s4312_s1 }
 0x20a   : > { %3522 = vrot.lane.b32.xlu1 %v5395_v34, %s4575_s16 }
 0x20b   : > { %3417 = vrot.lane.b32.xlu0 %v5395_v34, %s4573_s27  ;;  %s409_s27 = smul.f32 0.035714287, %s401_s15 }
 0x20d   : > { %v3145_v8 = vstv %s409_s27  ;;  %s3151_s13 = smul.f32 0.5, %s409_s27 }
 0x20e   : > { %v3146_v5 = vmul.f32 %v3145_v8, %v4915_v23 }
 0x20f   : > { %s3152_s30 = smul.f32 0.5, %s3151_s13 }
 0x210   : > { %s3174_s16 = smul.f32 1.5, %s3151_s13  ;;  %v3148_v53 = vadd.f32 %v3147_v37, %v3146_v5 }
 0x211   : > { %v3153_v2 = vstv %s3152_s30 }
 0x212   : > { %v3175_v1 = vstv %s3174_s16  ;;  %v3154_v59 = vadd.f32 %v3153_v2, %v3148_v53 }
 0x213   : > { %v3176_v3 = vadd.f32 %v3175_v1, %v3148_v53 }
 0x214   : > { %v3158_v56 = vmax.f32 %v3154_v59, 0.0  ;;  %vm3155_vm1 = vcmp.ge.f32.partialorder %v3154_v59, -1.0  ;;  %vm3156_vm2 = vcmp.le.f32.partialorder %v3154_v59, %v5257_v52 }
 0x215   : > { %v3180_v23 = vmax.f32 %v3176_v3, 0.0  ;;  %vm3177_vm3 = vcmp.ge.f32.partialorder %v3176_v3, -1.0  ;;  %vm3178_vm4 = vcmp.le.f32.partialorder %v3176_v3, %v5257_v52  ;;  %vm3157_vm6 = vmand %vm3155_vm1, %vm3156_vm2 }
 0x216   : > { %v3159_v46 = vmin.f32 %v5176_v51, %v3158_v56  ;;  %vm3179_vm7 = vmand %vm3177_vm3, %vm3178_vm4  ;;  %v3902_v52 = vsel %vm3157_vm6, 1.0, %v4571_v10 }
 0x217   : > { %v3181_v61 = vmin.f32 %v5176_v51, %v3180_v23  ;;  %v3903_v35 = vsel %vm3179_vm7, 1.0, %v4571_v10 }
 0x218   : > { %v3160_v62 = vsub.f32 %v3159_v46, %v4918_v24  ;;  %v3161_v19 = vsub.f32 %v3159_v46, %v4926_v26 }
 0x219   : > { %v3182_v63 = vsub.f32 %v3181_v61, %v4918_v24 }
 0x21a   : > { %v1886_v54 = vpop.permute.xlu0 %1885  ;;  %v1991_v55 = vpop.permute.xlu1 %1990  ;;  %v3162_v9 = vand.u32 2147483647, %v3160_v62  ;;  %v3163_v22 = vand.u32 2147483647, %v3161_v19 }
 0x21b   : > { %v3184_v27 = vand.u32 2147483647, %v3182_v63 }
 0x21c   : > { %v3165_v33 = vsub.f32 1.0, %v3163_v22 }
 0x21d   : > { %v3186_v28 = vsub.f32 1.0, %v3184_v27 }
 0x21e   : > { %v1884_v49 = vpop.permute.xlu0 %1883  ;;  %v2096_v6 = vpop.permute.xlu1 %2095  ;;  %v3167_v36 = vmax.f32 %v3165_v33, 0.0 }
 0x21f   : > { %4098 = vmatprep.mubr.msk.f32.mxu1 %vm1546_vm5, %v1884_v49  ;;  %v3188_v42 = vmax.f32 %v3186_v28, 0.0 }
 0x220   : > { %4099 = vmatmul.mubr.msk.f32.vlgmr.msra.gmra.mrb[4].mxu1 %vm1546_vm5, %v1886_v54  ;;  %v3171_v49 = vmul.f32 %v3902_v52, %v3167_v36 }
 0x221   : > { %4259 = vmatpush3.bf16.msra.mxu1 %v5276_v4 }
 0x222   : > { %v1989_v45 = vpop.permute.xlu0 %1988  ;;  %4261 = vmatprep.subr.bf16.mxu1 %v5276_v4 }
 0x226   : > { %v2094_v58 = vpop.permute.xlu0 %2093 }
 0x227   : > { %v1890_v38 = vpop.permute.xlu1 %1889 }
 0x22a   : > { %v1993_v7 = vpop.permute.xlu0 %1992 }
 0x22b   : > { %v1995_v12 = vpop.permute.xlu1 %1994 }
 0x22e   : > { %v2098_v20 = vpop.permute.xlu0 %2097 }
 0x22f   : > { %v2100_v48 = vpop.permute.xlu1 %2099 }
 0x233   : > { %v1888_v60 = vpop.permute.xlu1 %1887 }
 0x234   : > { %4101 = vmatprep.mubr.msk.f32.mxu1 %vm1546_vm5, %v1888_v60 }
 0x235   : > { %4102 = vmatmul.mubr.msk.f32.gmra.mrb[6].mxu1 %vm1546_vm5, %v1890_v38 }
 0x236   : > { %4108 = vmatprep.mubr.msk.f32.mxu1 %vm1546_vm5, %v1989_v45 }
 0x238   : > { %v2363_v40 = vpop.permute.xlu1 %2362 }
 0x239   : > { %v2361_v11 = vpop.permute.xlu0 %2360  ;;  %4109 = vmatmul.mubr.msk.f32.vlgmr.msra.gmra.mrb[8].mxu1 %vm1546_vm5, %v1991_v55 }
 0x23a   : > { %4111 = vmatprep.mubr.msk.f32.mxu1 %vm1546_vm5, %v1993_v7  ;;  %4263 = vmatpush3.bf16.msra.mxu1 %v5276_v4  ;;  %v3183_v4 = vsub.f32 %v3181_v61, %v4926_v26  ;;  %v3164_v26 = vsub.f32 1.0, %v3162_v9 }
 0x23b   : > { %4269 = vmatprep.subr.bf16.mxu1 %v5295_v41 }
 0x23c   : > { %v2571_v57 = vpop.permute.xlu1 %2570  ;;  %v3185_v32 = vand.u32 2147483647, %v3183_v4  ;;  %v3166_v31 = vmax.f32 %v3164_v26, 0.0 }
 0x23d   : > { %v2466_v39 = vpop.permute.xlu0 %2465  ;;  %4112 = vmatmul.mubr.msk.f32.gmra.mrb[10].mxu1 %vm1546_vm5, %v1995_v12 }
 0x23e   : > { %4148 = vmatprep.mubr.msk.f32.mxu0 %vm1546_vm5, %v2466_v39  ;;  %4118 = vmatprep.mubr.msk.f32.mxu1 %vm1546_vm5, %v2094_v58  ;;  %v3187_v29 = vsub.f32 1.0, %v3185_v32  ;;  %v3170_v55 = vmul.f32 %v3902_v52, %v3166_v31 }
 0x240   : > { %v2573_v25 = vpop.permute.xlu1 %2572  ;;  %v3189_v43 = vmax.f32 %v3187_v29, 0.0 }
 0x241   : > { %v2468_v51 = vpop.permute.xlu0 %2467  ;;  %4119 = vmatmul.mubr.msk.f32.vlgmr.msra.gmra.mrb[12].mxu1 %vm1546_vm5, %v2096_v6  ;;  %v3192_v6 = vmul.f32 %v3903_v35, %v3188_v42 }
 0x242   : > { %4149 = vmatmul.mubr.msk.f32.vlgmr.msra.gmra.mrb[18].mxu0 %vm1546_vm5, %v2468_v51  ;;  %4121 = vmatprep.mubr.msk.f32.mxu1 %vm1546_vm5, %v2098_v20  ;;  %v3193_v45 = vmul.f32 %v3903_v35, %v3189_v43 }
 0x243   : > { %4271 = vmatpush3.bf16.msra.mxu1 %v5295_v41  ;;  %4283 = vmatpush3.bf16.msra.mxu0 %v5370_v30 }
 0x244   : > { %v5457_v16 = vpop.permute.xlu1 %3040  ;;  %4277 = vmatprep.subr.bf16.mxu1 %v5295_v41  ;;  %4289 = vmatprep.subr.bf16.mxu0 %v5370_v30  ;;  %v3195_v58 = vadd.f32 %v3193_v45, %v3171_v49 }
 0x245   : > { %v2831_v24 = vpop.permute.xlu0 %2830  ;;  %4122 = vmatmul.mubr.msk.f32.gmra.mrb[14].mxu1 %vm1546_vm5, %v2100_v48 }
 0x246   : > { %4138 = vmatprep.mubr.msk.f32.mxu1 %vm1546_vm5, %v2361_v11  ;;  %v3197_v12 = vmul.f32 0.5, %v3195_v58 }
 0x248   : > { %v2367_v15 = vpop.permute.xlu1 %2366 }
 0x249   : > { %v2936_v44 = vpop.permute.xlu0 %2935  ;;  %4139 = vmatmul.mubr.msk.f32.vlgmr.msra.gmra.mrb[16].mxu1 %vm1546_vm5, %v2363_v40 }
 0x24a   : > { %4279 = vmatpush3.bf16.msra.mxu1 %v5295_v41  ;;  %v3194_v41 = vadd.f32 %v3192_v6, %v3170_v55 }
 0x24b   : > { %4285 = vmatprep.subr.bf16.mxu1 %v5370_v30 }
 0x24c   : > { %v2577_v0 = vpop.permute.xlu1 %2576  ;;  %v3196_v10 = vmul.f32 0.5, %v3194_v41 }
 0x24d   : > { %v2472_v54 = vpop.permute.xlu0 %2471 }
 0x24e   : > { %v4296_v2 = vpack.c.bf16 %v3197_v12, %v3196_v10 }
 0x250   : > { %v2575_v8 = vpop.permute.xlu1 %2574 }
 0x251   : > { %v2365_v38 = vpop.permute.xlu0 %2364 }
 0x252   : > { %4141 = vmatprep.mubr.msk.f32.mxu1 %vm1546_vm5, %v2365_v38 }
 0x253   : > { %4142 = vmatmul.mubr.msk.f32.gmra.mrb[18].mxu1 %vm1546_vm5, %v2367_v15 }
 0x254   : > { %4158 = vmatprep.mubr.msk.f32.mxu1 %vm1546_vm5, %v2571_v57  ;;  %v3045_v5 = vpop.permute.xlu1 %3044 }
 0x255   : > { %v2470_v37 = vpop.permute.xlu0 %2469 }
 0x256   : > { %4151 = vmatprep.mubr.msk.f32.mxu0 %vm1546_vm5, %v2470_v37 }
 0x257   : > { %4152 = vmatmul.mubr.msk.f32.gmra.mrb[20].mxu0 %vm1546_vm5, %v2472_v54  ;;  %4159 = vmatmul.mubr.msk.f32.vlgmr.msra.gmra.mrb[20].mxu1 %vm1546_vm5, %v2573_v25 }
 0x258   : > { %4161 = vmatprep.mubr.msk.f32.mxu1 %vm1546_vm5, %v2575_v8  ;;  %4168 = vmatprep.mubr.msk.f32.mxu0 %vm1546_vm5, %v5335_v47  ;;  %v2833_v7 = vpop.permute.xlu1 %2832 }
 0x259   : > { %v2835_v53 = vpop.permute.xlu0 %2834  ;;  %4287 = vmatpush3.bf16.msra.mxu1 %v5370_v30 }
 0x25a   : > { %4293 = vmatprep.subr.bf16.mxu1 %v5370_v30 }
 0x25b   : > { %4162 = vmatmul.mubr.msk.f32.gmra.mrb[22].mxu1 %vm1546_vm5, %v2577_v0  ;;  %4169 = vmatmul.mubr.msk.f32.vlgmr.msra.gmra.mrb[22].mxu0 %vm1546_vm5, %v5362_v21 }
 0x25c   : > { %4171 = vmatprep.mubr.msk.f32.mxu0 %vm1546_vm5, %v5358_v18  ;;  %4178 = vmatprep.mubr.msk.f32.mxu1 %vm1546_vm5, %v2831_v24  ;;  %v3043_v48 = vpop.permute.xlu1 %3042 }
 0x25d   : > { %v2940_v1 = vpop.permute.xlu0 %2939  ;;  %4291 = vmatpush3.bf16.msra.mxu0 %v5370_v30 }
 0x25e   : > { %4297 = vmatprep.subr.bf16.mxu0 %v4296_v2 }
 0x25f   : > { %4172 = vmatmul.mubr.msk.f32.gmra.mrb[24].mxu0 %vm1546_vm5, %v5379_v13  ;;  %4179 = vmatmul.mubr.msk.f32.vlgmr.msra.gmra.mrb[24].mxu1 %vm1546_vm5, %v2833_v7 }
 0x260   : > { %4181 = vmatprep.mubr.msk.f32.mxu1 %vm1546_vm5, %v2835_v53  ;;  %4188 = vmatprep.mubr.msk.f32.mxu0 %vm1546_vm5, %v2936_v44  ;;  %v2837_v47 = vpop.permute.xlu1 %2836 }
 0x261   : > { %v2938_v21 = vpop.permute.xlu0 %2937  ;;  %4295 = vmatpush3.bf16.msra.mxu1 %v5370_v30 }
 0x262   : > { %4301 = vmatprep.subr.bf16.mxu1 %v4296_v2 }
 0x263   : > { %4182 = vmatmul.mubr.msk.f32.gmra.mrb[26].mxu1 %vm1546_vm5, %v2837_v47  ;;  %4189 = vmatmul.mubr.msk.f32.vlgmr.msra.gmra.mrb[26].mxu0 %vm1546_vm5, %v2938_v21 }
 0x264   : > { %4191 = vmatprep.mubr.msk.f32.mxu0 %vm1546_vm5, %v2940_v1  ;;  %4198 = vmatprep.mubr.msk.f32.mxu1 %vm1546_vm5, %v5457_v16  ;;  %v3047_v18 = vpop.permute.xlu1 %3046 }
 0x265   : > { %v2942_v13 = vpop.permute.xlu0 %2941  ;;  %4299 = vmatpush3.bf16.msra.mxu0 %v4296_v2 }
 0x266   : > { %4305 = vmatprep.subr.bf16.mxu0 %v4296_v2 }
 0x267   : > { %4192 = vmatmul.mubr.msk.f32.gmra.mrb[28].mxu0 %vm1546_vm5, %v2942_v13  ;;  %4199 = vmatmul.mubr.msk.f32.vlgmr.msra.gmra.mrb[28].mxu1 %vm1546_vm5, %v3043_v48 }
 0x268   : > { %4201 = vmatprep.mubr.msk.f32.mxu1 %vm1546_vm5, %v3045_v5  ;;  %4208 = vmatprep.mubr.msk.f32.mxu0 %vm1546_vm5, %v5385_v17  ;;  %v3517_v30 = vpop.permute.xlu1 %3516 }
 0x269   : > { %v3307_v59 = vpop.permute.xlu0 %3306  ;;  %4303 = vmatpush3.bf16.msra.mxu1 %v4296_v2 }
 0x26a   : > { %4309 = vmatprep.subr.bf16.mxu1 %v4296_v2 }
 0x26b   : > { %4202 = vmatmul.mubr.msk.f32.gmra.mrb[30].mxu1 %vm1546_vm5, %v3047_v18  ;;  %4209 = vmatmul.mubr.msk.f32.vlgmr.msra.gmra.mrb[30].mxu0 %vm1546_vm5, %v5402_v50 }
 0x26c   : > { %4211 = vmatprep.mubr.msk.f32.mxu0 %vm1546_vm5, %v5408_v14  ;;  %4218 = vmatprep.mubr.msk.f32.mxu1 %vm1546_vm5, %v3307_v59  ;;  %v3313_v3 = vpop.permute.xlu1 %3312 }
 0x26d   : > { %v3412_v20 = vpop.permute.xlu0 %3411  ;;  %4307 = vmatpush3.bf16.msra.mxu0 %v4296_v2 }
 0x26f   : > { %4212 = vmatmul.mubr.msk.f32.gmra.mrb[32].mxu0 %vm1546_vm5, %v5395_v34 }
 0x270   : > { %4228 = vmatprep.mubr.msk.f32.mxu0 %vm1546_vm5, %v3412_v20  ;;  %v3309_v17 = vpop.permute.xlu1 %3308 }
 0x271   : > { %v3311_v60 = vpop.permute.xlu0 %3310  ;;  %4219 = vmatmul.mubr.msk.f32.vlgmr.msra.gmra.mrb[32].mxu1 %vm1546_vm5, %v3309_v17 }
 0x272   : > { %4311 = vmatpush3.bf16.msra.mxu1 %v4296_v2  ;;  %4221 = vmatprep.mubr.msk.f32.mxu1 %vm1546_vm5, %v3311_v60 }
 0x274   : > { %v3519_v50 = vpop.permute.xlu1 %3518 }
 0x275   : > { %v3414_v14 = vpop.permute.xlu0 %3413  ;;  %4222 = vmatmul.mubr.msk.f32.gmra.mrb[34].mxu1 %vm1546_vm5, %v3313_v3 }
 0x276   : > { %4229 = vmatmul.mubr.msk.f32.vlgmr.msra.gmra.mrb[34].mxu0 %vm1546_vm5, %v3414_v14  ;;  %4238 = vmatprep.mubr.msk.f32.mxu1 %vm1546_vm5, %v3517_v30 }
 0x278   : > { %v3521_v34 = vpop.permute.xlu1 %3520 }
 0x279   : > { %v3416_v56 = vpop.permute.xlu0 %3415  ;;  %4239 = vmatmul.mubr.msk.f32.vlgmr.msra.gmra.mrb[36].mxu1 %vm1546_vm5, %v3519_v50 }
 0x27a   : > { %4231 = vmatprep.mubr.msk.f32.mxu0 %vm1546_vm5, %v3416_v56  ;;  %4241 = vmatprep.mubr.msk.f32.mxu1 %vm1546_vm5, %v3521_v34 }
 0x27c   : > { %v3523_v23 = vpop.permute.xlu1 %3522 }
 0x27d   : > { %v3418_v40 = vpop.permute.xlu0 %3417  ;;  %4242 = vmatmul.mubr.msk.f32.gmra.mrb[38].mxu1 %vm1546_vm5, %v3523_v23  ;;  %v4090_v11 = vpop.f32.mrb[0].mxu1 }
 0x27e   : > { %4232 = vmatmul.mubr.msk.f32.gmra.mrb[36].mxu0 %vm1546_vm5, %v3418_v40  ;;  %1879 = vst.msk [vmem:[%s5525_s17 + $0x8] sm:$0xff] %vm1877_vm8, %v4090_v11  ;;  %v1858_v46 = vpop.f32.mrb[1].mxu1 }
 0x27f   : > { %1878 = vst.msk [vmem:[%s5525_s17] sm:$0xff] %vm1877_vm8, %v1858_v46 }
 0x28a   : > { %v4093_v61 = vpop.f32.mrb[2].mxu1 }
 0x28b   : > { %1882 = vst.msk [vmem:[%s5525_s17 + $0x18] sm:$0xf] %vm1881_vm9, %v4093_v61  ;;  %v1868_v57 = vpop.f32.mrb[3].mxu1 }
 0x28c   : > { %1880 = vst.msk [vmem:[%s5525_s17 + $0x10] sm:$0xff] %vm1877_vm8, %v1868_v57 }
 0x29a   : > { %v4130_v39 = vpop.f32.mrb[14].mxu0 }
 0x29b   : > { %3841 = vst.msk [vmem:[%s5525_s17 + $0x78] sm:$0xff] %vm1877_vm8, %v4130_v39  ;;  %v2336_v62 = vpop.f32.mrb[15].mxu0 }
 0x29c   : > { %3840 = vst.msk [vmem:[%s5525_s17 + $0x70] sm:$0xff] %vm1877_vm8, %v2336_v62 }
 0x2aa   : > { %v4133_v19 = vpop.f32.mrb[16].mxu0 }
 0x2ab   : > { %3843 = vst.msk [vmem:[%s5525_s17 + $0x88] sm:$0xf] %vm1881_vm9, %v4133_v19  ;;  %v2346_v63 = vpop.f32.mrb[17].mxu0 }
 0x2ac   : > { %3842 = vst.msk [vmem:[%s5525_s17 + $0x80] sm:$0xff] %vm1877_vm8, %v2346_v63 }
 0x2f3   : > { %v4100_v4 = vpop.f32.mrb[4].mxu1 }
 0x2f4   : > { %1985 = vst.msk [vmem:[%s5525_s17 + $0x24] sm:$0xff] %vm1877_vm8, %v4100_v4  ;;  %v1965_v25 = vpop.f32.mrb[5].mxu1 }
 0x2f5   : > { %1984 = vst.msk [vmem:[%s5525_s17 + $0x1c] sm:$0xff] %vm1877_vm8, %v1965_v25 }
 0x308   : > { %v4103_v51 = vpop.f32.mrb[6].mxu1 }
 0x309   : > { %1987 = vst.msk [vmem:[%s5525_s17 + $0x34] sm:$0xf] %vm1881_vm9, %v4103_v51  ;;  %v1975_v9 = vpop.f32.mrb[7].mxu1 }
 0x30a   : > { %1986 = vst.msk [vmem:[%s5525_s17 + $0x2c] sm:$0xff] %vm1877_vm8, %v1975_v9 }
 0x30c   : > { %v4110_v22 = vpop.f32.mrb[8].mxu1 }
 0x30d   : > { %2090 = vst.msk [vmem:[%s5525_s17 + $0x40] sm:$0xff] %vm1877_vm8, %v4110_v22  ;;  %v2070_v27 = vpop.f32.mrb[9].mxu1 }
 0x30e   : > { %2089 = vst.msk [vmem:[%s5525_s17 + $0x38] sm:$0xff] %vm1877_vm8, %v2070_v27 }
 0x310   : > { %v4113_v32 = vpop.f32.mrb[10].mxu1 }
 0x311   : > { %2092 = vst.msk [vmem:[%s5525_s17 + $0x50] sm:$0xf] %vm1881_vm9, %v4113_v32  ;;  %v2080_v16 = vpop.f32.mrb[11].mxu1 }
 0x312   : > { %2091 = vst.msk [vmem:[%s5525_s17 + $0x48] sm:$0xff] %vm1877_vm8, %v2080_v16 }
 0x314   : > { %v4120_v24 = vpop.f32.mrb[12].mxu1 }
 0x315   : > { %v4150_v26 = vpop.f32.mrb[18].mxu0  ;;  %2195 = vst.msk [vmem:[%s5525_s17 + $0x5c] sm:$0xff] %vm1877_vm8, %v4120_v24  ;;  %v2175_v33 = vpop.f32.mrb[13].mxu1 }
 0x316   : > { %3857 = vst.msk [vmem:[%s5525_s17 + $0xb0] sm:$0xff] %vm1877_vm8, %v4150_v26  ;;  %v2547_v28 = vpop.f32.mrb[19].mxu0  ;;  %2194 = vst.msk [vmem:[%s5525_s17 + $0x54] sm:$0xff] %vm1877_vm8, %v2175_v33 }
 0x317   : > { %3856 = vst.msk [vmem:[%s5525_s17 + $0xa8] sm:$0xff] %vm1877_vm8, %v2547_v28 }
 0x318   : > { %v4123_v29 = vpop.f32.mrb[14].mxu1 }
 0x319   : > { %2197 = vst.msk [vmem:[%s5525_s17 + $0x6c] sm:$0xf] %vm1881_vm9, %v4123_v29  ;;  %v2185_v15 = vpop.f32.mrb[15].mxu1 }
 0x31a   : > { %2196 = vst.msk [vmem:[%s5525_s17 + $0x64] sm:$0xff] %vm1877_vm8, %v2185_v15 }
 0x31c   : > { %v4140_v44 = vpop.f32.mrb[16].mxu1 }
 0x31d   : > { %3849 = vst.msk [vmem:[%s5525_s17 + $0x94] sm:$0xff] %vm1877_vm8, %v4140_v44  ;;  %v2442_v31 = vpop.f32.mrb[17].mxu1 }
 0x31e   : > { %3848 = vst.msk [vmem:[%s5525_s17 + $0x8c] sm:$0xff] %vm1877_vm8, %v2442_v31 }
 0x326   : > { %v4143_v36 = vpop.f32.mrb[18].mxu1 }
 0x327   : > { %3851 = vst.msk [vmem:[%s5525_s17 + $0xa4] sm:$0xf] %vm1881_vm9, %v4143_v36  ;;  %v2452_v42 = vpop.f32.mrb[19].mxu1 }
 0x328   : > { %3850 = vst.msk [vmem:[%s5525_s17 + $0x9c] sm:$0xff] %vm1877_vm8, %v2452_v42 }
 0x32a   : > { %v4153_v43 = vpop.f32.mrb[20].mxu0  ;;  %v4160_v52 = vpop.f32.mrb[20].mxu1 }
 0x32b   : > { %3859 = vst.msk [vmem:[%s5525_s17 + $0xc0] sm:$0xf] %vm1881_vm9, %v4153_v43  ;;  %v2557_v35 = vpop.f32.mrb[21].mxu0  ;;  %v2652_v0 = vpop.f32.mrb[21].mxu1 }
 0x32c   : > { %3865 = vst.msk [vmem:[%s5525_s17 + $0xcc] sm:$0xff] %vm1877_vm8, %v4160_v52  ;;  %3858 = vst.msk [vmem:[%s5525_s17 + $0xb8] sm:$0xff] %vm1877_vm8, %v2557_v35 }
 0x32d   : > { %3864 = vst.msk [vmem:[%s5525_s17 + $0xc4] sm:$0xff] %vm1877_vm8, %v2652_v0 }
 0x32e   : > { %v4163_v54 = vpop.f32.mrb[22].mxu1  ;;  %v4170_v55 = vpop.f32.mrb[22].mxu0 }
 0x32f   : > { %3867 = vst.msk [vmem:[%s5525_s17 + $0xdc] sm:$0xf] %vm1881_vm9, %v4163_v54  ;;  %v2662_v49 = vpop.f32.mrb[23].mxu1  ;;  %v2806_v6 = vpop.f32.mrb[23].mxu0 }
 0x330   : > { %3875 = vst.msk [vmem:[%s5525_s17 + $0xe8] sm:$0xff] %vm1877_vm8, %v4170_v55  ;;  %3866 = vst.msk [vmem:[%s5525_s17 + $0xd4] sm:$0xff] %vm1877_vm8, %v2662_v49 }
 0x331   : > { %3874 = vst.msk [vmem:[%s5525_s17 + $0xe0] sm:$0xff] %vm1877_vm8, %v2806_v6 }
 0x332   : > { %v4173_v45 = vpop.f32.mrb[24].mxu0  ;;  %v4180_v8 = vpop.f32.mrb[24].mxu1 }
 0x333   : > { %3877 = vst.msk [vmem:[%s5525_s17 + $0xf8] sm:$0xf] %vm1881_vm9, %v4173_v45  ;;  %v2816_v38 = vpop.f32.mrb[25].mxu0  ;;  %v2912_v41 = vpop.f32.mrb[25].mxu1 }
 0x334   : > { %3883 = vst.msk [vmem:[%s5525_s17 + $0x104] sm:$0xff] %vm1877_vm8, %v4180_v8  ;;  %3876 = vst.msk [vmem:[%s5525_s17 + $0xf0] sm:$0xff] %vm1877_vm8, %v2816_v38 }
 0x335   : > { %3882 = vst.msk [vmem:[%s5525_s17 + $0xfc] sm:$0xff] %vm1877_vm8, %v2912_v41 }
 0x336   : > { %v4183_v58 = vpop.f32.mrb[26].mxu1  ;;  %v4190_v5 = vpop.f32.mrb[26].mxu0 }
 0x337   : > { %3885 = vst.msk [vmem:[%s5525_s17 + $0x114] sm:$0xf] %vm1881_vm9, %v4183_v58  ;;  %v2922_v37 = vpop.f32.mrb[27].mxu1  ;;  %v3017_v10 = vpop.f32.mrb[27].mxu0 }
 0x338   : > { %3891 = vst.msk [vmem:[%s5525_s17 + $0x120] sm:$0xff] %vm1877_vm8, %v4190_v5  ;;  %3884 = vst.msk [vmem:[%s5525_s17 + $0x10c] sm:$0xff] %vm1877_vm8, %v2922_v37 }
 0x339   : > { %3890 = vst.msk [vmem:[%s5525_s17 + $0x118] sm:$0xff] %vm1877_vm8, %v3017_v10 }
 0x33a   : > { %v4193_v12 = vpop.f32.mrb[28].mxu0  ;;  %v4200_v7 = vpop.f32.mrb[28].mxu1 }
 0x33b   : > { %3893 = vst.msk [vmem:[%s5525_s17 + $0x130] sm:$0xf] %vm1881_vm9, %v4193_v12  ;;  %v3027_v53 = vpop.f32.mrb[29].mxu0  ;;  %v3122_v2 = vpop.f32.mrb[29].mxu1 }
 0x33c   : > { %3899 = vst.msk [vmem:[%s5525_s17 + $0x13c] sm:$0xff] %vm1877_vm8, %v4200_v7  ;;  %3892 = vst.msk [vmem:[%s5525_s17 + $0x128] sm:$0xff] %vm1877_vm8, %v3027_v53 }
 0x33d   : > { %3898 = vst.msk [vmem:[%s5525_s17 + $0x134] sm:$0xff] %vm1877_vm8, %v3122_v2 }
 0x33e   : > { %v4203_v48 = vpop.f32.mrb[30].mxu1  ;;  %v4210_v1 = vpop.f32.mrb[30].mxu0 }
 0x33f   : > { %3901 = vst.msk [vmem:[%s5525_s17 + $0x14c] sm:$0xf] %vm1881_vm9, %v4203_v48  ;;  %v3132_v47 = vpop.f32.mrb[31].mxu1  ;;  %v3282_v21 = vpop.f32.mrb[31].mxu0 }
 0x340   : > { %3909 = vst.msk [vmem:[%s5525_s17 + $0x158] sm:$0xff] %vm1877_vm8, %v4210_v1  ;;  %3900 = vst.msk [vmem:[%s5525_s17 + $0x144] sm:$0xff] %vm1877_vm8, %v3132_v47 }
 0x341   : > { %3908 = vst.msk [vmem:[%s5525_s17 + $0x150] sm:$0xff] %vm1877_vm8, %v3282_v21 }
 0x342   : > { %v4213_v18 = vpop.f32.mrb[32].mxu0 }
 0x343   : > { %3911 = vst.msk [vmem:[%s5525_s17 + $0x168] sm:$0xf] %vm1881_vm9, %v4213_v18  ;;  %v3292_v13 = vpop.f32.mrb[33].mxu0 }
 0x344   : > { %3910 = vst.msk [vmem:[%s5525_s17 + $0x160] sm:$0xff] %vm1877_vm8, %v3292_v13  ;;  %v4220_v30 = vpop.f32.mrb[32].mxu1 }
 0x345   : > { %3917 = vst.msk [vmem:[%s5525_s17 + $0x174] sm:$0xff] %vm1877_vm8, %v4220_v30  ;;  %v3388_v59 = vpop.f32.mrb[33].mxu1 }
 0x346   : > { %3916 = vst.msk [vmem:[%s5525_s17 + $0x16c] sm:$0xff] %vm1877_vm8, %v3388_v59 }
 0x348   : > { %v4223_v3 = vpop.f32.mrb[34].mxu1 }
 0x349   : > { %3919 = vst.msk [vmem:[%s5525_s17 + $0x184] sm:$0xf] %vm1881_vm9, %v4223_v3  ;;  %v4230_v20 = vpop.f32.mrb[34].mxu0  ;;  %v3398_v17 = vpop.f32.mrb[35].mxu1 }
 0x34a   : > { %3925 = vst.msk [vmem:[%s5525_s17 + $0x190] sm:$0xff] %vm1877_vm8, %v4230_v20  ;;  %3918 = vst.msk [vmem:[%s5525_s17 + $0x17c] sm:$0xff] %vm1877_vm8, %v3398_v17  ;;  %v3493_v60 = vpop.f32.mrb[35].mxu0 }
 0x34b   : > { %3924 = vst.msk [vmem:[%s5525_s17 + $0x188] sm:$0xff] %vm1877_vm8, %v3493_v60 }
 0x34c   : > { %v4240_v50 = vpop.f32.mrb[36].mxu1 }
 0x34d   : > { %3933 = vst.msk [vmem:[%s5525_s17 + $0x1ac] sm:$0xff] %vm1877_vm8, %v4240_v50  ;;  %v3598_v14 = vpop.f32.mrb[37].mxu1 }
 0x34e   : > { %3932 = vst.msk [vmem:[%s5525_s17 + $0x1a4] sm:$0xff] %vm1877_vm8, %v3598_v14 }
 0x350   : > { %v4243_v34 = vpop.f32.mrb[38].mxu1 }
 0x351   : > { %v4233_v56 = vpop.f32.mrb[36].mxu0  ;;  %3935 = vst.msk [vmem:[%s5525_s17 + $0x1bc] sm:$0xf] %vm1881_vm9, %v4243_v34  ;;  %v3608_v23 = vpop.f32.mrb[39].mxu1 }
 0x352   : > { %3927 = vst.msk [vmem:[%s5525_s17 + $0x1a0] sm:$0xf] %vm1881_vm9, %v4233_v56  ;;  %v3503_v40 = vpop.f32.mrb[37].mxu0 }
 0x353   : > { %3934 = vst.msk [vmem:[%s5525_s17 + $0x1b4] sm:$0xff] %vm1877_vm8, %v3608_v23  ;;  %3926 = vst.msk [vmem:[%s5525_s17 + $0x198] sm:$0xff] %vm1877_vm8, %v3503_v40 }
 0x354 PF: > { %p26_p6 = scmp.ge.s32.totalorder %s4678_s26, 7   ;;  %s5694_s0 = smov %s4552_s21 }
 0x355   : > { %s5695_s21 = smov %s4556_s22  ;;  %s5696_s22 = smov %s4782_s14 }
 0x356   : > { %s5697_s23 = smov %s4678_s26  ;;  %28 = sbr.rel (!%p26_p6) target bundleno = 25 (0x19), region = 100 }
 0x35d   :  { %3645 = vsyncpa [#allocation6], 1 }
 0x35e   :  { %3647 = vsyncpa [#allocation6 + $0x1], 1 }
 0x35f   :  { %3648 = vsyncpa [#allocation7], 1 }
 0x360   :  { %3650 = vsyncpa [#allocation7 + $0x1], 1 }
 0x361   :  { %3651 = vsyncpa [#allocation9], 1 }
 0x362   :  { %3652 = vsyncpa [#allocation12], 1 }

</bundles_post_ra>
